<compile_context>
chip_gen: v7x
topology: tpu7x:2x2x1
jax: 0.10.0
libtpu: 0.0.40
codegen_flags: <defaults>
</compile_context>

<pallas_src>
import functools
import math

import jax
import jax.numpy as jnp
from jax import lax
from jax.experimental import pallas as pl
from jax.experimental.pallas import tpu as pltpu


VMEM_LIMIT = 32 * 1024 * 1024  # safe on v5e/v6e/v7x scoped-VMEM budgets


def _vmem():
    # Whole-array block resident in VMEM (used only for tiny, grid-less kernels).
    return pl.BlockSpec(memory_space=pltpu.MemorySpace.VMEM)


def _group_select_matrix(c, num_groups, spatial):
    """(C, C) matrix M with M[i, j] = 1/(spatial*Cg) if same group else 0.

    Lets the kernel turn per-channel sums into per-channel group means with one
    tiny matmul (no lane-sparse per-group slicing / concatenation in-kernel).
    """
    cg = c // num_groups
    gid = jnp.arange(c) // cg
    m = (gid[:, None] == gid[None, :]).astype(jnp.float32)
    return m / float(spatial * cg)


# ---------------------------------------------------------------------------
# Kernel A: fused GroupNorm + SiLU + 3x3 conv (pad=1, stride=1)
#           + channel bias (+ optional residual add).   grid = (N,) parallel
# ---------------------------------------------------------------------------

def _fused_gn_silu_conv_kernel(x_ref, g_ref, b_ref, gsel_ref, w_ref, cb_ref,
                               *rest, eps, add_residual, cbias_per_sample):
    if add_residual:
        res_ref, o_ref, hp_ref = rest
    else:
        res_ref = None
        o_ref, hp_ref = rest

    _, H, W, C = x_ref.shape
    Cout = o_ref.shape[3]

    # ---- single-pass GroupNorm statistics (sum and sum-of-squares) ----
    x = x_ref[0].astype(jnp.float32)                                 # (H, W, C)
    colsum = jnp.sum(jnp.sum(x, axis=0), axis=0, keepdims=True)      # (1, C)
    colsq = jnp.sum(jnp.sum(x * x, axis=0), axis=0, keepdims=True)   # (1, C)
    mean = jnp.dot(colsum, gsel_ref[...], preferred_element_type=jnp.float32)
    ex2 = jnp.dot(colsq, gsel_ref[...], preferred_element_type=jnp.float32)
    var = ex2 - mean * mean
    scl = g_ref[...].astype(jnp.float32) * lax.rsqrt(var + eps)      # (1, C)
    sft = b_ref[...].astype(jnp.float32) - mean * scl                # (1, C)

    # ---- affine + SiLU, written into a zero-halo VMEM buffer ----
    y = x * scl + sft
    y = y * jax.nn.sigmoid(y)
    hp_ref[...] = jnp.zeros_like(hp_ref)
    hp_ref[1:H + 1, 1:W + 1, :] = y.astype(hp_ref.dtype)

    # per-sample channel bias (conv bias [+ time-embedding projection])
    row = pl.program_id(0) if cbias_per_sample else 0
    cb = cb_ref[pl.ds(row, 1), :].astype(jnp.float32)                # (1, Cout)

    # ---- 3x3 conv: 9 accumulating MXU matmuls per output row ----
    def conv_row(i, carry):
        acc = jnp.zeros((W, Cout), jnp.float32)
        for t in range(9):
            ky, kx = divmod(t, 3)
            tap = hp_ref[i + ky, kx:kx + W, :]                       # (W, C)
            acc = acc + jnp.dot(tap, w_ref[t],
                                preferred_element_type=jnp.float32)
        acc = acc + cb
        if add_residual:
            acc = acc + res_ref[0, i, :, :].astype(jnp.float32)
        o_ref[0, i, :, :] = acc.astype(o_ref.dtype)
        return carry

    lax.fori_loop(0, H, conv_row, 0)


def fused_gn_silu_conv3x3(x, gamma, beta, w9, cbias, num_groups, *,
                          eps=1e-5, residual=None, cbias_per_sample=False):
    n, h, w, c = x.shape
    cout = w9.shape[-1]
    assert c % num_groups == 0
    gsel = _group_select_matrix(c, num_groups, h * w)

    kern = functools.partial(_fused_gn_silu_conv_kernel, eps=eps,
                             add_residual=residual is not None,
                             cbias_per_sample=cbias_per_sample)

    in_specs = [
        pl.BlockSpec((1, h, w, c), lambda i: (i, 0, 0, 0)),
        pl.BlockSpec((1, c), lambda i: (0, 0)),
        pl.BlockSpec((1, c), lambda i: (0, 0)),
        pl.BlockSpec((c, c), lambda i: (0, 0)),
        pl.BlockSpec((9, c, cout), lambda i: (0, 0, 0)),
        pl.BlockSpec(cbias.shape, lambda i: (0, 0)),
    ]
    args = [x, gamma.reshape(1, c), beta.reshape(1, c), gsel, w9, cbias]
    if residual is not None:
        in_specs.append(pl.BlockSpec((1, h, w, c), lambda i: (i, 0, 0, 0)))
        args.append(residual)

    return pl.pallas_call(
        kern,
        out_shape=jax.ShapeDtypeStruct((n, h, w, cout), x.dtype),
        grid=(n,),
        in_specs=in_specs,
        out_specs=pl.BlockSpec((1, h, w, cout), lambda i: (i, 0, 0, 0)),
        scratch_shapes=[pltpu.VMEM((h + 2, w + 2, c), x.dtype)],
        compiler_params=pltpu.CompilerParams(
            dimension_semantics=("parallel",),
            vmem_limit_bytes=VMEM_LIMIT),
    )(*args)


# ---------------------------------------------------------------------------
# Kernel B: fused attention block (GN + per-head QKV + online softmax + proj
#           + residual).   grid = (N,) parallel
# ---------------------------------------------------------------------------

def _attn_block_kernel(x_ref, g_ref, b_ref, gsel_ref,
                       wq_ref, wk_ref, wv_ref, bq_ref, bk_ref, bv_ref,
                       wo_ref, bo_ref, o_ref, *, eps, kv_chunk):
    _, S, C = x_ref.shape
    num_heads = wq_ref.shape[0]
    dh = wq_ref.shape[2]
    scale = 1.0 / math.sqrt(dh)

    # ---- GroupNorm (single-pass stats, f32) ----
    x = x_ref[0].astype(jnp.float32)                                 # (S, C)
    colsum = jnp.sum(x, axis=0, keepdims=True)                       # (1, C)
    colsq = jnp.sum(x * x, axis=0, keepdims=True)
    mean = jnp.dot(colsum, gsel_ref[...], preferred_element_type=jnp.float32)
    ex2 = jnp.dot(colsq, gsel_ref[...], preferred_element_type=jnp.float32)
    var = ex2 - mean * mean
    scl = g_ref[...].astype(jnp.float32) * lax.rsqrt(var + eps)
    sft = b_ref[...].astype(jnp.float32) - mean * scl
    h32 = x * scl + sft
    h16 = h32.astype(wq_ref.dtype)                                   # (S, C)

    out = x + bo_ref[...].astype(jnp.float32)                        # residual + proj bias

    for hd in range(num_heads):
        q = jnp.dot(h16, wq_ref[hd], preferred_element_type=jnp.float32) \
            + bq_ref[hd].astype(jnp.float32)
        k = jnp.dot(h16, wk_ref[hd], preferred_element_type=jnp.float32) \
            + bk_ref[hd].astype(jnp.float32)
        v = jnp.dot(h16, wv_ref[hd], preferred_element_type=jnp.float32) \
            + bv_ref[hd].astype(jnp.float32)
        q16 = (q * scale).astype(h16.dtype)

        # flash-style online softmax over KV chunks (bounds VMEM to S x kv_chunk)
        m_i = jnp.full((S, 1), -1e30, jnp.float32)
        l_i = jnp.zeros((S, 1), jnp.float32)
        acc = jnp.zeros((S, dh), jnp.float32)
        for kv0 in range(0, S, kv_chunk):
            kc = k[kv0:kv0 + kv_chunk, :].astype(h16.dtype)
            vc = v[kv0:kv0 + kv_chunk, :].astype(h16.dtype)
            s = jnp.einsum("qd,kd->qk", q16, kc,
                           preferred_element_type=jnp.float32)
            m_new = jnp.maximum(m_i, jnp.max(s, axis=-1, keepdims=True))
            alpha = jnp.exp(m_i - m_new)
            p = jnp.exp(s - m_new)
            l_i = alpha * l_i + jnp.sum(p, axis=-1, keepdims=True)
            acc = alpha * acc + jnp.dot(p.astype(h16.dtype), vc,
                                        preferred_element_type=jnp.float32)
            m_i = m_new
        ctx = acc * pl.reciprocal(l_i, approx=True)                  # (S, dh)
        out = out + jnp.dot(ctx.astype(h16.dtype), wo_ref[hd],
                            preferred_element_type=jnp.float32)

    o_ref[0] = out.astype(o_ref.dtype)


def attention_block(x, p, num_heads, num_groups, eps=1e-5):
    n, h, w, c = x.shape
    s = h * w
    dh = c // num_heads
    assert c % num_heads == 0 and c % num_groups == 0
    xf = x.reshape(n, s, c)  # free (layout-preserving) reshape in XLA
    gsel = _group_select_matrix(c, num_groups, s)
    kv_chunk = min(s, 256)

    kern = functools.partial(_attn_block_kernel, eps=eps, kv_chunk=kv_chunk)
    out = pl.pallas_call(
        kern,
        out_shape=jax.ShapeDtypeStruct((n, s, c), x.dtype),
        grid=(n,),
        in_specs=[
            pl.BlockSpec((1, s, c), lambda i: (i, 0, 0)),
            pl.BlockSpec((1, c), lambda i: (0, 0)),
            pl.BlockSpec((1, c), lambda i: (0, 0)),
            pl.BlockSpec((c, c), lambda i: (0, 0)),
            pl.BlockSpec((num_heads, c, dh), lambda i: (0, 0, 0)),
            pl.BlockSpec((num_heads, c, dh), lambda i: (0, 0, 0)),
            pl.BlockSpec((num_heads, c, dh), lambda i: (0, 0, 0)),
            pl.BlockSpec((num_heads, 1, dh), lambda i: (0, 0, 0)),
            pl.BlockSpec((num_heads, 1, dh), lambda i: (0, 0, 0)),
            pl.BlockSpec((num_heads, 1, dh), lambda i: (0, 0, 0)),
            pl.BlockSpec((num_heads, dh, c), lambda i: (0, 0, 0)),
            pl.BlockSpec((1, c), lambda i: (0, 0)),
        ],
        out_specs=pl.BlockSpec((1, s, c), lambda i: (i, 0, 0)),
        compiler_params=pltpu.CompilerParams(
            dimension_semantics=("parallel",),
            vmem_limit_bytes=VMEM_LIMIT),
    )(xf, p["gn_g"].reshape(1, c), p["gn_b"].reshape(1, c), gsel,
      p["wq"], p["wk"], p["wv"], p["bq"], p["bk"], p["bv"],
      p["wo"], p["bo"].reshape(1, c))
    return out.reshape(n, h, w, c)


# ---------------------------------------------------------------------------
# Kernel C: stride-2 downsample conv (space-to-depth, 4 accumulating matmuls)
# ---------------------------------------------------------------------------

def _downsample_conv_kernel(x_ref, w_ref, b_ref, o_ref):
    _, hp2, wp2, c4 = x_ref.shape
    _, ho, wo, co = o_ref.shape
    bias = b_ref[...].astype(jnp.float32)                            # (1, Co)

    def conv_row(io, carry):
        acc = jnp.zeros((wo, co), jnp.float32)
        for t in range(4):
            a, b = divmod(t, 2)
            tap = x_ref[0, io + a, b:b + wo, :]                      # (Wo, 4C)
            acc = acc + jnp.dot(tap, w_ref[t],
                                preferred_element_type=jnp.float32)
        o_ref[0, io, :, :] = (acc + bias).astype(o_ref.dtype)
        return carry

    lax.fori_loop(0, ho, conv_row, 0)


def _s2d_weights(w):
    """(3,3,C,Co) conv weight -> (4, 4C, Co) weights for 2x2 taps on s2d input."""
    c, co = w.shape[2], w.shape[3]
    zero = jnp.zeros((c, co), w.dtype)
    blocks = []
    for a in (0, 1):
        for b in (0, 1):
            rows = []
            for dy in (0, 1):
                for dx in (0, 1):
                    ky, kx = 2 * a + dy, 2 * b + dx
                    rows.append(w[ky, kx] if (ky < 3 and kx < 3) else zero)
            blocks.append(jnp.concatenate(rows, axis=0))             # (4C, Co)
    return jnp.stack(blocks, axis=0)                                 # (4, 4C, Co)


def downsample_conv(x, w, bias):
    n, h, wd, c = x.shape
    assert h % 2 == 0 and wd % 2 == 0
    co = w.shape[-1]
    hp, wp = h + 2, wd + 2
    # zero-pad + space-to-depth (cheap host-side layout prep; traffic ~activation)
    xpad = jnp.pad(x, ((0, 0), (1, 1), (1, 1), (0, 0)))
    xs2d = xpad.reshape(n, hp // 2, 2, wp // 2, 2, c)
    xs2d = xs2d.transpose(0, 1, 3, 2, 4, 5).reshape(n, hp // 2, wp // 2, 4 * c)
    w4 = _s2d_weights(w)

    return pl.pallas_call(
        _downsample_conv_kernel,
        out_shape=jax.ShapeDtypeStruct((n, h // 2, wd // 2, co), x.dtype),
        grid=(n,),
        in_specs=[
            pl.BlockSpec((1, hp // 2, wp // 2, 4 * c), lambda i: (i, 0, 0, 0)),
            pl.BlockSpec((4, 4 * c, co), lambda i: (0, 0, 0)),
            pl.BlockSpec((1, co), lambda i: (0, 0)),
        ],
        out_specs=pl.BlockSpec((1, h // 2, wd // 2, co), lambda i: (i, 0, 0, 0)),
        compiler_params=pltpu.CompilerParams(
            dimension_semantics=("parallel",),
            vmem_limit_bytes=VMEM_LIMIT),
    )(xs2d, w4, bias.reshape(1, co).astype(jnp.float32))


# ---------------------------------------------------------------------------
# Time-embedding projection for both residual blocks in one tiny kernel
# ---------------------------------------------------------------------------

def _emb_proj_kernel(e_ref, w_ref, b_ref, o_ref):
    e = e_ref[...].astype(jnp.float32)
    e = e * jax.nn.sigmoid(e)                                        # SiLU
    o = jnp.dot(e.astype(w_ref.dtype), w_ref[...],
                preferred_element_type=jnp.float32)
    o_ref[...] = o + b_ref[...]


def emb_channel_bias(emb, p_res1, p_res2):
    """Returns (N, C) channel biases for stage-1 of each residual block:
       silu(emb) @ W_emb + b_emb + conv1_bias  (conv bias folded in)."""
    n = emb.shape[0]
    c = p_res1["emb_w"].shape[1]
    w_cat = jnp.concatenate([p_res1["emb_w"], p_res2["emb_w"]], axis=1)
    b_cat = jnp.concatenate([p_res1["emb_b"] + p_res1["conv1_b"],
                             p_res2["emb_b"] + p_res2["conv1_b"]])
    out = pl.pallas_call(
        _emb_proj_kernel,
        out_shape=jax.ShapeDtypeStruct((n, 2 * c), jnp.float32),
        in_specs=[_vmem(), _vmem(), _vmem()],
        out_specs=_vmem(),
    )(emb, w_cat, b_cat.reshape(1, 2 * c).astype(jnp.float32))
    return out[:, :c], out[:, c:]


# ------------------------------ Block pieces --------------------------------

def residual_block(x, cbias, p, num_groups):
    n, h, w, c = x.shape
    # stage 1: h = Conv3x3(SiLU(GN1(x))) + (emb projection + conv1 bias)
    hid = fused_gn_silu_conv3x3(
        x, p["gn1_g"], p["gn1_b"], p["conv1_w"].reshape(9, c, c),
        cbias, num_groups, cbias_per_sample=True)
    # stage 2: out = x + Conv3x3(Dropout(SiLU(GN2(h))))
    # TODO(synk): dropout is a no-op (eval-mode forward); training RNG dropout not implemented.
    out = fused_gn_silu_conv3x3(
        hid, p["gn2_g"], p["gn2_b"], p["conv2_w"].reshape(9, c, c),
        p["conv2_b"].reshape(1, c).astype(jnp.float32),
        num_groups, residual=x, cbias_per_sample=False)
    return out


def block_forward(x, emb, params, *, num_groups, num_heads, attn, downsample):
    """Equivalent of Block.forward: returns (conv(x), x)."""
    cb1, cb2 = emb_channel_bias(emb, params["res1"], params["res2"])
    x = residual_block(x, cb1, params["res1"], num_groups)
    if attn:
        x = attention_block(x, params["attn"], num_heads, num_groups)
    x = residual_block(x, cb2, params["res2"], num_groups)
    if downsample:
        y = downsample_conv(x, params["down_w"], params["down_b"])
    else:
        # TODO(synk): ConvTranspose2d(k=4, s=2, p=1) upsample branch not implemented.
        raise NotImplementedError("upsample branch not implemented")
    return y, x


# ------------------------------- Param init ---------------------------------

def init_params(key, channels, emb_dim, num_heads, dtype=jnp.bfloat16):
    c = channels
    dh = c // num_heads

    def nrm(k, shape, scale=0.1):
        return (scale * jax.random.normal(k, shape, jnp.float32)).astype(dtype)

    def res_params(k):
        k1, k2, k3 = jax.random.split(k, 3)
        return dict(
            gn1_g=jnp.ones((c,), jnp.float32), gn1_b=jnp.zeros((c,), jnp.float32),
            conv1_w=nrm(k1, (3, 3, c, c)), conv1_b=jnp.zeros((c,), jnp.float32),
            emb_w=nrm(k2, (emb_dim, c)), emb_b=jnp.zeros((c,), jnp.float32),
            gn2_g=jnp.ones((c,), jnp.float32), gn2_b=jnp.zeros((c,), jnp.float32),
            conv2_w=nrm(k3, (3, 3, c, c)), conv2_b=jnp.zeros((c,), jnp.float32),
        )

    k1, k2, k3, k4 = jax.random.split(key, 4)
    ka = jax.random.split(k3, 4)
    return dict(
        res1=res_params(k1),
        res2=res_params(k2),
        attn=dict(
            gn_g=jnp.ones((c,), jnp.float32), gn_b=jnp.zeros((c,), jnp.float32),
            wq=nrm(ka[0], (num_heads, c, dh)), bq=jnp.zeros((num_heads, 1, dh), jnp.float32),
            wk=nrm(ka[1], (num_heads, c, dh)), bk=jnp.zeros((num_heads, 1, dh), jnp.float32),
            wv=nrm(ka[2], (num_heads, c, dh)), bv=jnp.zeros((num_heads, 1, dh), jnp.float32),
            wo=nrm(ka[3], (num_heads, dh, c)), bo=jnp.zeros((c,), jnp.float32),
        ),
        down_w=nrm(k4, (3, 3, c, 2 * c)),
        down_b=jnp.zeros((2 * c,), jnp.float32),
    )


# --------------------------------- Main --------------------------------------

if __name__ == "__main__":
    N, C, H, W = 2, 32, 8, 8
    NUM_GROUPS, NUM_HEADS, EMB_DIM = 4, 4, 64
    DTYPE = jnp.bfloat16  # bf16 activations/weights, f32 accumulation in-kernel

    key = jax.random.PRNGKey(0)
    kx, ke, kp = jax.random.split(key, 3)
    # layout: x is NHWC (PyTorch forward would receive x.transpose(0, 3, 1, 2))
    x = jax.random.normal(kx, (N, H, W, C), jnp.float32).astype(DTYPE)
    embeddings = jax.random.normal(ke, (N, EMB_DIM), jnp.float32).astype(DTYPE)
    params = init_params(kp, C, EMB_DIM, NUM_HEADS, DTYPE)

    fwd = jax.jit(functools.partial(
        block_forward, num_groups=NUM_GROUPS, num_heads=NUM_HEADS,
        attn=True, downsample=True))
    y_down, x_res = fwd(x, embeddings, params)
    (y_down, x_res) = jax.block_until_ready((y_down, x_res))

    assert y_down.shape == (N, H // 2, W // 2, 2 * C), y_down.shape
    assert x_res.shape == (N, H, W, C), x_res.shape
    assert bool(jnp.all(jnp.isfinite(y_down.astype(jnp.float32))))
    assert bool(jnp.all(jnp.isfinite(x_res.astype(jnp.float32))))
    print("KERNEL_OK")
</pallas_src>

<mosaic_0001>
module attributes {stable_mosaic.version = 11 : i64} {
  func.func @_emb_proj_kernel(%arg0: memref<2x64xbf16, #tpu.memory_space<vmem>>, %arg1: memref<64x64xbf16, #tpu.memory_space<vmem>>, %arg2: memref<1x64xf32, #tpu.memory_space<vmem>>, %arg3: memref<2x64xf32, #tpu.memory_space<vmem>>) attributes {dimension_semantics = [], scalar_prefetch = 0 : i64, scratch_operands = 0 : i64, tpu.core_type = #tpu.core_type<tc>} {
    %c0 = arith.constant 0 : index
    %c0_0 = arith.constant 0 : index
    %0 = vector.load %arg0[%c0, %c0_0] : memref<2x64xbf16, #tpu.memory_space<vmem>>, vector<2x64xbf16>
    %1 = arith.extf %0 : vector<2x64xbf16> to vector<2x64xf32>
    %2 = arith.negf %1 : vector<2x64xf32>
    %3 = math.exp %2 : vector<2x64xf32>
    %cst = arith.constant 1.000000e+00 : f32
    %4 = vector.broadcast %cst : f32 to vector<2x64xf32>
    %5 = arith.addf %4, %3 : vector<2x64xf32>
    %6 = arith.divf %4, %5 : vector<2x64xf32>
    %7 = arith.mulf %1, %6 : vector<2x64xf32>
    %8 = arith.truncf %7 : vector<2x64xf32> to vector<2x64xbf16>
    %c0_1 = arith.constant 0 : index
    %c0_2 = arith.constant 0 : index
    %9 = vector.load %arg1[%c0_1, %c0_2] : memref<64x64xbf16, #tpu.memory_space<vmem>>, vector<64x64xbf16>
    %cst_3 = arith.constant dense<0.000000e+00> : vector<2x64xf32>
    %10 = tpu.matmul %8, %9, %cst_3 {dimension_numbers = #tpu.dot_dimension_numbers<[1], [0], [0], [1], [0, 0, 1, 1], [], []>} : vector<2x64xbf16>, vector<64x64xbf16>, vector<2x64xf32> -> vector<2x64xf32>
    %c0_4 = arith.constant 0 : index
    %c0_5 = arith.constant 0 : index
    %11 = vector.load %arg2[%c0_4, %c0_5] : memref<1x64xf32, #tpu.memory_space<vmem>>, vector<1x64xf32>
    %12 = vector.broadcast %11 : vector<1x64xf32> to vector<2x64xf32>
    %13 = arith.addf %10, %12 : vector<2x64xf32>
    %c0_6 = arith.constant 0 : index
    %c0_7 = arith.constant 0 : index
    %14 = vector.load %arg3[%c0_6, %c0_7] : memref<2x64xf32, #tpu.memory_space<vmem>>, vector<2x64xf32>
    tpu.vector_store %arg3[%c0_6, %c0_7], %13 {strides = array<i32>} : memref<2x64xf32, #tpu.memory_space<vmem>>, vector<2x64xf32>,
    return
  }
}

module attributes {stable_mosaic.version = 11 : i64} {
  func.func @_fused_gn_silu_conv_kernel(%arg0: i32, %arg1: memref<1x8x8x32xbf16, #tpu.memory_space<vmem>>, %arg2: memref<1x32xf32, #tpu.memory_space<vmem>>, %arg3: memref<1x32xf32, #tpu.memory_space<vmem>>, %arg4: memref<32x32xf32, #tpu.memory_space<vmem>>, %arg5: memref<9x32x32xbf16, #tpu.memory_space<vmem>>, %arg6: memref<2x32xf32, #tpu.memory_space<vmem>>, %arg7: memref<1x8x8x32xbf16, #tpu.memory_space<vmem>>, %arg8: memref<10x10x32xbf16, #tpu.memory_space<vmem>>) attributes {dimension_semantics = [#tpu.dimension_semantics<parallel>], iteration_bounds = array<i64: 2>, scalar_prefetch = 0 : i64, scratch_operands = 1 : i64, tpu.core_type = #tpu.core_type<tc>, window_params = [{transform_indices = @transform_0, window_bounds = array<i64: 1, 8, 8, 32>}, {pipeline_mode = #tpu.pipeline_mode<synchronous>, transform_indices = @transform_1, window_bounds = array<i64: 1, 32>}, {pipeline_mode = #tpu.pipeline_mode<synchronous>, transform_indices = @transform_2, window_bounds = array<i64: 1, 32>}, {pipeline_mode = #tpu.pipeline_mode<synchronous>, transform_indices = @transform_3, window_bounds = array<i64: 32, 32>}, {pipeline_mode = #tpu.pipeline_mode<synchronous>, transform_indices = @transform_4, window_bounds = array<i64: 9, 32, 32>}, {pipeline_mode = #tpu.pipeline_mode<synchronous>, transform_indices = @transform_5, window_bounds = array<i64: 2, 32>}, {transform_indices = @transform_6, window_bounds = array<i64: 1, 8, 8, 32>}]} {
    %c0 = arith.constant 0 : index
    %c0_0 = arith.constant 0 : index
    %c0_1 = arith.constant 0 : index
    %c0_2 = arith.constant 0 : index
    %0 = vector.load %arg1[%c0, %c0_0, %c0_1, %c0_2] : memref<1x8x8x32xbf16, #tpu.memory_space<vmem>>, vector<1x8x8x32xbf16>
    %1 = vector.shape_cast %0 : vector<1x8x8x32xbf16> to vector<8x8x32xbf16>
    %2 = arith.extf %1 : vector<8x8x32xbf16> to vector<8x8x32xf32>
    %cst = arith.constant dense<0.000000e+00> : vector<8x32xf32>
    %3 = vector.multi_reduction <add>, %2, %cst [0] : vector<8x8x32xf32> to vector<8x32xf32>
    %cst_3 = arith.constant dense<0.000000e+00> : vector<32xf32>
    %4 = vector.multi_reduction <add>, %3, %cst_3 [0] : vector<8x32xf32> to vector<32xf32>
    %5 = vector.shape_cast %4 : vector<32xf32> to vector<1x32xf32>
    %6 = arith.mulf %2, %2 : vector<8x8x32xf32>
    %cst_4 = arith.constant dense<0.000000e+00> : vector<8x32xf32>
    %7 = vector.multi_reduction <add>, %6, %cst_4 [0] : vector<8x8x32xf32> to vector<8x32xf32>
    %cst_5 = arith.constant dense<0.000000e+00> : vector<32xf32>
    %8 = vector.multi_reduction <add>, %7, %cst_5 [0] : vector<8x32xf32> to vector<32xf32>
    %9 = vector.shape_cast %8 : vector<32xf32> to vector<1x32xf32>
    %c0_6 = arith.constant 0 : index
    %c0_7 = arith.constant 0 : index
    %10 = vector.load %arg4[%c0_6, %c0_7] : memref<32x32xf32, #tpu.memory_space<vmem>>, vector<32x32xf32>
    %cst_8 = arith.constant dense<0.000000e+00> : vector<1x32xf32>
    %11 = tpu.matmul %5, %10, %cst_8 {dimension_numbers = #tpu.dot_dimension_numbers<[1], [0], [0], [1], [0, 0, 1, 1], [], []>} : vector<1x32xf32>, vector<32x32xf32>, vector<1x32xf32> -> vector<1x32xf32>
    %c0_9 = arith.constant 0 : index
    %c0_10 = arith.constant 0 : index
    %12 = vector.load %arg4[%c0_9, %c0_10] : memref<32x32xf32, #tpu.memory_space<vmem>>, vector<32x32xf32>
    %cst_11 = arith.constant dense<0.000000e+00> : vector<1x32xf32>
    %13 = tpu.matmul %9, %12, %cst_11 {dimension_numbers = #tpu.dot_dimension_numbers<[1], [0], [0], [1], [0, 0, 1, 1], [], []>} : vector<1x32xf32>, vector<32x32xf32>, vector<1x32xf32> -> vector<1x32xf32>
    %14 = arith.mulf %11, %11 : vector<1x32xf32>
    %15 = arith.subf %13, %14 : vector<1x32xf32>
    %c0_12 = arith.constant 0 : index
    %c0_13 = arith.constant 0 : index
    %16 = vector.load %arg2[%c0_12, %c0_13] : memref<1x32xf32, #tpu.memory_space<vmem>>, vector<1x32xf32>
    %cst_14 = arith.constant 9.99999974E-6 : f32
    %17 = vector.broadcast %cst_14 : f32 to vector<1x32xf32>
    %18 = arith.addf %15, %17 : vector<1x32xf32>
    %19 = math.rsqrt %18 : vector<1x32xf32>
    %20 = arith.mulf %16, %19 : vector<1x32xf32>
    %c0_15 = arith.constant 0 : index
    %c0_16 = arith.constant 0 : index
    %21 = vector.load %arg3[%c0_15, %c0_16] : memref<1x32xf32, #tpu.memory_space<vmem>>, vector<1x32xf32>
    %22 = arith.mulf %11, %20 : vector<1x32xf32>
    %23 = arith.subf %21, %22 : vector<1x32xf32>
    %24 = vector.shape_cast %20 : vector<1x32xf32> to vector<1x1x32xf32>
    %25 = vector.broadcast %24 : vector<1x1x32xf32> to vector<8x8x32xf32>
    %26 = arith.mulf %2, %25 : vector<8x8x32xf32>
    %27 = vector.shape_cast %23 : vector<1x32xf32> to vector<1x1x32xf32>
    %28 = vector.broadcast %27 : vector<1x1x32xf32> to vector<8x8x32xf32>
    %29 = arith.addf %26, %28 : vector<8x8x32xf32>
    %30 = arith.negf %29 : vector<8x8x32xf32>
    %31 = math.exp %30 : vector<8x8x32xf32>
    %cst_17 = arith.constant 1.000000e+00 : f32
    %32 = vector.broadcast %cst_17 : f32 to vector<8x8x32xf32>
    %33 = arith.addf %32, %31 : vector<8x8x32xf32>
    %34 = arith.divf %32, %33 : vector<8x8x32xf32>
    %35 = arith.mulf %29, %34 : vector<8x8x32xf32>
    %cst_18 = arith.constant 0.000000e+00 : bf16
    %36 = vector.broadcast %cst_18 : bf16 to vector<10x10x32xbf16>
    %c0_19 = arith.constant 0 : index
    %c0_20 = arith.constant 0 : index
    %c0_21 = arith.constant 0 : index
    %37 = vector.load %arg8[%c0_19, %c0_20, %c0_21] : memref<10x10x32xbf16, #tpu.memory_space<vmem>>, vector<10x10x32xbf16>
    tpu.vector_store %arg8[%c0_19, %c0_20, %c0_21], %36 {strides = array<i32>} : memref<10x10x32xbf16, #tpu.memory_space<vmem>>, vector<10x10x32xbf16>,
    %38 = arith.truncf %35 : vector<8x8x32xf32> to vector<8x8x32xbf16>
    %c1 = arith.constant 1 : index
    %c1_22 = arith.constant 1 : index
    %c0_23 = arith.constant 0 : index
    %39 = vector.load %arg8[%c1, %c1_22, %c0_23] : memref<10x10x32xbf16, #tpu.memory_space<vmem>>, vector<8x8x32xbf16>
    tpu.vector_store %arg8[%c1, %c1_22, %c0_23], %38 {strides = array<i32>} : memref<10x10x32xbf16, #tpu.memory_space<vmem>>, vector<8x8x32xbf16>,
    %40 = arith.index_cast %arg0 : i32 to index
    %c0_24 = arith.constant 0 : index
    %41 = vector.load %arg6[%40, %c0_24] : memref<2x32xf32, #tpu.memory_space<vmem>>, vector<1x32xf32>
    %c0_i32 = arith.constant 0 : i32
    %c8_i32 = arith.constant 8 : i32
    %42 = arith.addi %c0_i32, %c8_i32 : i32
    %c1_i32 = arith.constant 1 : i32
    scf.for %arg9 = %c0_i32 to %42 step %c1_i32  : i32 {
      %cst_26 = arith.constant 0.000000e+00 : f32
      %43 = vector.broadcast %cst_26 : f32 to vector<8x32xf32>
      %c0_i32_27 = arith.constant 0 : i32
      %44 = arith.addi %arg9, %c0_i32_27 : i32
      %45 = arith.index_cast %44 : i32 to index
      %c0_28 = arith.constant 0 : index
      %c0_29 = arith.constant 0 : index
      %46 = vector.load %arg8[%45, %c0_28, %c0_29] : memref<10x10x32xbf16, #tpu.memory_space<vmem>>, vector<1x8x32xbf16>
      %47 = vector.shape_cast %46 : vector<1x8x32xbf16> to vector<8x32xbf16>
      %c0_30 = arith.constant 0 : index
      %c0_31 = arith.constant 0 : index
      %c0_32 = arith.constant 0 : index
      %48 = vector.load %arg5[%c0_30, %c0_31, %c0_32] : memref<9x32x32xbf16, #tpu.memory_space<vmem>>, vector<1x32x32xbf16>
      %49 = vector.shape_cast %48 : vector<1x32x32xbf16> to vector<32x32xbf16>
      %cst_33 = arith.constant dense<0.000000e+00> : vector<8x32xf32>
      %50 = tpu.matmul %47, %49, %cst_33 {dimension_numbers = #tpu.dot_dimension_numbers<[1], [0], [0], [1], [0, 0, 1, 1], [], []>} : vector<8x32xbf16>, vector<32x32xbf16>, vector<8x32xf32> -> vector<8x32xf32>
      %51 = arith.addf %43, %50 : vector<8x32xf32>
      %c0_i32_34 = arith.constant 0 : i32
      %52 = arith.addi %arg9, %c0_i32_34 : i32
      %53 = arith.index_cast %52 : i32 to index
      %c1_35 = arith.constant 1 : index
      %c0_36 = arith.constant 0 : index
      %54 = vector.load %arg8[%53, %c1_35, %c0_36] : memref<10x10x32xbf16, #tpu.memory_space<vmem>>, vector<1x8x32xbf16>
      %55 = vector.shape_cast %54 : vector<1x8x32xbf16> to vector<8x32xbf16>
      %c1_37 = arith.constant 1 : index
      %c0_38 = arith.constant 0 : index
      %c0_39 = arith.constant 0 : index
      %56 = vector.load %arg5[%c1_37, %c0_38, %c0_39] : memref<9x32x32xbf16, #tpu.memory_space<vmem>>, vector<1x32x32xbf16>
      %57 = vector.shape_cast %56 : vector<1x32x32xbf16> to vector<32x32xbf16>
      %cst_40 = arith.constant dense<0.000000e+00> : vector<8x32xf32>
      %58 = tpu.matmul %55, %57, %cst_40 {dimension_numbers = #tpu.dot_dimension_numbers<[1], [0], [0], [1], [0, 0, 1, 1], [], []>} : vector<8x32xbf16>, vector<32x32xbf16>, vector<8x32xf32> -> vector<8x32xf32>
      %59 = arith.addf %51, %58 : vector<8x32xf32>
      %c0_i32_41 = arith.constant 0 : i32
      %60 = arith.addi %arg9, %c0_i32_41 : i32
      %61 = arith.index_cast %60 : i32 to index
      %c2 = arith.constant 2 : index
      %c0_42 = arith.constant 0 : index
      %62 = vector.load %arg8[%61, %c2, %c0_42] : memref<10x10x32xbf16, #tpu.memory_space<vmem>>, vector<1x8x32xbf16>
      %63 = vector.shape_cast %62 : vector<1x8x32xbf16> to vector<8x32xbf16>
      %c2_43 = arith.constant 2 : index
      %c0_44 = arith.constant 0 : index
      %c0_45 = arith.constant 0 : index
      %64 = vector.load %arg5[%c2_43, %c0_44, %c0_45] : memref<9x32x32xbf16, #tpu.memory_space<vmem>>, vector<1x32x32xbf16>
      %65 = vector.shape_cast %64 : vector<1x32x32xbf16> to vector<32x32xbf16>
      %cst_46 = arith.constant dense<0.000000e+00> : vector<8x32xf32>
      %66 = tpu.matmul %63, %65, %cst_46 {dimension_numbers = #tpu.dot_dimension_numbers<[1], [0], [0], [1], [0, 0, 1, 1], [], []>} : vector<8x32xbf16>, vector<32x32xbf16>, vector<8x32xf32> -> vector<8x32xf32>
      %67 = arith.addf %59, %66 : vector<8x32xf32>
      %c1_i32_47 = arith.constant 1 : i32
      %68 = arith.addi %arg9, %c1_i32_47 : i32
      %69 = arith.index_cast %68 : i32 to index
      %c0_48 = arith.constant 0 : index
      %c0_49 = arith.constant 0 : index
      %70 = vector.load %arg8[%69, %c0_48, %c0_49] : memref<10x10x32xbf16, #tpu.memory_space<vmem>>, vector<1x8x32xbf16>
      %71 = vector.shape_cast %70 : vector<1x8x32xbf16> to vector<8x32xbf16>
      %c3 = arith.constant 3 : index
      %c0_50 = arith.constant 0 : index
      %c0_51 = arith.constant 0 : index
      %72 = vector.load %arg5[%c3, %c0_50, %c0_51] : memref<9x32x32xbf16, #tpu.memory_space<vmem>>, vector<1x32x32xbf16>
      %73 = vector.shape_cast %72 : vector<1x32x32xbf16> to vector<32x32xbf16>
      %cst_52 = arith.constant dense<0.000000e+00> : vector<8x32xf32>
      %74 = tpu.matmul %71, %73, %cst_52 {dimension_numbers = #tpu.dot_dimension_numbers<[1], [0], [0], [1], [0, 0, 1, 1], [], []>} : vector<8x32xbf16>, vector<32x32xbf16>, vector<8x32xf32> -> vector<8x32xf32>
      %75 = arith.addf %67, %74 : vector<8x32xf32>
      %c1_i32_53 = arith.constant 1 : i32
      %76 = arith.addi %arg9, %c1_i32_53 : i32
      %77 = arith.index_cast %76 : i32 to index
      %c1_54 = arith.constant 1 : index
      %c0_55 = arith.constant 0 : index
      %78 = vector.load %arg8[%77, %c1_54, %c0_55] : memref<10x10x32xbf16, #tpu.memory_space<vmem>>, vector<1x8x32xbf16>
      %79 = vector.shape_cast %78 : vector<1x8x32xbf16> to vector<8x32xbf16>
      %c4 = arith.constant 4 : index
      %c0_56 = arith.constant 0 : index
      %c0_57 = arith.constant 0 : index
      %80 = vector.load %arg5[%c4, %c0_56, %c0_57] : memref<9x32x32xbf16, #tpu.memory_space<vmem>>, vector<1x32x32xbf16>
      %81 = vector.shape_cast %80 : vector<1x32x32xbf16> to vector<32x32xbf16>
      %cst_58 = arith.constant dense<0.000000e+00> : vector<8x32xf32>
      %82 = tpu.matmul %79, %81, %cst_58 {dimension_numbers = #tpu.dot_dimension_numbers<[1], [0], [0], [1], [0, 0, 1, 1], [], []>} : vector<8x32xbf16>, vector<32x32xbf16>, vector<8x32xf32> -> vector<8x32xf32>
      %83 = arith.addf %75, %82 : vector<8x32xf32>
      %c1_i32_59 = arith.constant 1 : i32
      %84 = arith.addi %arg9, %c1_i32_59 : i32
      %85 = arith.index_cast %84 : i32 to index
      %c2_60 = arith.constant 2 : index
      %c0_61 = arith.constant 0 : index
      %86 = vector.load %arg8[%85, %c2_60, %c0_61] : memref<10x10x32xbf16, #tpu.memory_space<vmem>>, vector<1x8x32xbf16>
      %87 = vector.shape_cast %86 : vector<1x8x32xbf16> to vector<8x32xbf16>
      %c5 = arith.constant 5 : index
      %c0_62 = arith.constant 0 : index
      %c0_63 = arith.constant 0 : index
      %88 = vector.load %arg5[%c5, %c0_62, %c0_63] : memref<9x32x32xbf16, #tpu.memory_space<vmem>>, vector<1x32x32xbf16>
      %89 = vector.shape_cast %88 : vector<1x32x32xbf16> to vector<32x32xbf16>
      %cst_64 = arith.constant dense<0.000000e+00> : vector<8x32xf32>
      %90 = tpu.matmul %87, %89, %cst_64 {dimension_numbers = #tpu.dot_dimension_numbers<[1], [0], [0], [1], [0, 0, 1, 1], [], []>} : vector<8x32xbf16>, vector<32x32xbf16>, vector<8x32xf32> -> vector<8x32xf32>
      %91 = arith.addf %83, %90 : vector<8x32xf32>
      %c2_i32 = arith.constant 2 : i32
      %92 = arith.addi %arg9, %c2_i32 : i32
      %93 = arith.index_cast %92 : i32 to index
      %c0_65 = arith.constant 0 : index
      %c0_66 = arith.constant 0 : index
      %94 = vector.load %arg8[%93, %c0_65, %c0_66] : memref<10x10x32xbf16, #tpu.memory_space<vmem>>, vector<1x8x32xbf16>
      %95 = vector.shape_cast %94 : vector<1x8x32xbf16> to vector<8x32xbf16>
      %c6 = arith.constant 6 : index
      %c0_67 = arith.constant 0 : index
      %c0_68 = arith.constant 0 : index
      %96 = vector.load %arg5[%c6, %c0_67, %c0_68] : memref<9x32x32xbf16, #tpu.memory_space<vmem>>, vector<1x32x32xbf16>
      %97 = vector.shape_cast %96 : vector<1x32x32xbf16> to vector<32x32xbf16>
      %cst_69 = arith.constant dense<0.000000e+00> : vector<8x32xf32>
      %98 = tpu.matmul %95, %97, %cst_69 {dimension_numbers = #tpu.dot_dimension_numbers<[1], [0], [0], [1], [0, 0, 1, 1], [], []>} : vector<8x32xbf16>, vector<32x32xbf16>, vector<8x32xf32> -> vector<8x32xf32>
      %99 = arith.addf %91, %98 : vector<8x32xf32>
      %c2_i32_70 = arith.constant 2 : i32
      %100 = arith.addi %arg9, %c2_i32_70 : i32
      %101 = arith.index_cast %100 : i32 to index
      %c1_71 = arith.constant 1 : index
      %c0_72 = arith.constant 0 : index
      %102 = vector.load %arg8[%101, %c1_71, %c0_72] : memref<10x10x32xbf16, #tpu.memory_space<vmem>>, vector<1x8x32xbf16>
      %103 = vector.shape_cast %102 : vector<1x8x32xbf16> to vector<8x32xbf16>
      %c7 = arith.constant 7 : index
      %c0_73 = arith.constant 0 : index
      %c0_74 = arith.constant 0 : index
      %104 = vector.load %arg5[%c7, %c0_73, %c0_74] : memref<9x32x32xbf16, #tpu.memory_space<vmem>>, vector<1x32x32xbf16>
      %105 = vector.shape_cast %104 : vector<1x32x32xbf16> to vector<32x32xbf16>
      %cst_75 = arith.constant dense<0.000000e+00> : vector<8x32xf32>
      %106 = tpu.matmul %103, %105, %cst_75 {dimension_numbers = #tpu.dot_dimension_numbers<[1], [0], [0], [1], [0, 0, 1, 1], [], []>} : vector<8x32xbf16>, vector<32x32xbf16>, vector<8x32xf32> -> vector<8x32xf32>
      %107 = arith.addf %99, %106 : vector<8x32xf32>
      %c2_i32_76 = arith.constant 2 : i32
      %108 = arith.addi %arg9, %c2_i32_76 : i32
      %109 = arith.index_cast %108 : i32 to index
      %c2_77 = arith.constant 2 : index
      %c0_78 = arith.constant 0 : index
      %110 = vector.load %arg8[%109, %c2_77, %c0_78] : memref<10x10x32xbf16, #tpu.memory_space<vmem>>, vector<1x8x32xbf16>
      %111 = vector.shape_cast %110 : vector<1x8x32xbf16> to vector<8x32xbf16>
      %c8 = arith.constant 8 : index
      %c0_79 = arith.constant 0 : index
      %c0_80 = arith.constant 0 : index
      %112 = vector.load %arg5[%c8, %c0_79, %c0_80] : memref<9x32x32xbf16, #tpu.memory_space<vmem>>, vector<1x32x32xbf16>
      %113 = vector.shape_cast %112 : vector<1x32x32xbf16> to vector<32x32xbf16>
      %cst_81 = arith.constant dense<0.000000e+00> : vector<8x32xf32>
      %114 = tpu.matmul %111, %113, %cst_81 {dimension_numbers = #tpu.dot_dimension_numbers<[1], [0], [0], [1], [0, 0, 1, 1], [], []>} : vector<8x32xbf16>, vector<32x32xbf16>, vector<8x32xf32> -> vector<8x32xf32>
      %115 = arith.addf %107, %114 : vector<8x32xf32>
      %116 = vector.broadcast %41 : vector<1x32xf32> to vector<8x32xf32>
      %117 = arith.addf %115, %116 : vector<8x32xf32>
      %118 = arith.truncf %117 : vector<8x32xf32> to vector<8x32xbf16>
      %c0_82 = arith.constant 0 : index
      %119 = arith.index_cast %arg9 : i32 to index
      %c0_83 = arith.constant 0 : index
      %c0_84 = arith.constant 0 : index
      %120 = vector.load %arg7[%c0_82, %119, %c0_83, %c0_84] : memref<1x8x8x32xbf16, #tpu.memory_space<vmem>>, vector<1x1x8x32xbf16>
      %121 = vector.shape_cast %120 : vector<1x1x8x32xbf16> to vector<8x32xbf16>
      %122 = vector.shape_cast %118 : vector<8x32xbf16> to vector<1x1x8x32xbf16>
      tpu.vector_store %arg7[%c0_82, %119, %c0_83, %c0_84], %122 {strides = array<i32>} : memref<1x8x8x32xbf16, #tpu.memory_space<vmem>>, vector<1x1x8x32xbf16>,
    }
    %c8_i32_25 = arith.constant 8 : i32
    return
  }
  func.func @transform_0(%arg0: i32) -> (i32, i32, i32, i32) {
    %c0_i32 = arith.constant 0 : i32
    %c0_i32_0 = arith.constant 0 : i32
    %c0_i32_1 = arith.constant 0 : i32
    %c0_i32_2 = arith.constant 0 : i32
    return %arg0, %c0_i32, %c0_i32_0, %c0_i32_1 : i32, i32, i32, i32
  }
  func.func @transform_1(%arg0: i32) -> (i32, i32) {
    %c0_i32 = arith.constant 0 : i32
    %c0_i32_0 = arith.constant 0 : i32
    %c0_i32_1 = arith.constant 0 : i32
    return %c0_i32, %c0_i32_0 : i32, i32
  }
  func.func @transform_2(%arg0: i32) -> (i32, i32) {
    %c0_i32 = arith.constant 0 : i32
    %c0_i32_0 = arith.constant 0 : i32
    %c0_i32_1 = arith.constant 0 : i32
    return %c0_i32, %c0_i32_0 : i32, i32
  }
  func.func @transform_3(%arg0: i32) -> (i32, i32) {
    %c0_i32 = arith.constant 0 : i32
    %c0_i32_0 = arith.constant 0 : i32
    %c0_i32_1 = arith.constant 0 : i32
    return %c0_i32, %c0_i32_0 : i32, i32
  }
  func.func @transform_4(%arg0: i32) -> (i32, i32, i32) {
    %c0_i32 = arith.constant 0 : i32
    %c0_i32_0 = arith.constant 0 : i32
    %c0_i32_1 = arith.constant 0 : i32
    %c0_i32_2 = arith.constant 0 : i32
    return %c0_i32, %c0_i32_0, %c0_i32_1 : i32, i32, i32
  }
  func.func @transform_5(%arg0: i32) -> (i32, i32) {
    %c0_i32 = arith.constant 0 : i32
    %c0_i32_0 = arith.constant 0 : i32
    %c0_i32_1 = arith.constant 0 : i32
    return %c0_i32, %c0_i32_0 : i32, i32
  }
  func.func @transform_6(%arg0: i32) -> (i32, i32, i32, i32) {
    %c0_i32 = arith.constant 0 : i32
    %c0_i32_0 = arith.constant 0 : i32
    %c0_i32_1 = arith.constant 0 : i32
    %c0_i32_2 = arith.constant 0 : i32
    return %arg0, %c0_i32, %c0_i32_0, %c0_i32_1 : i32, i32, i32, i32
  }
}

module attributes {stable_mosaic.version = 11 : i64} {
  func.func @_fused_gn_silu_conv_kernel(%arg0: i32, %arg1: memref<1x8x8x32xbf16, #tpu.memory_space<vmem>>, %arg2: memref<1x32xf32, #tpu.memory_space<vmem>>, %arg3: memref<1x32xf32, #tpu.memory_space<vmem>>, %arg4: memref<32x32xf32, #tpu.memory_space<vmem>>, %arg5: memref<9x32x32xbf16, #tpu.memory_space<vmem>>, %arg6: memref<1x32xf32, #tpu.memory_space<vmem>>, %arg7: memref<1x8x8x32xbf16, #tpu.memory_space<vmem>>, %arg8: memref<1x8x8x32xbf16, #tpu.memory_space<vmem>>, %arg9: memref<10x10x32xbf16, #tpu.memory_space<vmem>>) attributes {dimension_semantics = [#tpu.dimension_semantics<parallel>], iteration_bounds = array<i64: 2>, scalar_prefetch = 0 : i64, scratch_operands = 1 : i64, tpu.core_type = #tpu.core_type<tc>, window_params = [{transform_indices = @transform_0, window_bounds = array<i64: 1, 8, 8, 32>}, {pipeline_mode = #tpu.pipeline_mode<synchronous>, transform_indices = @transform_1, window_bounds = array<i64: 1, 32>}, {pipeline_mode = #tpu.pipeline_mode<synchronous>, transform_indices = @transform_2, window_bounds = array<i64: 1, 32>}, {pipeline_mode = #tpu.pipeline_mode<synchronous>, transform_indices = @transform_3, window_bounds = array<i64: 32, 32>}, {pipeline_mode = #tpu.pipeline_mode<synchronous>, transform_indices = @transform_4, window_bounds = array<i64: 9, 32, 32>}, {pipeline_mode = #tpu.pipeline_mode<synchronous>, transform_indices = @transform_5, window_bounds = array<i64: 1, 32>}, {transform_indices = @transform_6, window_bounds = array<i64: 1, 8, 8, 32>}, {transform_indices = @transform_7, window_bounds = array<i64: 1, 8, 8, 32>}]} {
    %c0 = arith.constant 0 : index
    %c0_0 = arith.constant 0 : index
    %c0_1 = arith.constant 0 : index
    %c0_2 = arith.constant 0 : index
    %0 = vector.load %arg1[%c0, %c0_0, %c0_1, %c0_2] : memref<1x8x8x32xbf16, #tpu.memory_space<vmem>>, vector<1x8x8x32xbf16>
    %1 = vector.shape_cast %0 : vector<1x8x8x32xbf16> to vector<8x8x32xbf16>
    %2 = arith.extf %1 : vector<8x8x32xbf16> to vector<8x8x32xf32>
    %cst = arith.constant dense<0.000000e+00> : vector<8x32xf32>
    %3 = vector.multi_reduction <add>, %2, %cst [0] : vector<8x8x32xf32> to vector<8x32xf32>
    %cst_3 = arith.constant dense<0.000000e+00> : vector<32xf32>
    %4 = vector.multi_reduction <add>, %3, %cst_3 [0] : vector<8x32xf32> to vector<32xf32>
    %5 = vector.shape_cast %4 : vector<32xf32> to vector<1x32xf32>
    %6 = arith.mulf %2, %2 : vector<8x8x32xf32>
    %cst_4 = arith.constant dense<0.000000e+00> : vector<8x32xf32>
    %7 = vector.multi_reduction <add>, %6, %cst_4 [0] : vector<8x8x32xf32> to vector<8x32xf32>
    %cst_5 = arith.constant dense<0.000000e+00> : vector<32xf32>
    %8 = vector.multi_reduction <add>, %7, %cst_5 [0] : vector<8x32xf32> to vector<32xf32>
    %9 = vector.shape_cast %8 : vector<32xf32> to vector<1x32xf32>
    %c0_6 = arith.constant 0 : index
    %c0_7 = arith.constant 0 : index
    %10 = vector.load %arg4[%c0_6, %c0_7] : memref<32x32xf32, #tpu.memory_space<vmem>>, vector<32x32xf32>
    %cst_8 = arith.constant dense<0.000000e+00> : vector<1x32xf32>
    %11 = tpu.matmul %5, %10, %cst_8 {dimension_numbers = #tpu.dot_dimension_numbers<[1], [0], [0], [1], [0, 0, 1, 1], [], []>} : vector<1x32xf32>, vector<32x32xf32>, vector<1x32xf32> -> vector<1x32xf32>
    %c0_9 = arith.constant 0 : index
    %c0_10 = arith.constant 0 : index
    %12 = vector.load %arg4[%c0_9, %c0_10] : memref<32x32xf32, #tpu.memory_space<vmem>>, vector<32x32xf32>
    %cst_11 = arith.constant dense<0.000000e+00> : vector<1x32xf32>
    %13 = tpu.matmul %9, %12, %cst_11 {dimension_numbers = #tpu.dot_dimension_numbers<[1], [0], [0], [1], [0, 0, 1, 1], [], []>} : vector<1x32xf32>, vector<32x32xf32>, vector<1x32xf32> -> vector<1x32xf32>
    %14 = arith.mulf %11, %11 : vector<1x32xf32>
    %15 = arith.subf %13, %14 : vector<1x32xf32>
    %c0_12 = arith.constant 0 : index
    %c0_13 = arith.constant 0 : index
    %16 = vector.load %arg2[%c0_12, %c0_13] : memref<1x32xf32, #tpu.memory_space<vmem>>, vector<1x32xf32>
    %cst_14 = arith.constant 9.99999974E-6 : f32
    %17 = vector.broadcast %cst_14 : f32 to vector<1x32xf32>
    %18 = arith.addf %15, %17 : vector<1x32xf32>
    %19 = math.rsqrt %18 : vector<1x32xf32>
    %20 = arith.mulf %16, %19 : vector<1x32xf32>
    %c0_15 = arith.constant 0 : index
    %c0_16 = arith.constant 0 : index
    %21 = vector.load %arg3[%c0_15, %c0_16] : memref<1x32xf32, #tpu.memory_space<vmem>>, vector<1x32xf32>
    %22 = arith.mulf %11, %20 : vector<1x32xf32>
    %23 = arith.subf %21, %22 : vector<1x32xf32>
    %24 = vector.shape_cast %20 : vector<1x32xf32> to vector<1x1x32xf32>
    %25 = vector.broadcast %24 : vector<1x1x32xf32> to vector<8x8x32xf32>
    %26 = arith.mulf %2, %25 : vector<8x8x32xf32>
    %27 = vector.shape_cast %23 : vector<1x32xf32> to vector<1x1x32xf32>
    %28 = vector.broadcast %27 : vector<1x1x32xf32> to vector<8x8x32xf32>
    %29 = arith.addf %26, %28 : vector<8x8x32xf32>
    %30 = arith.negf %29 : vector<8x8x32xf32>
    %31 = math.exp %30 : vector<8x8x32xf32>
    %cst_17 = arith.constant 1.000000e+00 : f32
    %32 = vector.broadcast %cst_17 : f32 to vector<8x8x32xf32>
    %33 = arith.addf %32, %31 : vector<8x8x32xf32>
    %34 = arith.divf %32, %33 : vector<8x8x32xf32>
    %35 = arith.mulf %29, %34 : vector<8x8x32xf32>
    %cst_18 = arith.constant 0.000000e+00 : bf16
    %36 = vector.broadcast %cst_18 : bf16 to vector<10x10x32xbf16>
    %c0_19 = arith.constant 0 : index
    %c0_20 = arith.constant 0 : index
    %c0_21 = arith.constant 0 : index
    %37 = vector.load %arg9[%c0_19, %c0_20, %c0_21] : memref<10x10x32xbf16, #tpu.memory_space<vmem>>, vector<10x10x32xbf16>
    tpu.vector_store %arg9[%c0_19, %c0_20, %c0_21], %36 {strides = array<i32>} : memref<10x10x32xbf16, #tpu.memory_space<vmem>>, vector<10x10x32xbf16>,
    %38 = arith.truncf %35 : vector<8x8x32xf32> to vector<8x8x32xbf16>
    %c1 = arith.constant 1 : index
    %c1_22 = arith.constant 1 : index
    %c0_23 = arith.constant 0 : index
    %39 = vector.load %arg9[%c1, %c1_22, %c0_23] : memref<10x10x32xbf16, #tpu.memory_space<vmem>>, vector<8x8x32xbf16>
    tpu.vector_store %arg9[%c1, %c1_22, %c0_23], %38 {strides = array<i32>} : memref<10x10x32xbf16, #tpu.memory_space<vmem>>, vector<8x8x32xbf16>,
    %c0_24 = arith.constant 0 : index
    %c0_25 = arith.constant 0 : index
    %40 = vector.load %arg6[%c0_24, %c0_25] : memref<1x32xf32, #tpu.memory_space<vmem>>, vector<1x32xf32>
    %c0_i32 = arith.constant 0 : i32
    %c8_i32 = arith.constant 8 : i32
    %41 = arith.addi %c0_i32, %c8_i32 : i32
    %c1_i32 = arith.constant 1 : i32
    scf.for %arg10 = %c0_i32 to %41 step %c1_i32  : i32 {
      %cst_27 = arith.constant 0.000000e+00 : f32
      %42 = vector.broadcast %cst_27 : f32 to vector<8x32xf32>
      %c0_i32_28 = arith.constant 0 : i32
      %43 = arith.addi %arg10, %c0_i32_28 : i32
      %44 = arith.index_cast %43 : i32 to index
      %c0_29 = arith.constant 0 : index
      %c0_30 = arith.constant 0 : index
      %45 = vector.load %arg9[%44, %c0_29, %c0_30] : memref<10x10x32xbf16, #tpu.memory_space<vmem>>, vector<1x8x32xbf16>
      %46 = vector.shape_cast %45 : vector<1x8x32xbf16> to vector<8x32xbf16>
      %c0_31 = arith.constant 0 : index
      %c0_32 = arith.constant 0 : index
      %c0_33 = arith.constant 0 : index
      %47 = vector.load %arg5[%c0_31, %c0_32, %c0_33] : memref<9x32x32xbf16, #tpu.memory_space<vmem>>, vector<1x32x32xbf16>
      %48 = vector.shape_cast %47 : vector<1x32x32xbf16> to vector<32x32xbf16>
      %cst_34 = arith.constant dense<0.000000e+00> : vector<8x32xf32>
      %49 = tpu.matmul %46, %48, %cst_34 {dimension_numbers = #tpu.dot_dimension_numbers<[1], [0], [0], [1], [0, 0, 1, 1], [], []>} : vector<8x32xbf16>, vector<32x32xbf16>, vector<8x32xf32> -> vector<8x32xf32>
      %50 = arith.addf %42, %49 : vector<8x32xf32>
      %c0_i32_35 = arith.constant 0 : i32
      %51 = arith.addi %arg10, %c0_i32_35 : i32
      %52 = arith.index_cast %51 : i32 to index
      %c1_36 = arith.constant 1 : index
      %c0_37 = arith.constant 0 : index
      %53 = vector.load %arg9[%52, %c1_36, %c0_37] : memref<10x10x32xbf16, #tpu.memory_space<vmem>>, vector<1x8x32xbf16>
      %54 = vector.shape_cast %53 : vector<1x8x32xbf16> to vector<8x32xbf16>
      %c1_38 = arith.constant 1 : index
      %c0_39 = arith.constant 0 : index
      %c0_40 = arith.constant 0 : index
      %55 = vector.load %arg5[%c1_38, %c0_39, %c0_40] : memref<9x32x32xbf16, #tpu.memory_space<vmem>>, vector<1x32x32xbf16>
      %56 = vector.shape_cast %55 : vector<1x32x32xbf16> to vector<32x32xbf16>
      %cst_41 = arith.constant dense<0.000000e+00> : vector<8x32xf32>
      %57 = tpu.matmul %54, %56, %cst_41 {dimension_numbers = #tpu.dot_dimension_numbers<[1], [0], [0], [1], [0, 0, 1, 1], [], []>} : vector<8x32xbf16>, vector<32x32xbf16>, vector<8x32xf32> -> vector<8x32xf32>
      %58 = arith.addf %50, %57 : vector<8x32xf32>
      %c0_i32_42 = arith.constant 0 : i32
      %59 = arith.addi %arg10, %c0_i32_42 : i32
      %60 = arith.index_cast %59 : i32 to index
      %c2 = arith.constant 2 : index
      %c0_43 = arith.constant 0 : index
      %61 = vector.load %arg9[%60, %c2, %c0_43] : memref<10x10x32xbf16, #tpu.memory_space<vmem>>, vector<1x8x32xbf16>
      %62 = vector.shape_cast %61 : vector<1x8x32xbf16> to vector<8x32xbf16>
      %c2_44 = arith.constant 2 : index
      %c0_45 = arith.constant 0 : index
      %c0_46 = arith.constant 0 : index
      %63 = vector.load %arg5[%c2_44, %c0_45, %c0_46] : memref<9x32x32xbf16, #tpu.memory_space<vmem>>, vector<1x32x32xbf16>
      %64 = vector.shape_cast %63 : vector<1x32x32xbf16> to vector<32x32xbf16>
      %cst_47 = arith.constant dense<0.000000e+00> : vector<8x32xf32>
      %65 = tpu.matmul %62, %64, %cst_47 {dimension_numbers = #tpu.dot_dimension_numbers<[1], [0], [0], [1], [0, 0, 1, 1], [], []>} : vector<8x32xbf16>, vector<32x32xbf16>, vector<8x32xf32> -> vector<8x32xf32>
      %66 = arith.addf %58, %65 : vector<8x32xf32>
      %c1_i32_48 = arith.constant 1 : i32
      %67 = arith.addi %arg10, %c1_i32_48 : i32
      %68 = arith.index_cast %67 : i32 to index
      %c0_49 = arith.constant 0 : index
      %c0_50 = arith.constant 0 : index
      %69 = vector.load %arg9[%68, %c0_49, %c0_50] : memref<10x10x32xbf16, #tpu.memory_space<vmem>>, vector<1x8x32xbf16>
      %70 = vector.shape_cast %69 : vector<1x8x32xbf16> to vector<8x32xbf16>
      %c3 = arith.constant 3 : index
      %c0_51 = arith.constant 0 : index
      %c0_52 = arith.constant 0 : index
      %71 = vector.load %arg5[%c3, %c0_51, %c0_52] : memref<9x32x32xbf16, #tpu.memory_space<vmem>>, vector<1x32x32xbf16>
      %72 = vector.shape_cast %71 : vector<1x32x32xbf16> to vector<32x32xbf16>
      %cst_53 = arith.constant dense<0.000000e+00> : vector<8x32xf32>
      %73 = tpu.matmul %70, %72, %cst_53 {dimension_numbers = #tpu.dot_dimension_numbers<[1], [0], [0], [1], [0, 0, 1, 1], [], []>} : vector<8x32xbf16>, vector<32x32xbf16>, vector<8x32xf32> -> vector<8x32xf32>
      %74 = arith.addf %66, %73 : vector<8x32xf32>
      %c1_i32_54 = arith.constant 1 : i32
      %75 = arith.addi %arg10, %c1_i32_54 : i32
      %76 = arith.index_cast %75 : i32 to index
      %c1_55 = arith.constant 1 : index
      %c0_56 = arith.constant 0 : index
      %77 = vector.load %arg9[%76, %c1_55, %c0_56] : memref<10x10x32xbf16, #tpu.memory_space<vmem>>, vector<1x8x32xbf16>
      %78 = vector.shape_cast %77 : vector<1x8x32xbf16> to vector<8x32xbf16>
      %c4 = arith.constant 4 : index
      %c0_57 = arith.constant 0 : index
      %c0_58 = arith.constant 0 : index
      %79 = vector.load %arg5[%c4, %c0_57, %c0_58] : memref<9x32x32xbf16, #tpu.memory_space<vmem>>, vector<1x32x32xbf16>
      %80 = vector.shape_cast %79 : vector<1x32x32xbf16> to vector<32x32xbf16>
      %cst_59 = arith.constant dense<0.000000e+00> : vector<8x32xf32>
      %81 = tpu.matmul %78, %80, %cst_59 {dimension_numbers = #tpu.dot_dimension_numbers<[1], [0], [0], [1], [0, 0, 1, 1], [], []>} : vector<8x32xbf16>, vector<32x32xbf16>, vector<8x32xf32> -> vector<8x32xf32>
      %82 = arith.addf %74, %81 : vector<8x32xf32>
      %c1_i32_60 = arith.constant 1 : i32
      %83 = arith.addi %arg10, %c1_i32_60 : i32
      %84 = arith.index_cast %83 : i32 to index
      %c2_61 = arith.constant 2 : index
      %c0_62 = arith.constant 0 : index
      %85 = vector.load %arg9[%84, %c2_61, %c0_62] : memref<10x10x32xbf16, #tpu.memory_space<vmem>>, vector<1x8x32xbf16>
      %86 = vector.shape_cast %85 : vector<1x8x32xbf16> to vector<8x32xbf16>
      %c5 = arith.constant 5 : index
      %c0_63 = arith.constant 0 : index
      %c0_64 = arith.constant 0 : index
      %87 = vector.load %arg5[%c5, %c0_63, %c0_64] : memref<9x32x32xbf16, #tpu.memory_space<vmem>>, vector<1x32x32xbf16>
      %88 = vector.shape_cast %87 : vector<1x32x32xbf16> to vector<32x32xbf16>
      %cst_65 = arith.constant dense<0.000000e+00> : vector<8x32xf32>
      %89 = tpu.matmul %86, %88, %cst_65 {dimension_numbers = #tpu.dot_dimension_numbers<[1], [0], [0], [1], [0, 0, 1, 1], [], []>} : vector<8x32xbf16>, vector<32x32xbf16>, vector<8x32xf32> -> vector<8x32xf32>
      %90 = arith.addf %82, %89 : vector<8x32xf32>
      %c2_i32 = arith.constant 2 : i32
      %91 = arith.addi %arg10, %c2_i32 : i32
      %92 = arith.index_cast %91 : i32 to index
      %c0_66 = arith.constant 0 : index
      %c0_67 = arith.constant 0 : index
      %93 = vector.load %arg9[%92, %c0_66, %c0_67] : memref<10x10x32xbf16, #tpu.memory_space<vmem>>, vector<1x8x32xbf16>
      %94 = vector.shape_cast %93 : vector<1x8x32xbf16> to vector<8x32xbf16>
      %c6 = arith.constant 6 : index
      %c0_68 = arith.constant 0 : index
      %c0_69 = arith.constant 0 : index
      %95 = vector.load %arg5[%c6, %c0_68, %c0_69] : memref<9x32x32xbf16, #tpu.memory_space<vmem>>, vector<1x32x32xbf16>
      %96 = vector.shape_cast %95 : vector<1x32x32xbf16> to vector<32x32xbf16>
      %cst_70 = arith.constant dense<0.000000e+00> : vector<8x32xf32>
      %97 = tpu.matmul %94, %96, %cst_70 {dimension_numbers = #tpu.dot_dimension_numbers<[1], [0], [0], [1], [0, 0, 1, 1], [], []>} : vector<8x32xbf16>, vector<32x32xbf16>, vector<8x32xf32> -> vector<8x32xf32>
      %98 = arith.addf %90, %97 : vector<8x32xf32>
      %c2_i32_71 = arith.constant 2 : i32
      %99 = arith.addi %arg10, %c2_i32_71 : i32
      %100 = arith.index_cast %99 : i32 to index
      %c1_72 = arith.constant 1 : index
      %c0_73 = arith.constant 0 : index
      %101 = vector.load %arg9[%100, %c1_72, %c0_73] : memref<10x10x32xbf16, #tpu.memory_space<vmem>>, vector<1x8x32xbf16>
      %102 = vector.shape_cast %101 : vector<1x8x32xbf16> to vector<8x32xbf16>
      %c7 = arith.constant 7 : index
      %c0_74 = arith.constant 0 : index
      %c0_75 = arith.constant 0 : index
      %103 = vector.load %arg5[%c7, %c0_74, %c0_75] : memref<9x32x32xbf16, #tpu.memory_space<vmem>>, vector<1x32x32xbf16>
      %104 = vector.shape_cast %103 : vector<1x32x32xbf16> to vector<32x32xbf16>
      %cst_76 = arith.constant dense<0.000000e+00> : vector<8x32xf32>
      %105 = tpu.matmul %102, %104, %cst_76 {dimension_numbers = #tpu.dot_dimension_numbers<[1], [0], [0], [1], [0, 0, 1, 1], [], []>} : vector<8x32xbf16>, vector<32x32xbf16>, vector<8x32xf32> -> vector<8x32xf32>
      %106 = arith.addf %98, %105 : vector<8x32xf32>
      %c2_i32_77 = arith.constant 2 : i32
      %107 = arith.addi %arg10, %c2_i32_77 : i32
      %108 = arith.index_cast %107 : i32 to index
      %c2_78 = arith.constant 2 : index
      %c0_79 = arith.constant 0 : index
      %109 = vector.load %arg9[%108, %c2_78, %c0_79] : memref<10x10x32xbf16, #tpu.memory_space<vmem>>, vector<1x8x32xbf16>
      %110 = vector.shape_cast %109 : vector<1x8x32xbf16> to vector<8x32xbf16>
      %c8 = arith.constant 8 : index
      %c0_80 = arith.constant 0 : index
      %c0_81 = arith.constant 0 : index
      %111 = vector.load %arg5[%c8, %c0_80, %c0_81] : memref<9x32x32xbf16, #tpu.memory_space<vmem>>, vector<1x32x32xbf16>
      %112 = vector.shape_cast %111 : vector<1x32x32xbf16> to vector<32x32xbf16>
      %cst_82 = arith.constant dense<0.000000e+00> : vector<8x32xf32>
      %113 = tpu.matmul %110, %112, %cst_82 {dimension_numbers = #tpu.dot_dimension_numbers<[1], [0], [0], [1], [0, 0, 1, 1], [], []>} : vector<8x32xbf16>, vector<32x32xbf16>, vector<8x32xf32> -> vector<8x32xf32>
      %114 = arith.addf %106, %113 : vector<8x32xf32>
      %115 = vector.broadcast %40 : vector<1x32xf32> to vector<8x32xf32>
      %116 = arith.addf %114, %115 : vector<8x32xf32>
      %c0_83 = arith.constant 0 : index
      %117 = arith.index_cast %arg10 : i32 to index
      %c0_84 = arith.constant 0 : index
      %c0_85 = arith.constant 0 : index
      %118 = vector.load %arg7[%c0_83, %117, %c0_84, %c0_85] : memref<1x8x8x32xbf16, #tpu.memory_space<vmem>>, vector<1x1x8x32xbf16>
      %119 = vector.shape_cast %118 : vector<1x1x8x32xbf16> to vector<8x32xbf16>
      %120 = arith.extf %119 : vector<8x32xbf16> to vector<8x32xf32>
      %121 = arith.addf %116, %120 : vector<8x32xf32>
      %122 = arith.truncf %121 : vector<8x32xf32> to vector<8x32xbf16>
      %c0_86 = arith.constant 0 : index
      %123 = arith.index_cast %arg10 : i32 to index
      %c0_87 = arith.constant 0 : index
      %c0_88 = arith.constant 0 : index
      %124 = vector.load %arg8[%c0_86, %123, %c0_87, %c0_88] : memref<1x8x8x32xbf16, #tpu.memory_space<vmem>>, vector<1x1x8x32xbf16>
      %125 = vector.shape_cast %124 : vector<1x1x8x32xbf16> to vector<8x32xbf16>
      %126 = vector.shape_cast %122 : vector<8x32xbf16> to vector<1x1x8x32xbf16>
      tpu.vector_store %arg8[%c0_86, %123, %c0_87, %c0_88], %126 {strides = array<i32>} : memref<1x8x8x32xbf16, #tpu.memory_space<vmem>>, vector<1x1x8x32xbf16>,
    }
    %c8_i32_26 = arith.constant 8 : i32
    return
  }
  func.func @transform_0(%arg0: i32) -> (i32, i32, i32, i32) {
    %c0_i32 = arith.constant 0 : i32
    %c0_i32_0 = arith.constant 0 : i32
    %c0_i32_1 = arith.constant 0 : i32
    %c0_i32_2 = arith.constant 0 : i32
    return %arg0, %c0_i32, %c0_i32_0, %c0_i32_1 : i32, i32, i32, i32
  }
  func.func @transform_1(%arg0: i32) -> (i32, i32) {
    %c0_i32 = arith.constant 0 : i32
    %c0_i32_0 = arith.constant 0 : i32
    %c0_i32_1 = arith.constant 0 : i32
    return %c0_i32, %c0_i32_0 : i32, i32
  }
  func.func @transform_2(%arg0: i32) -> (i32, i32) {
    %c0_i32 = arith.constant 0 : i32
    %c0_i32_0 = arith.constant 0 : i32
    %c0_i32_1 = arith.constant 0 : i32
    return %c0_i32, %c0_i32_0 : i32, i32
  }
  func.func @transform_3(%arg0: i32) -> (i32, i32) {
    %c0_i32 = arith.constant 0 : i32
    %c0_i32_0 = arith.constant 0 : i32
    %c0_i32_1 = arith.constant 0 : i32
    return %c0_i32, %c0_i32_0 : i32, i32
  }
  func.func @transform_4(%arg0: i32) -> (i32, i32, i32) {
    %c0_i32 = arith.constant 0 : i32
    %c0_i32_0 = arith.constant 0 : i32
    %c0_i32_1 = arith.constant 0 : i32
    %c0_i32_2 = arith.constant 0 : i32
    return %c0_i32, %c0_i32_0, %c0_i32_1 : i32, i32, i32
  }
  func.func @transform_5(%arg0: i32) -> (i32, i32) {
    %c0_i32 = arith.constant 0 : i32
    %c0_i32_0 = arith.constant 0 : i32
    %c0_i32_1 = arith.constant 0 : i32
    return %c0_i32, %c0_i32_0 : i32, i32
  }
  func.func @transform_6(%arg0: i32) -> (i32, i32, i32, i32) {
    %c0_i32 = arith.constant 0 : i32
    %c0_i32_0 = arith.constant 0 : i32
    %c0_i32_1 = arith.constant 0 : i32
    %c0_i32_2 = arith.constant 0 : i32
    return %arg0, %c0_i32, %c0_i32_0, %c0_i32_1 : i32, i32, i32, i32
  }
  func.func @transform_7(%arg0: i32) -> (i32, i32, i32, i32) {
    %c0_i32 = arith.constant 0 : i32
    %c0_i32_0 = arith.constant 0 : i32
    %c0_i32_1 = arith.constant 0 : i32
    %c0_i32_2 = arith.constant 0 : i32
    return %arg0, %c0_i32, %c0_i32_0, %c0_i32_1 : i32, i32, i32, i32
  }
}

module attributes {stable_mosaic.version = 11 : i64} {
  func.func @_attn_block_kernel(%arg0: i32, %arg1: memref<1x64x32xbf16, #tpu.memory_space<vmem>>, %arg2: memref<1x32xf32, #tpu.memory_space<vmem>>, %arg3: memref<1x32xf32, #tpu.memory_space<vmem>>, %arg4: memref<32x32xf32, #tpu.memory_space<vmem>>, %arg5: memref<4x32x8xbf16, #tpu.memory_space<vmem>>, %arg6: memref<4x32x8xbf16, #tpu.memory_space<vmem>>, %arg7: memref<4x32x8xbf16, #tpu.memory_space<vmem>>, %arg8: memref<4x1x8xf32, #tpu.memory_space<vmem>>, %arg9: memref<4x1x8xf32, #tpu.memory_space<vmem>>, %arg10: memref<4x1x8xf32, #tpu.memory_space<vmem>>, %arg11: memref<4x8x32xbf16, #tpu.memory_space<vmem>>, %arg12: memref<1x32xf32, #tpu.memory_space<vmem>>, %arg13: memref<1x64x32xbf16, #tpu.memory_space<vmem>>) attributes {dimension_semantics = [#tpu.dimension_semantics<parallel>], iteration_bounds = array<i64: 2>, scalar_prefetch = 0 : i64, scratch_operands = 0 : i64, tpu.core_type = #tpu.core_type<tc>, window_params = [{transform_indices = @transform_0, window_bounds = array<i64: 1, 64, 32>}, {pipeline_mode = #tpu.pipeline_mode<synchronous>, transform_indices = @transform_1, window_bounds = array<i64: 1, 32>}, {pipeline_mode = #tpu.pipeline_mode<synchronous>, transform_indices = @transform_2, window_bounds = array<i64: 1, 32>}, {pipeline_mode = #tpu.pipeline_mode<synchronous>, transform_indices = @transform_3, window_bounds = array<i64: 32, 32>}, {pipeline_mode = #tpu.pipeline_mode<synchronous>, transform_indices = @transform_4, window_bounds = array<i64: 4, 32, 8>}, {pipeline_mode = #tpu.pipeline_mode<synchronous>, transform_indices = @transform_5, window_bounds = array<i64: 4, 32, 8>}, {pipeline_mode = #tpu.pipeline_mode<synchronous>, transform_indices = @transform_6, window_bounds = array<i64: 4, 32, 8>}, {pipeline_mode = #tpu.pipeline_mode<synchronous>, transform_indices = @transform_7, window_bounds = array<i64: 4, 1, 8>}, {pipeline_mode = #tpu.pipeline_mode<synchronous>, transform_indices = @transform_8, window_bounds = array<i64: 4, 1, 8>}, {pipeline_mode = #tpu.pipeline_mode<synchronous>, transform_indices = @transform_9, window_bounds = array<i64: 4, 1, 8>}, {pipeline_mode = #tpu.pipeline_mode<synchronous>, transform_indices = @transform_10, window_bounds = array<i64: 4, 8, 32>}, {pipeline_mode = #tpu.pipeline_mode<synchronous>, transform_indices = @transform_11, window_bounds = array<i64: 1, 32>}, {transform_indices = @transform_12, window_bounds = array<i64: 1, 64, 32>}]} {
    %c0 = arith.constant 0 : index
    %c0_0 = arith.constant 0 : index
    %c0_1 = arith.constant 0 : index
    %0 = vector.load %arg1[%c0, %c0_0, %c0_1] : memref<1x64x32xbf16, #tpu.memory_space<vmem>>, vector<1x64x32xbf16>
    %1 = vector.shape_cast %0 : vector<1x64x32xbf16> to vector<64x32xbf16>
    %2 = arith.extf %1 : vector<64x32xbf16> to vector<64x32xf32>
    %cst = arith.constant dense<0.000000e+00> : vector<32xf32>
    %3 = vector.multi_reduction <add>, %2, %cst [0] : vector<64x32xf32> to vector<32xf32>
    %4 = vector.shape_cast %3 : vector<32xf32> to vector<1x32xf32>
    %5 = arith.mulf %2, %2 : vector<64x32xf32>
    %cst_2 = arith.constant dense<0.000000e+00> : vector<32xf32>
    %6 = vector.multi_reduction <add>, %5, %cst_2 [0] : vector<64x32xf32> to vector<32xf32>
    %7 = vector.shape_cast %6 : vector<32xf32> to vector<1x32xf32>
    %c0_3 = arith.constant 0 : index
    %c0_4 = arith.constant 0 : index
    %8 = vector.load %arg4[%c0_3, %c0_4] : memref<32x32xf32, #tpu.memory_space<vmem>>, vector<32x32xf32>
    %cst_5 = arith.constant dense<0.000000e+00> : vector<1x32xf32>
    %9 = tpu.matmul %4, %8, %cst_5 {dimension_numbers = #tpu.dot_dimension_numbers<[1], [0], [0], [1], [0, 0, 1, 1], [], []>} : vector<1x32xf32>, vector<32x32xf32>, vector<1x32xf32> -> vector<1x32xf32>
    %c0_6 = arith.constant 0 : index
    %c0_7 = arith.constant 0 : index
    %10 = vector.load %arg4[%c0_6, %c0_7] : memref<32x32xf32, #tpu.memory_space<vmem>>, vector<32x32xf32>
    %cst_8 = arith.constant dense<0.000000e+00> : vector<1x32xf32>
    %11 = tpu.matmul %7, %10, %cst_8 {dimension_numbers = #tpu.dot_dimension_numbers<[1], [0], [0], [1], [0, 0, 1, 1], [], []>} : vector<1x32xf32>, vector<32x32xf32>, vector<1x32xf32> -> vector<1x32xf32>
    %12 = arith.mulf %9, %9 : vector<1x32xf32>
    %13 = arith.subf %11, %12 : vector<1x32xf32>
    %c0_9 = arith.constant 0 : index
    %c0_10 = arith.constant 0 : index
    %14 = vector.load %arg2[%c0_9, %c0_10] : memref<1x32xf32, #tpu.memory_space<vmem>>, vector<1x32xf32>
    %cst_11 = arith.constant 9.99999974E-6 : f32
    %15 = vector.broadcast %cst_11 : f32 to vector<1x32xf32>
    %16 = arith.addf %13, %15 : vector<1x32xf32>
    %17 = math.rsqrt %16 : vector<1x32xf32>
    %18 = arith.mulf %14, %17 : vector<1x32xf32>
    %c0_12 = arith.constant 0 : index
    %c0_13 = arith.constant 0 : index
    %19 = vector.load %arg3[%c0_12, %c0_13] : memref<1x32xf32, #tpu.memory_space<vmem>>, vector<1x32xf32>
    %20 = arith.mulf %9, %18 : vector<1x32xf32>
    %21 = arith.subf %19, %20 : vector<1x32xf32>
    %22 = vector.broadcast %18 : vector<1x32xf32> to vector<64x32xf32>
    %23 = arith.mulf %2, %22 : vector<64x32xf32>
    %24 = vector.broadcast %21 : vector<1x32xf32> to vector<64x32xf32>
    %25 = arith.addf %23, %24 : vector<64x32xf32>
    %26 = arith.truncf %25 : vector<64x32xf32> to vector<64x32xbf16>
    %c0_14 = arith.constant 0 : index
    %c0_15 = arith.constant 0 : index
    %27 = vector.load %arg12[%c0_14, %c0_15] : memref<1x32xf32, #tpu.memory_space<vmem>>, vector<1x32xf32>
    %28 = vector.broadcast %27 : vector<1x32xf32> to vector<64x32xf32>
    %29 = arith.addf %2, %28 : vector<64x32xf32>
    %c0_16 = arith.constant 0 : index
    %c0_17 = arith.constant 0 : index
    %c0_18 = arith.constant 0 : index
    %30 = vector.load %arg5[%c0_16, %c0_17, %c0_18] : memref<4x32x8xbf16, #tpu.memory_space<vmem>>, vector<1x32x8xbf16>
    %31 = vector.shape_cast %30 : vector<1x32x8xbf16> to vector<32x8xbf16>
    %cst_19 = arith.constant dense<0.000000e+00> : vector<64x8xf32>
    %32 = tpu.matmul %26, %31, %cst_19 {dimension_numbers = #tpu.dot_dimension_numbers<[1], [0], [0], [1], [0, 0, 1, 1], [], []>} : vector<64x32xbf16>, vector<32x8xbf16>, vector<64x8xf32> -> vector<64x8xf32>
    %c0_20 = arith.constant 0 : index
    %c0_21 = arith.constant 0 : index
    %c0_22 = arith.constant 0 : index
    %33 = vector.load %arg8[%c0_20, %c0_21, %c0_22] : memref<4x1x8xf32, #tpu.memory_space<vmem>>, vector<1x1x8xf32>
    %34 = vector.shape_cast %33 : vector<1x1x8xf32> to vector<1x8xf32>
    %35 = vector.broadcast %34 : vector<1x8xf32> to vector<64x8xf32>
    %36 = arith.addf %32, %35 : vector<64x8xf32>
    %c0_23 = arith.constant 0 : index
    %c0_24 = arith.constant 0 : index
    %c0_25 = arith.constant 0 : index
    %37 = vector.load %arg6[%c0_23, %c0_24, %c0_25] : memref<4x32x8xbf16, #tpu.memory_space<vmem>>, vector<1x32x8xbf16>
    %38 = vector.shape_cast %37 : vector<1x32x8xbf16> to vector<32x8xbf16>
    %cst_26 = arith.constant dense<0.000000e+00> : vector<64x8xf32>
    %39 = tpu.matmul %26, %38, %cst_26 {dimension_numbers = #tpu.dot_dimension_numbers<[1], [0], [0], [1], [0, 0, 1, 1], [], []>} : vector<64x32xbf16>, vector<32x8xbf16>, vector<64x8xf32> -> vector<64x8xf32>
    %c0_27 = arith.constant 0 : index
    %c0_28 = arith.constant 0 : index
    %c0_29 = arith.constant 0 : index
    %40 = vector.load %arg9[%c0_27, %c0_28, %c0_29] : memref<4x1x8xf32, #tpu.memory_space<vmem>>, vector<1x1x8xf32>
    %41 = vector.shape_cast %40 : vector<1x1x8xf32> to vector<1x8xf32>
    %42 = vector.broadcast %41 : vector<1x8xf32> to vector<64x8xf32>
    %43 = arith.addf %39, %42 : vector<64x8xf32>
    %c0_30 = arith.constant 0 : index
    %c0_31 = arith.constant 0 : index
    %c0_32 = arith.constant 0 : index
    %44 = vector.load %arg7[%c0_30, %c0_31, %c0_32] : memref<4x32x8xbf16, #tpu.memory_space<vmem>>, vector<1x32x8xbf16>
    %45 = vector.shape_cast %44 : vector<1x32x8xbf16> to vector<32x8xbf16>
    %cst_33 = arith.constant dense<0.000000e+00> : vector<64x8xf32>
    %46 = tpu.matmul %26, %45, %cst_33 {dimension_numbers = #tpu.dot_dimension_numbers<[1], [0], [0], [1], [0, 0, 1, 1], [], []>} : vector<64x32xbf16>, vector<32x8xbf16>, vector<64x8xf32> -> vector<64x8xf32>
    %c0_34 = arith.constant 0 : index
    %c0_35 = arith.constant 0 : index
    %c0_36 = arith.constant 0 : index
    %47 = vector.load %arg10[%c0_34, %c0_35, %c0_36] : memref<4x1x8xf32, #tpu.memory_space<vmem>>, vector<1x1x8xf32>
    %48 = vector.shape_cast %47 : vector<1x1x8xf32> to vector<1x8xf32>
    %49 = vector.broadcast %48 : vector<1x8xf32> to vector<64x8xf32>
    %50 = arith.addf %46, %49 : vector<64x8xf32>
    %cst_37 = arith.constant 0.353553385 : f32
    %51 = vector.broadcast %cst_37 : f32 to vector<64x8xf32>
    %52 = arith.mulf %36, %51 : vector<64x8xf32>
    %53 = arith.truncf %52 : vector<64x8xf32> to vector<64x8xbf16>
    %cst_38 = arith.constant -1.000000e+30 : f32
    %54 = vector.broadcast %cst_38 : f32 to vector<64x1xf32>
    %cst_39 = arith.constant 0.000000e+00 : f32
    %55 = vector.broadcast %cst_39 : f32 to vector<64x1xf32>
    %cst_40 = arith.constant 0.000000e+00 : f32
    %56 = vector.broadcast %cst_40 : f32 to vector<64x8xf32>
    %57 = arith.truncf %43 : vector<64x8xf32> to vector<64x8xbf16>
    %58 = arith.truncf %50 : vector<64x8xf32> to vector<64x8xbf16>
    "tpu.trace_start"() <{level = 10 : i32, message = "qd,kd->qk"}> : () -> ()
    %cst_41 = arith.constant dense<0.000000e+00> : vector<64x64xf32>
    %59 = tpu.matmul %53, %57, %cst_41 {dimension_numbers = #tpu.dot_dimension_numbers<[1], [1], [0], [0], [0, 0, 1, 0], [], []>} : vector<64x8xbf16>, vector<64x8xbf16>, vector<64x64xf32> -> vector<64x64xf32>
    "tpu.trace_stop"() : () -> ()
    %cst_42 = arith.constant dense<0xFF800000> : vector<64xf32>
    %60 = vector.multi_reduction <maximumf>, %59, %cst_42 [1] : vector<64x64xf32> to vector<64xf32>
    %61 = vector.shape_cast %60 : vector<64xf32> to vector<64x1xf32>
    %62 = arith.maximumf %54, %61 : vector<64x1xf32>
    %63 = arith.subf %54, %62 : vector<64x1xf32>
    %64 = math.exp %63 : vector<64x1xf32>
    %65 = vector.broadcast %62 : vector<64x1xf32> to vector<64x64xf32>
    %66 = arith.subf %59, %65 : vector<64x64xf32>
    %67 = math.exp %66 : vector<64x64xf32>
    %68 = arith.mulf %64, %55 : vector<64x1xf32>
    %cst_43 = arith.constant dense<0.000000e+00> : vector<64xf32>
    %69 = vector.multi_reduction <add>, %67, %cst_43 [1] : vector<64x64xf32> to vector<64xf32>
    %70 = vector.shape_cast %69 : vector<64xf32> to vector<64x1xf32>
    %71 = arith.addf %68, %70 : vector<64x1xf32>
    %72 = vector.broadcast %64 : vector<64x1xf32> to vector<64x8xf32>
    %73 = arith.mulf %72, %56 : vector<64x8xf32>
    %74 = arith.truncf %67 : vector<64x64xf32> to vector<64x64xbf16>
    %cst_44 = arith.constant dense<0.000000e+00> : vector<64x8xf32>
    %75 = tpu.matmul %74, %58, %cst_44 {dimension_numbers = #tpu.dot_dimension_numbers<[1], [0], [0], [1], [0, 0, 1, 1], [], []>} : vector<64x64xbf16>, vector<64x8xbf16>, vector<64x8xf32> -> vector<64x8xf32>
    %76 = arith.addf %73, %75 : vector<64x8xf32>
    %77 = tpu.reciprocal %71 {approx = true} : vector<64x1xf32> -> vector<64x1xf32>
    %78 = vector.broadcast %77 : vector<64x1xf32> to vector<64x8xf32>
    %79 = arith.mulf %76, %78 : vector<64x8xf32>
    %80 = arith.truncf %79 : vector<64x8xf32> to vector<64x8xbf16>
    %c0_45 = arith.constant 0 : index
    %c0_46 = arith.constant 0 : index
    %c0_47 = arith.constant 0 : index
    %81 = vector.load %arg11[%c0_45, %c0_46, %c0_47] : memref<4x8x32xbf16, #tpu.memory_space<vmem>>, vector<1x8x32xbf16>
    %82 = vector.shape_cast %81 : vector<1x8x32xbf16> to vector<8x32xbf16>
    %cst_48 = arith.constant dense<0.000000e+00> : vector<64x32xf32>
    %83 = tpu.matmul %80, %82, %cst_48 {dimension_numbers = #tpu.dot_dimension_numbers<[1], [0], [0], [1], [0, 0, 1, 1], [], []>} : vector<64x8xbf16>, vector<8x32xbf16>, vector<64x32xf32> -> vector<64x32xf32>
    %84 = arith.addf %29, %83 : vector<64x32xf32>
    %c1 = arith.constant 1 : index
    %c0_49 = arith.constant 0 : index
    %c0_50 = arith.constant 0 : index
    %85 = vector.load %arg5[%c1, %c0_49, %c0_50] : memref<4x32x8xbf16, #tpu.memory_space<vmem>>, vector<1x32x8xbf16>
    %86 = vector.shape_cast %85 : vector<1x32x8xbf16> to vector<32x8xbf16>
    %cst_51 = arith.constant dense<0.000000e+00> : vector<64x8xf32>
    %87 = tpu.matmul %26, %86, %cst_51 {dimension_numbers = #tpu.dot_dimension_numbers<[1], [0], [0], [1], [0, 0, 1, 1], [], []>} : vector<64x32xbf16>, vector<32x8xbf16>, vector<64x8xf32> -> vector<64x8xf32>
    %c1_52 = arith.constant 1 : index
    %c0_53 = arith.constant 0 : index
    %c0_54 = arith.constant 0 : index
    %88 = vector.load %arg8[%c1_52, %c0_53, %c0_54] : memref<4x1x8xf32, #tpu.memory_space<vmem>>, vector<1x1x8xf32>
    %89 = vector.shape_cast %88 : vector<1x1x8xf32> to vector<1x8xf32>
    %90 = vector.broadcast %89 : vector<1x8xf32> to vector<64x8xf32>
    %91 = arith.addf %87, %90 : vector<64x8xf32>
    %c1_55 = arith.constant 1 : index
    %c0_56 = arith.constant 0 : index
    %c0_57 = arith.constant 0 : index
    %92 = vector.load %arg6[%c1_55, %c0_56, %c0_57] : memref<4x32x8xbf16, #tpu.memory_space<vmem>>, vector<1x32x8xbf16>
    %93 = vector.shape_cast %92 : vector<1x32x8xbf16> to vector<32x8xbf16>
    %cst_58 = arith.constant dense<0.000000e+00> : vector<64x8xf32>
    %94 = tpu.matmul %26, %93, %cst_58 {dimension_numbers = #tpu.dot_dimension_numbers<[1], [0], [0], [1], [0, 0, 1, 1], [], []>} : vector<64x32xbf16>, vector<32x8xbf16>, vector<64x8xf32> -> vector<64x8xf32>
    %c1_59 = arith.constant 1 : index
    %c0_60 = arith.constant 0 : index
    %c0_61 = arith.constant 0 : index
    %95 = vector.load %arg9[%c1_59, %c0_60, %c0_61] : memref<4x1x8xf32, #tpu.memory_space<vmem>>, vector<1x1x8xf32>
    %96 = vector.shape_cast %95 : vector<1x1x8xf32> to vector<1x8xf32>
    %97 = vector.broadcast %96 : vector<1x8xf32> to vector<64x8xf32>
    %98 = arith.addf %94, %97 : vector<64x8xf32>
    %c1_62 = arith.constant 1 : index
    %c0_63 = arith.constant 0 : index
    %c0_64 = arith.constant 0 : index
    %99 = vector.load %arg7[%c1_62, %c0_63, %c0_64] : memref<4x32x8xbf16, #tpu.memory_space<vmem>>, vector<1x32x8xbf16>
    %100 = vector.shape_cast %99 : vector<1x32x8xbf16> to vector<32x8xbf16>
    %cst_65 = arith.constant dense<0.000000e+00> : vector<64x8xf32>
    %101 = tpu.matmul %26, %100, %cst_65 {dimension_numbers = #tpu.dot_dimension_numbers<[1], [0], [0], [1], [0, 0, 1, 1], [], []>} : vector<64x32xbf16>, vector<32x8xbf16>, vector<64x8xf32> -> vector<64x8xf32>
    %c1_66 = arith.constant 1 : index
    %c0_67 = arith.constant 0 : index
    %c0_68 = arith.constant 0 : index
    %102 = vector.load %arg10[%c1_66, %c0_67, %c0_68] : memref<4x1x8xf32, #tpu.memory_space<vmem>>, vector<1x1x8xf32>
    %103 = vector.shape_cast %102 : vector<1x1x8xf32> to vector<1x8xf32>
    %104 = vector.broadcast %103 : vector<1x8xf32> to vector<64x8xf32>
    %105 = arith.addf %101, %104 : vector<64x8xf32>
    %cst_69 = arith.constant 0.353553385 : f32
    %106 = vector.broadcast %cst_69 : f32 to vector<64x8xf32>
    %107 = arith.mulf %91, %106 : vector<64x8xf32>
    %108 = arith.truncf %107 : vector<64x8xf32> to vector<64x8xbf16>
    %cst_70 = arith.constant -1.000000e+30 : f32
    %109 = vector.broadcast %cst_70 : f32 to vector<64x1xf32>
    %cst_71 = arith.constant 0.000000e+00 : f32
    %110 = vector.broadcast %cst_71 : f32 to vector<64x1xf32>
    %cst_72 = arith.constant 0.000000e+00 : f32
    %111 = vector.broadcast %cst_72 : f32 to vector<64x8xf32>
    %112 = arith.truncf %98 : vector<64x8xf32> to vector<64x8xbf16>
    %113 = arith.truncf %105 : vector<64x8xf32> to vector<64x8xbf16>
    "tpu.trace_start"() <{level = 10 : i32, message = "qd,kd->qk"}> : () -> ()
    %cst_73 = arith.constant dense<0.000000e+00> : vector<64x64xf32>
    %114 = tpu.matmul %108, %112, %cst_73 {dimension_numbers = #tpu.dot_dimension_numbers<[1], [1], [0], [0], [0, 0, 1, 0], [], []>} : vector<64x8xbf16>, vector<64x8xbf16>, vector<64x64xf32> -> vector<64x64xf32>
    "tpu.trace_stop"() : () -> ()
    %cst_74 = arith.constant dense<0xFF800000> : vector<64xf32>
    %115 = vector.multi_reduction <maximumf>, %114, %cst_74 [1] : vector<64x64xf32> to vector<64xf32>
    %116 = vector.shape_cast %115 : vector<64xf32> to vector<64x1xf32>
    %117 = arith.maximumf %109, %116 : vector<64x1xf32>
    %118 = arith.subf %109, %117 : vector<64x1xf32>
    %119 = math.exp %118 : vector<64x1xf32>
    %120 = vector.broadcast %117 : vector<64x1xf32> to vector<64x64xf32>
    %121 = arith.subf %114, %120 : vector<64x64xf32>
    %122 = math.exp %121 : vector<64x64xf32>
    %123 = arith.mulf %119, %110 : vector<64x1xf32>
    %cst_75 = arith.constant dense<0.000000e+00> : vector<64xf32>
    %124 = vector.multi_reduction <add>, %122, %cst_75 [1] : vector<64x64xf32> to vector<64xf32>
    %125 = vector.shape_cast %124 : vector<64xf32> to vector<64x1xf32>
    %126 = arith.addf %123, %125 : vector<64x1xf32>
    %127 = vector.broadcast %119 : vector<64x1xf32> to vector<64x8xf32>
    %128 = arith.mulf %127, %111 : vector<64x8xf32>
    %129 = arith.truncf %122 : vector<64x64xf32> to vector<64x64xbf16>
    %cst_76 = arith.constant dense<0.000000e+00> : vector<64x8xf32>
    %130 = tpu.matmul %129, %113, %cst_76 {dimension_numbers = #tpu.dot_dimension_numbers<[1], [0], [0], [1], [0, 0, 1, 1], [], []>} : vector<64x64xbf16>, vector<64x8xbf16>, vector<64x8xf32> -> vector<64x8xf32>
    %131 = arith.addf %128, %130 : vector<64x8xf32>
    %132 = tpu.reciprocal %126 {approx = true} : vector<64x1xf32> -> vector<64x1xf32>
    %133 = vector.broadcast %132 : vector<64x1xf32> to vector<64x8xf32>
    %134 = arith.mulf %131, %133 : vector<64x8xf32>
    %135 = arith.truncf %134 : vector<64x8xf32> to vector<64x8xbf16>
    %c1_77 = arith.constant 1 : index
    %c0_78 = arith.constant 0 : index
    %c0_79 = arith.constant 0 : index
    %136 = vector.load %arg11[%c1_77, %c0_78, %c0_79] : memref<4x8x32xbf16, #tpu.memory_space<vmem>>, vector<1x8x32xbf16>
    %137 = vector.shape_cast %136 : vector<1x8x32xbf16> to vector<8x32xbf16>
    %cst_80 = arith.constant dense<0.000000e+00> : vector<64x32xf32>
    %138 = tpu.matmul %135, %137, %cst_80 {dimension_numbers = #tpu.dot_dimension_numbers<[1], [0], [0], [1], [0, 0, 1, 1], [], []>} : vector<64x8xbf16>, vector<8x32xbf16>, vector<64x32xf32> -> vector<64x32xf32>
    %139 = arith.addf %84, %138 : vector<64x32xf32>
    %c2 = arith.constant 2 : index
    %c0_81 = arith.constant 0 : index
    %c0_82 = arith.constant 0 : index
    %140 = vector.load %arg5[%c2, %c0_81, %c0_82] : memref<4x32x8xbf16, #tpu.memory_space<vmem>>, vector<1x32x8xbf16>
    %141 = vector.shape_cast %140 : vector<1x32x8xbf16> to vector<32x8xbf16>
    %cst_83 = arith.constant dense<0.000000e+00> : vector<64x8xf32>
    %142 = tpu.matmul %26, %141, %cst_83 {dimension_numbers = #tpu.dot_dimension_numbers<[1], [0], [0], [1], [0, 0, 1, 1], [], []>} : vector<64x32xbf16>, vector<32x8xbf16>, vector<64x8xf32> -> vector<64x8xf32>
    %c2_84 = arith.constant 2 : index
    %c0_85 = arith.constant 0 : index
    %c0_86 = arith.constant 0 : index
    %143 = vector.load %arg8[%c2_84, %c0_85, %c0_86] : memref<4x1x8xf32, #tpu.memory_space<vmem>>, vector<1x1x8xf32>
    %144 = vector.shape_cast %143 : vector<1x1x8xf32> to vector<1x8xf32>
    %145 = vector.broadcast %144 : vector<1x8xf32> to vector<64x8xf32>
    %146 = arith.addf %142, %145 : vector<64x8xf32>
    %c2_87 = arith.constant 2 : index
    %c0_88 = arith.constant 0 : index
    %c0_89 = arith.constant 0 : index
    %147 = vector.load %arg6[%c2_87, %c0_88, %c0_89] : memref<4x32x8xbf16, #tpu.memory_space<vmem>>, vector<1x32x8xbf16>
    %148 = vector.shape_cast %147 : vector<1x32x8xbf16> to vector<32x8xbf16>
    %cst_90 = arith.constant dense<0.000000e+00> : vector<64x8xf32>
    %149 = tpu.matmul %26, %148, %cst_90 {dimension_numbers = #tpu.dot_dimension_numbers<[1], [0], [0], [1], [0, 0, 1, 1], [], []>} : vector<64x32xbf16>, vector<32x8xbf16>, vector<64x8xf32> -> vector<64x8xf32>
    %c2_91 = arith.constant 2 : index
    %c0_92 = arith.constant 0 : index
    %c0_93 = arith.constant 0 : index
    %150 = vector.load %arg9[%c2_91, %c0_92, %c0_93] : memref<4x1x8xf32, #tpu.memory_space<vmem>>, vector<1x1x8xf32>
    %151 = vector.shape_cast %150 : vector<1x1x8xf32> to vector<1x8xf32>
    %152 = vector.broadcast %151 : vector<1x8xf32> to vector<64x8xf32>
    %153 = arith.addf %149, %152 : vector<64x8xf32>
    %c2_94 = arith.constant 2 : index
    %c0_95 = arith.constant 0 : index
    %c0_96 = arith.constant 0 : index
    %154 = vector.load %arg7[%c2_94, %c0_95, %c0_96] : memref<4x32x8xbf16, #tpu.memory_space<vmem>>, vector<1x32x8xbf16>
    %155 = vector.shape_cast %154 : vector<1x32x8xbf16> to vector<32x8xbf16>
    %cst_97 = arith.constant dense<0.000000e+00> : vector<64x8xf32>
    %156 = tpu.matmul %26, %155, %cst_97 {dimension_numbers = #tpu.dot_dimension_numbers<[1], [0], [0], [1], [0, 0, 1, 1], [], []>} : vector<64x32xbf16>, vector<32x8xbf16>, vector<64x8xf32> -> vector<64x8xf32>
    %c2_98 = arith.constant 2 : index
    %c0_99 = arith.constant 0 : index
    %c0_100 = arith.constant 0 : index
    %157 = vector.load %arg10[%c2_98, %c0_99, %c0_100] : memref<4x1x8xf32, #tpu.memory_space<vmem>>, vector<1x1x8xf32>
    %158 = vector.shape_cast %157 : vector<1x1x8xf32> to vector<1x8xf32>
    %159 = vector.broadcast %158 : vector<1x8xf32> to vector<64x8xf32>
    %160 = arith.addf %156, %159 : vector<64x8xf32>
    %cst_101 = arith.constant 0.353553385 : f32
    %161 = vector.broadcast %cst_101 : f32 to vector<64x8xf32>
    %162 = arith.mulf %146, %161 : vector<64x8xf32>
    %163 = arith.truncf %162 : vector<64x8xf32> to vector<64x8xbf16>
    %cst_102 = arith.constant -1.000000e+30 : f32
    %164 = vector.broadcast %cst_102 : f32 to vector<64x1xf32>
    %cst_103 = arith.constant 0.000000e+00 : f32
    %165 = vector.broadcast %cst_103 : f32 to vector<64x1xf32>
    %cst_104 = arith.constant 0.000000e+00 : f32
    %166 = vector.broadcast %cst_104 : f32 to vector<64x8xf32>
    %167 = arith.truncf %153 : vector<64x8xf32> to vector<64x8xbf16>
    %168 = arith.truncf %160 : vector<64x8xf32> to vector<64x8xbf16>
    "tpu.trace_start"() <{level = 10 : i32, message = "qd,kd->qk"}> : () -> ()
    %cst_105 = arith.constant dense<0.000000e+00> : vector<64x64xf32>
    %169 = tpu.matmul %163, %167, %cst_105 {dimension_numbers = #tpu.dot_dimension_numbers<[1], [1], [0], [0], [0, 0, 1, 0], [], []>} : vector<64x8xbf16>, vector<64x8xbf16>, vector<64x64xf32> -> vector<64x64xf32>
    "tpu.trace_stop"() : () -> ()
    %cst_106 = arith.constant dense<0xFF800000> : vector<64xf32>
    %170 = vector.multi_reduction <maximumf>, %169, %cst_106 [1] : vector<64x64xf32> to vector<64xf32>
    %171 = vector.shape_cast %170 : vector<64xf32> to vector<64x1xf32>
    %172 = arith.maximumf %164, %171 : vector<64x1xf32>
    %173 = arith.subf %164, %172 : vector<64x1xf32>
    %174 = math.exp %173 : vector<64x1xf32>
    %175 = vector.broadcast %172 : vector<64x1xf32> to vector<64x64xf32>
    %176 = arith.subf %169, %175 : vector<64x64xf32>
    %177 = math.exp %176 : vector<64x64xf32>
    %178 = arith.mulf %174, %165 : vector<64x1xf32>
    %cst_107 = arith.constant dense<0.000000e+00> : vector<64xf32>
    %179 = vector.multi_reduction <add>, %177, %cst_107 [1] : vector<64x64xf32> to vector<64xf32>
    %180 = vector.shape_cast %179 : vector<64xf32> to vector<64x1xf32>
    %181 = arith.addf %178, %180 : vector<64x1xf32>
    %182 = vector.broadcast %174 : vector<64x1xf32> to vector<64x8xf32>
    %183 = arith.mulf %182, %166 : vector<64x8xf32>
    %184 = arith.truncf %177 : vector<64x64xf32> to vector<64x64xbf16>
    %cst_108 = arith.constant dense<0.000000e+00> : vector<64x8xf32>
    %185 = tpu.matmul %184, %168, %cst_108 {dimension_numbers = #tpu.dot_dimension_numbers<[1], [0], [0], [1], [0, 0, 1, 1], [], []>} : vector<64x64xbf16>, vector<64x8xbf16>, vector<64x8xf32> -> vector<64x8xf32>
    %186 = arith.addf %183, %185 : vector<64x8xf32>
    %187 = tpu.reciprocal %181 {approx = true} : vector<64x1xf32> -> vector<64x1xf32>
    %188 = vector.broadcast %187 : vector<64x1xf32> to vector<64x8xf32>
    %189 = arith.mulf %186, %188 : vector<64x8xf32>
    %190 = arith.truncf %189 : vector<64x8xf32> to vector<64x8xbf16>
    %c2_109 = arith.constant 2 : index
    %c0_110 = arith.constant 0 : index
    %c0_111 = arith.constant 0 : index
    %191 = vector.load %arg11[%c2_109, %c0_110, %c0_111] : memref<4x8x32xbf16, #tpu.memory_space<vmem>>, vector<1x8x32xbf16>
    %192 = vector.shape_cast %191 : vector<1x8x32xbf16> to vector<8x32xbf16>
    %cst_112 = arith.constant dense<0.000000e+00> : vector<64x32xf32>
    %193 = tpu.matmul %190, %192, %cst_112 {dimension_numbers = #tpu.dot_dimension_numbers<[1], [0], [0], [1], [0, 0, 1, 1], [], []>} : vector<64x8xbf16>, vector<8x32xbf16>, vector<64x32xf32> -> vector<64x32xf32>
    %194 = arith.addf %139, %193 : vector<64x32xf32>
    %c3 = arith.constant 3 : index
    %c0_113 = arith.constant 0 : index
    %c0_114 = arith.constant 0 : index
    %195 = vector.load %arg5[%c3, %c0_113, %c0_114] : memref<4x32x8xbf16, #tpu.memory_space<vmem>>, vector<1x32x8xbf16>
    %196 = vector.shape_cast %195 : vector<1x32x8xbf16> to vector<32x8xbf16>
    %cst_115 = arith.constant dense<0.000000e+00> : vector<64x8xf32>
    %197 = tpu.matmul %26, %196, %cst_115 {dimension_numbers = #tpu.dot_dimension_numbers<[1], [0], [0], [1], [0, 0, 1, 1], [], []>} : vector<64x32xbf16>, vector<32x8xbf16>, vector<64x8xf32> -> vector<64x8xf32>
    %c3_116 = arith.constant 3 : index
    %c0_117 = arith.constant 0 : index
    %c0_118 = arith.constant 0 : index
    %198 = vector.load %arg8[%c3_116, %c0_117, %c0_118] : memref<4x1x8xf32, #tpu.memory_space<vmem>>, vector<1x1x8xf32>
    %199 = vector.shape_cast %198 : vector<1x1x8xf32> to vector<1x8xf32>
    %200 = vector.broadcast %199 : vector<1x8xf32> to vector<64x8xf32>
    %201 = arith.addf %197, %200 : vector<64x8xf32>
    %c3_119 = arith.constant 3 : index
    %c0_120 = arith.constant 0 : index
    %c0_121 = arith.constant 0 : index
    %202 = vector.load %arg6[%c3_119, %c0_120, %c0_121] : memref<4x32x8xbf16, #tpu.memory_space<vmem>>, vector<1x32x8xbf16>
    %203 = vector.shape_cast %202 : vector<1x32x8xbf16> to vector<32x8xbf16>
    %cst_122 = arith.constant dense<0.000000e+00> : vector<64x8xf32>
    %204 = tpu.matmul %26, %203, %cst_122 {dimension_numbers = #tpu.dot_dimension_numbers<[1], [0], [0], [1], [0, 0, 1, 1], [], []>} : vector<64x32xbf16>, vector<32x8xbf16>, vector<64x8xf32> -> vector<64x8xf32>
    %c3_123 = arith.constant 3 : index
    %c0_124 = arith.constant 0 : index
    %c0_125 = arith.constant 0 : index
    %205 = vector.load %arg9[%c3_123, %c0_124, %c0_125] : memref<4x1x8xf32, #tpu.memory_space<vmem>>, vector<1x1x8xf32>
    %206 = vector.shape_cast %205 : vector<1x1x8xf32> to vector<1x8xf32>
    %207 = vector.broadcast %206 : vector<1x8xf32> to vector<64x8xf32>
    %208 = arith.addf %204, %207 : vector<64x8xf32>
    %c3_126 = arith.constant 3 : index
    %c0_127 = arith.constant 0 : index
    %c0_128 = arith.constant 0 : index
    %209 = vector.load %arg7[%c3_126, %c0_127, %c0_128] : memref<4x32x8xbf16, #tpu.memory_space<vmem>>, vector<1x32x8xbf16>
    %210 = vector.shape_cast %209 : vector<1x32x8xbf16> to vector<32x8xbf16>
    %cst_129 = arith.constant dense<0.000000e+00> : vector<64x8xf32>
    %211 = tpu.matmul %26, %210, %cst_129 {dimension_numbers = #tpu.dot_dimension_numbers<[1], [0], [0], [1], [0, 0, 1, 1], [], []>} : vector<64x32xbf16>, vector<32x8xbf16>, vector<64x8xf32> -> vector<64x8xf32>
    %c3_130 = arith.constant 3 : index
    %c0_131 = arith.constant 0 : index
    %c0_132 = arith.constant 0 : index
    %212 = vector.load %arg10[%c3_130, %c0_131, %c0_132] : memref<4x1x8xf32, #tpu.memory_space<vmem>>, vector<1x1x8xf32>
    %213 = vector.shape_cast %212 : vector<1x1x8xf32> to vector<1x8xf32>
    %214 = vector.broadcast %213 : vector<1x8xf32> to vector<64x8xf32>
    %215 = arith.addf %211, %214 : vector<64x8xf32>
    %cst_133 = arith.constant 0.353553385 : f32
    %216 = vector.broadcast %cst_133 : f32 to vector<64x8xf32>
    %217 = arith.mulf %201, %216 : vector<64x8xf32>
    %218 = arith.truncf %217 : vector<64x8xf32> to vector<64x8xbf16>
    %cst_134 = arith.constant -1.000000e+30 : f32
    %219 = vector.broadcast %cst_134 : f32 to vector<64x1xf32>
    %cst_135 = arith.constant 0.000000e+00 : f32
    %220 = vector.broadcast %cst_135 : f32 to vector<64x1xf32>
    %cst_136 = arith.constant 0.000000e+00 : f32
    %221 = vector.broadcast %cst_136 : f32 to vector<64x8xf32>
    %222 = arith.truncf %208 : vector<64x8xf32> to vector<64x8xbf16>
    %223 = arith.truncf %215 : vector<64x8xf32> to vector<64x8xbf16>
    "tpu.trace_start"() <{level = 10 : i32, message = "qd,kd->qk"}> : () -> ()
    %cst_137 = arith.constant dense<0.000000e+00> : vector<64x64xf32>
    %224 = tpu.matmul %218, %222, %cst_137 {dimension_numbers = #tpu.dot_dimension_numbers<[1], [1], [0], [0], [0, 0, 1, 0], [], []>} : vector<64x8xbf16>, vector<64x8xbf16>, vector<64x64xf32> -> vector<64x64xf32>
    "tpu.trace_stop"() : () -> ()
    %cst_138 = arith.constant dense<0xFF800000> : vector<64xf32>
    %225 = vector.multi_reduction <maximumf>, %224, %cst_138 [1] : vector<64x64xf32> to vector<64xf32>
    %226 = vector.shape_cast %225 : vector<64xf32> to vector<64x1xf32>
    %227 = arith.maximumf %219, %226 : vector<64x1xf32>
    %228 = arith.subf %219, %227 : vector<64x1xf32>
    %229 = math.exp %228 : vector<64x1xf32>
    %230 = vector.broadcast %227 : vector<64x1xf32> to vector<64x64xf32>
    %231 = arith.subf %224, %230 : vector<64x64xf32>
    %232 = math.exp %231 : vector<64x64xf32>
    %233 = arith.mulf %229, %220 : vector<64x1xf32>
    %cst_139 = arith.constant dense<0.000000e+00> : vector<64xf32>
    %234 = vector.multi_reduction <add>, %232, %cst_139 [1] : vector<64x64xf32> to vector<64xf32>
    %235 = vector.shape_cast %234 : vector<64xf32> to vector<64x1xf32>
    %236 = arith.addf %233, %235 : vector<64x1xf32>
    %237 = vector.broadcast %229 : vector<64x1xf32> to vector<64x8xf32>
    %238 = arith.mulf %237, %221 : vector<64x8xf32>
    %239 = arith.truncf %232 : vector<64x64xf32> to vector<64x64xbf16>
    %cst_140 = arith.constant dense<0.000000e+00> : vector<64x8xf32>
    %240 = tpu.matmul %239, %223, %cst_140 {dimension_numbers = #tpu.dot_dimension_numbers<[1], [0], [0], [1], [0, 0, 1, 1], [], []>} : vector<64x64xbf16>, vector<64x8xbf16>, vector<64x8xf32> -> vector<64x8xf32>
    %241 = arith.addf %238, %240 : vector<64x8xf32>
    %242 = tpu.reciprocal %236 {approx = true} : vector<64x1xf32> -> vector<64x1xf32>
    %243 = vector.broadcast %242 : vector<64x1xf32> to vector<64x8xf32>
    %244 = arith.mulf %241, %243 : vector<64x8xf32>
    %245 = arith.truncf %244 : vector<64x8xf32> to vector<64x8xbf16>
    %c3_141 = arith.constant 3 : index
    %c0_142 = arith.constant 0 : index
    %c0_143 = arith.constant 0 : index
    %246 = vector.load %arg11[%c3_141, %c0_142, %c0_143] : memref<4x8x32xbf16, #tpu.memory_space<vmem>>, vector<1x8x32xbf16>
    %247 = vector.shape_cast %246 : vector<1x8x32xbf16> to vector<8x32xbf16>
    %cst_144 = arith.constant dense<0.000000e+00> : vector<64x32xf32>
    %248 = tpu.matmul %245, %247, %cst_144 {dimension_numbers = #tpu.dot_dimension_numbers<[1], [0], [0], [1], [0, 0, 1, 1], [], []>} : vector<64x8xbf16>, vector<8x32xbf16>, vector<64x32xf32> -> vector<64x32xf32>
    %249 = arith.addf %194, %248 : vector<64x32xf32>
    %250 = arith.truncf %249 : vector<64x32xf32> to vector<64x32xbf16>
    %c0_145 = arith.constant 0 : index
    %c0_146 = arith.constant 0 : index
    %c0_147 = arith.constant 0 : index
    %251 = vector.load %arg13[%c0_145, %c0_146, %c0_147] : memref<1x64x32xbf16, #tpu.memory_space<vmem>>, vector<1x64x32xbf16>
    %252 = vector.shape_cast %251 : vector<1x64x32xbf16> to vector<64x32xbf16>
    %253 = vector.shape_cast %250 : vector<64x32xbf16> to vector<1x64x32xbf16>
    tpu.vector_store %arg13[%c0_145, %c0_146, %c0_147], %253 {strides = array<i32>} : memref<1x64x32xbf16, #tpu.memory_space<vmem>>, vector<1x64x32xbf16>,
    return
  }
  func.func @transform_0(%arg0: i32) -> (i32, i32, i32) {
    %c0_i32 = arith.constant 0 : i32
    %c0_i32_0 = arith.constant 0 : i32
    %c0_i32_1 = arith.constant 0 : i32
    return %arg0, %c0_i32, %c0_i32_0 : i32, i32, i32
  }
  func.func @transform_1(%arg0: i32) -> (i32, i32) {
    %c0_i32 = arith.constant 0 : i32
    %c0_i32_0 = arith.constant 0 : i32
    %c0_i32_1 = arith.constant 0 : i32
    return %c0_i32, %c0_i32_0 : i32, i32
  }
  func.func @transform_2(%arg0: i32) -> (i32, i32) {
    %c0_i32 = arith.constant 0 : i32
    %c0_i32_0 = arith.constant 0 : i32
    %c0_i32_1 = arith.constant 0 : i32
    return %c0_i32, %c0_i32_0 : i32, i32
  }
  func.func @transform_3(%arg0: i32) -> (i32, i32) {
    %c0_i32 = arith.constant 0 : i32
    %c0_i32_0 = arith.constant 0 : i32
    %c0_i32_1 = arith.constant 0 : i32
    return %c0_i32, %c0_i32_0 : i32, i32
  }
  func.func @transform_4(%arg0: i32) -> (i32, i32, i32) {
    %c0_i32 = arith.constant 0 : i32
    %c0_i32_0 = arith.constant 0 : i32
    %c0_i32_1 = arith.constant 0 : i32
    %c0_i32_2 = arith.constant 0 : i32
    return %c0_i32, %c0_i32_0, %c0_i32_1 : i32, i32, i32
  }
  func.func @transform_5(%arg0: i32) -> (i32, i32, i32) {
    %c0_i32 = arith.constant 0 : i32
    %c0_i32_0 = arith.constant 0 : i32
    %c0_i32_1 = arith.constant 0 : i32
    %c0_i32_2 = arith.constant 0 : i32
    return %c0_i32, %c0_i32_0, %c0_i32_1 : i32, i32, i32
  }
  func.func @transform_6(%arg0: i32) -> (i32, i32, i32) {
    %c0_i32 = arith.constant 0 : i32
    %c0_i32_0 = arith.constant 0 : i32
    %c0_i32_1 = arith.constant 0 : i32
    %c0_i32_2 = arith.constant 0 : i32
    return %c0_i32, %c0_i32_0, %c0_i32_1 : i32, i32, i32
  }
  func.func @transform_7(%arg0: i32) -> (i32, i32, i32) {
    %c0_i32 = arith.constant 0 : i32
    %c0_i32_0 = arith.constant 0 : i32
    %c0_i32_1 = arith.constant 0 : i32
    %c0_i32_2 = arith.constant 0 : i32
    return %c0_i32, %c0_i32_0, %c0_i32_1 : i32, i32, i32
  }
  func.func @transform_8(%arg0: i32) -> (i32, i32, i32) {
    %c0_i32 = arith.constant 0 : i32
    %c0_i32_0 = arith.constant 0 : i32
    %c0_i32_1 = arith.constant 0 : i32
    %c0_i32_2 = arith.constant 0 : i32
    return %c0_i32, %c0_i32_0, %c0_i32_1 : i32, i32, i32
  }
  func.func @transform_9(%arg0: i32) -> (i32, i32, i32) {
    %c0_i32 = arith.constant 0 : i32
    %c0_i32_0 = arith.constant 0 : i32
    %c0_i32_1 = arith.constant 0 : i32
    %c0_i32_2 = arith.constant 0 : i32
    return %c0_i32, %c0_i32_0, %c0_i32_1 : i32, i32, i32
  }
  func.func @transform_10(%arg0: i32) -> (i32, i32, i32) {
    %c0_i32 = arith.constant 0 : i32
    %c0_i32_0 = arith.constant 0 : i32
    %c0_i32_1 = arith.constant 0 : i32
    %c0_i32_2 = arith.constant 0 : i32
    return %c0_i32, %c0_i32_0, %c0_i32_1 : i32, i32, i32
  }
  func.func @transform_11(%arg0: i32) -> (i32, i32) {
    %c0_i32 = arith.constant 0 : i32
    %c0_i32_0 = arith.constant 0 : i32
    %c0_i32_1 = arith.constant 0 : i32
    return %c0_i32, %c0_i32_0 : i32, i32
  }
  func.func @transform_12(%arg0: i32) -> (i32, i32, i32) {
    %c0_i32 = arith.constant 0 : i32
    %c0_i32_0 = arith.constant 0 : i32
    %c0_i32_1 = arith.constant 0 : i32
    return %arg0, %c0_i32, %c0_i32_0 : i32, i32, i32
  }
}

module attributes {stable_mosaic.version = 11 : i64} {
  func.func @_downsample_conv_kernel(%arg0: i32, %arg1: memref<1x5x5x128xbf16, #tpu.memory_space<vmem>>, %arg2: memref<4x128x64xbf16, #tpu.memory_space<vmem>>, %arg3: memref<1x64xf32, #tpu.memory_space<vmem>>, %arg4: memref<1x4x4x64xbf16, #tpu.memory_space<vmem>>) attributes {dimension_semantics = [#tpu.dimension_semantics<parallel>], iteration_bounds = array<i64: 2>, scalar_prefetch = 0 : i64, scratch_operands = 0 : i64, tpu.core_type = #tpu.core_type<tc>, window_params = [{transform_indices = @transform_0, window_bounds = array<i64: 1, 5, 5, 128>}, {pipeline_mode = #tpu.pipeline_mode<synchronous>, transform_indices = @transform_1, window_bounds = array<i64: 4, 128, 64>}, {pipeline_mode = #tpu.pipeline_mode<synchronous>, transform_indices = @transform_2, window_bounds = array<i64: 1, 64>}, {transform_indices = @transform_3, window_bounds = array<i64: 1, 4, 4, 64>}]} {
    %c0 = arith.constant 0 : index
    %c0_0 = arith.constant 0 : index
    %0 = vector.load %arg3[%c0, %c0_0] : memref<1x64xf32, #tpu.memory_space<vmem>>, vector<1x64xf32>
    %c0_i32 = arith.constant 0 : i32
    %c4_i32 = arith.constant 4 : i32
    %1 = arith.addi %c0_i32, %c4_i32 : i32
    %c1_i32 = arith.constant 1 : i32
    scf.for %arg5 = %c0_i32 to %1 step %c1_i32  : i32 {
      %cst = arith.constant 0.000000e+00 : f32
      %2 = vector.broadcast %cst : f32 to vector<4x64xf32>
      %c0_i32_2 = arith.constant 0 : i32
      %3 = arith.addi %arg5, %c0_i32_2 : i32
      %c0_3 = arith.constant 0 : index
      %4 = arith.index_cast %3 : i32 to index
      %c0_4 = arith.constant 0 : index
      %c0_5 = arith.constant 0 : index
      %5 = vector.load %arg1[%c0_3, %4, %c0_4, %c0_5] : memref<1x5x5x128xbf16, #tpu.memory_space<vmem>>, vector<1x1x4x128xbf16>
      %6 = vector.shape_cast %5 : vector<1x1x4x128xbf16> to vector<4x128xbf16>
      %c0_6 = arith.constant 0 : index
      %c0_7 = arith.constant 0 : index
      %c0_8 = arith.constant 0 : index
      %7 = vector.load %arg2[%c0_6, %c0_7, %c0_8] : memref<4x128x64xbf16, #tpu.memory_space<vmem>>, vector<1x128x64xbf16>
      %8 = vector.shape_cast %7 : vector<1x128x64xbf16> to vector<128x64xbf16>
      %cst_9 = arith.constant dense<0.000000e+00> : vector<4x64xf32>
      %9 = tpu.matmul %6, %8, %cst_9 {dimension_numbers = #tpu.dot_dimension_numbers<[1], [0], [0], [1], [0, 0, 1, 1], [], []>} : vector<4x128xbf16>, vector<128x64xbf16>, vector<4x64xf32> -> vector<4x64xf32>
      %10 = arith.addf %2, %9 : vector<4x64xf32>
      %c0_i32_10 = arith.constant 0 : i32
      %11 = arith.addi %arg5, %c0_i32_10 : i32
      %c0_11 = arith.constant 0 : index
      %12 = arith.index_cast %11 : i32 to index
      %c1 = arith.constant 1 : index
      %c0_12 = arith.constant 0 : index
      %13 = vector.load %arg1[%c0_11, %12, %c1, %c0_12] : memref<1x5x5x128xbf16, #tpu.memory_space<vmem>>, vector<1x1x4x128xbf16>
      %14 = vector.shape_cast %13 : vector<1x1x4x128xbf16> to vector<4x128xbf16>
      %c1_13 = arith.constant 1 : index
      %c0_14 = arith.constant 0 : index
      %c0_15 = arith.constant 0 : index
      %15 = vector.load %arg2[%c1_13, %c0_14, %c0_15] : memref<4x128x64xbf16, #tpu.memory_space<vmem>>, vector<1x128x64xbf16>
      %16 = vector.shape_cast %15 : vector<1x128x64xbf16> to vector<128x64xbf16>
      %cst_16 = arith.constant dense<0.000000e+00> : vector<4x64xf32>
      %17 = tpu.matmul %14, %16, %cst_16 {dimension_numbers = #tpu.dot_dimension_numbers<[1], [0], [0], [1], [0, 0, 1, 1], [], []>} : vector<4x128xbf16>, vector<128x64xbf16>, vector<4x64xf32> -> vector<4x64xf32>
      %18 = arith.addf %10, %17 : vector<4x64xf32>
      %c1_i32_17 = arith.constant 1 : i32
      %19 = arith.addi %arg5, %c1_i32_17 : i32
      %c0_18 = arith.constant 0 : index
      %20 = arith.index_cast %19 : i32 to index
      %c0_19 = arith.constant 0 : index
      %c0_20 = arith.constant 0 : index
      %21 = vector.load %arg1[%c0_18, %20, %c0_19, %c0_20] : memref<1x5x5x128xbf16, #tpu.memory_space<vmem>>, vector<1x1x4x128xbf16>
      %22 = vector.shape_cast %21 : vector<1x1x4x128xbf16> to vector<4x128xbf16>
      %c2 = arith.constant 2 : index
      %c0_21 = arith.constant 0 : index
      %c0_22 = arith.constant 0 : index
      %23 = vector.load %arg2[%c2, %c0_21, %c0_22] : memref<4x128x64xbf16, #tpu.memory_space<vmem>>, vector<1x128x64xbf16>
      %24 = vector.shape_cast %23 : vector<1x128x64xbf16> to vector<128x64xbf16>
      %cst_23 = arith.constant dense<0.000000e+00> : vector<4x64xf32>
      %25 = tpu.matmul %22, %24, %cst_23 {dimension_numbers = #tpu.dot_dimension_numbers<[1], [0], [0], [1], [0, 0, 1, 1], [], []>} : vector<4x128xbf16>, vector<128x64xbf16>, vector<4x64xf32> -> vector<4x64xf32>
      %26 = arith.addf %18, %25 : vector<4x64xf32>
      %c1_i32_24 = arith.constant 1 : i32
      %27 = arith.addi %arg5, %c1_i32_24 : i32
      %c0_25 = arith.constant 0 : index
      %28 = arith.index_cast %27 : i32 to index
      %c1_26 = arith.constant 1 : index
      %c0_27 = arith.constant 0 : index
      %29 = vector.load %arg1[%c0_25, %28, %c1_26, %c0_27] : memref<1x5x5x128xbf16, #tpu.memory_space<vmem>>, vector<1x1x4x128xbf16>
      %30 = vector.shape_cast %29 : vector<1x1x4x128xbf16> to vector<4x128xbf16>
      %c3 = arith.constant 3 : index
      %c0_28 = arith.constant 0 : index
      %c0_29 = arith.constant 0 : index
      %31 = vector.load %arg2[%c3, %c0_28, %c0_29] : memref<4x128x64xbf16, #tpu.memory_space<vmem>>, vector<1x128x64xbf16>
      %32 = vector.shape_cast %31 : vector<1x128x64xbf16> to vector<128x64xbf16>
      %cst_30 = arith.constant dense<0.000000e+00> : vector<4x64xf32>
      %33 = tpu.matmul %30, %32, %cst_30 {dimension_numbers = #tpu.dot_dimension_numbers<[1], [0], [0], [1], [0, 0, 1, 1], [], []>} : vector<4x128xbf16>, vector<128x64xbf16>, vector<4x64xf32> -> vector<4x64xf32>
      %34 = arith.addf %26, %33 : vector<4x64xf32>
      %35 = vector.broadcast %0 : vector<1x64xf32> to vector<4x64xf32>
      %36 = arith.addf %34, %35 : vector<4x64xf32>
      %37 = arith.truncf %36 : vector<4x64xf32> to vector<4x64xbf16>
      %c0_31 = arith.constant 0 : index
      %38 = arith.index_cast %arg5 : i32 to index
      %c0_32 = arith.constant 0 : index
      %c0_33 = arith.constant 0 : index
      %39 = vector.load %arg4[%c0_31, %38, %c0_32, %c0_33] : memref<1x4x4x64xbf16, #tpu.memory_space<vmem>>, vector<1x1x4x64xbf16>
      %40 = vector.shape_cast %39 : vector<1x1x4x64xbf16> to vector<4x64xbf16>
      %41 = vector.shape_cast %37 : vector<4x64xbf16> to vector<1x1x4x64xbf16>
      tpu.vector_store %arg4[%c0_31, %38, %c0_32, %c0_33], %41 {strides = array<i32>} : memref<1x4x4x64xbf16, #tpu.memory_space<vmem>>, vector<1x1x4x64xbf16>,
    }
    %c4_i32_1 = arith.constant 4 : i32
    return
  }
  func.func @transform_0(%arg0: i32) -> (i32, i32, i32, i32) {
    %c0_i32 = arith.constant 0 : i32
    %c0_i32_0 = arith.constant 0 : i32
    %c0_i32_1 = arith.constant 0 : i32
    %c0_i32_2 = arith.constant 0 : i32
    return %arg0, %c0_i32, %c0_i32_0, %c0_i32_1 : i32, i32, i32, i32
  }
  func.func @transform_1(%arg0: i32) -> (i32, i32, i32) {
    %c0_i32 = arith.constant 0 : i32
    %c0_i32_0 = arith.constant 0 : i32
    %c0_i32_1 = arith.constant 0 : i32
    %c0_i32_2 = arith.constant 0 : i32
    return %c0_i32, %c0_i32_0, %c0_i32_1 : i32, i32, i32
  }
  func.func @transform_2(%arg0: i32) -> (i32, i32) {
    %c0_i32 = arith.constant 0 : i32
    %c0_i32_0 = arith.constant 0 : i32
    %c0_i32_1 = arith.constant 0 : i32
    return %c0_i32, %c0_i32_0 : i32, i32
  }
  func.func @transform_3(%arg0: i32) -> (i32, i32, i32, i32) {
    %c0_i32 = arith.constant 0 : i32
    %c0_i32_0 = arith.constant 0 : i32
    %c0_i32_1 = arith.constant 0 : i32
    %c0_i32_2 = arith.constant 0 : i32
    return %arg0, %c0_i32, %c0_i32_0, %c0_i32_1 : i32, i32, i32, i32
  }
}

</mosaic_0001>

<bundles_post_ra>
// kernel: block_forward.7
= control target key start
LH: loop header
LB: loop body
LE: loop exit
PB: predicated region body
PF: predicated region fallthrough
CT: control target
= control target key end

     0   :  { %v148_v0 = vmov 0.0   ;;  %vm149_vm0 = vmmov 0   ;;  %vm64_vm1 = vcmask 523264   ;;  %vm108_vm2 = vcmask 517120   ;;  %s191_s1 = inlined_call_operand.vmem [shape: bf16[64,64], index: 1, kind: input, shape index: {}]   ;;  %s192_s0 = inlined_call_operand.vmem [shape: bf16[2,64], index: 0, kind: input, shape index: {}]   ;;  %s193_s2 = inlined_call_operand.vmem [shape: f32[1,64], index: 2, kind: input, shape index: {}]   ;;  %s194_s3 = inlined_call_operand.vmem [shape: f32[2,64], index: 3, kind: output, shape index: {}]  }
   0x1   :  { %126 = vmatprep.subr.bf16.mxu0 %v148_v0  ;;  %v140_v1 = vld [vmem:[%s191_s1] sm:$0xff]   ;;  %134 = vmatprep.mubr.msk.bf16.mxu0 %vm149_vm0, %v148_v0  ;;  %v141_v2 = vld [vmem:[%s191_s1 + $0x8] sm:$0xff]   ;;  %v142_v5 = vld [vmem:[%s191_s1 + $0x10] sm:$0xff]  }
   0x2   :  { %127 = vmatpush3.bf16.msra.mxu0 %v140_v1  ;;  %v15_v3 = vld [vmem:[%s192_s0] sm:$0x1]  ;;  %v143_v7 = vld [vmem:[%s191_s1 + $0x18] sm:$0xff]  }
   0x3   :  { %128 = vmatprep.subr.bf16.mxu0 %v148_v0  ;;  %v16_v4 = vunpack.c.l.bf16 %v15_v3  ;;  %v115_v13 = vld [vmem:[%s193_s2] ss:$0 sm:$0xff] }
   0x5   :  { %v114_v6 = vmul.f32 -1.442695, %v16_v4 }
   0x6   :  { %129 = vmatpush3.bf16.msra.mxu0 %v141_v2 }
   0x7   :  { %130 = vmatprep.subr.bf16.mxu0 %v148_v0  ;;  %144 = vpow2.f32 %v114_v6 }
   0xa   :  { %131 = vmatpush3.bf16.msra.mxu0 %v142_v5 }
   0xb   :  { %132 = vmatprep.subr.bf16.mxu0 %v148_v0 }
   0xe   :  { %133 = vmatpush3.bf16.msra.mxu0 %v143_v7 }
  0x11   :  { %v145_v8 = vpop.eup %144 }
  0x12   :  { %v20_v9 = vadd.f32 1.0, %v145_v8 }
  0x14   :  { %146 = vrcp.f32 %v20_v9 }
  0x1e   :  { %v147_v10 = vpop.eup %146 }
  0x1f   :  { %v23_v11 = vmul.f32 %v147_v10, %v16_v4 }
  0x21   :  { %v24_v12 = vpack.c.bf16 %v23_v11, %v23_v11 }
  0x23   :  { %135 = vmatmul.mubr.msk.bf16.vlgmr.msra.gmra.mrb[0].mxu0 %vm64_vm1, %v24_v12 }
  0xf6   :  { %v102_v14 = vpop.f32.mrb[0].mxu0 }
  0xf7   :  { %v103_v15 = vadd.f32 %v115_v13, %v102_v14  ;;  %v136_v16 = vpop.f32.mrb[1].mxu0 }
  0xf8   :  { %v105_v17 = vpop.f32.mrb[2].mxu0 }
  0xf9   :  { %109 = vst.msk [vmem:[%s194_s3] sm:$0x3] %vm108_vm2, %v103_v15  ;;  %v137_v18 = vpop.f32.mrb[3].mxu0 }

// kernel: block_forward.8
= control target key start
LH: loop header
LB: loop body
LE: loop exit
PB: predicated region body
PF: predicated region fallthrough
CT: control target
= control target key end

     0   :  { %s1876_s21 = smov 0   ;;  %s2188_s0 = inlined_call_operand.vmem [shape: bf16[2,8,8,32], index: 0, kind: input, shape index: {}]   ;;  %s2189_s1 = inlined_call_operand.vmem [shape: f32[1,32], index: 1, kind: input, shape index: {}]   ;;  %s2190_s2 = inlined_call_operand.vmem [shape: f32[1,32], index: 2, kind: input, shape index: {}]   ;;  %s2191_s3 = inlined_call_operand.vmem [shape: f32[32,32], index: 3, kind: input, shape index: {}]   ;;  %s2192_s4 = inlined_call_operand.vmem [shape: bf16[9,32,32], index: 4, kind: input, shape index: {}]   ;;  %s2193_s5 = inlined_call_operand.vmem [shape: f32[2,32], index: 5, kind: input, shape index: {}]   ;;  %s2194_s6 = inlined_call_operand.vmem [shape: bf16[2,8,8,32], index: 6, kind: output, shape index: {}]  }
   0x1 LB: > { %s1882_s22 = sadd.s32 4294967295, %s1829_s21   ;;  %p1462_p0 = scmp.ge.s32.totalorder %s1829_s21, 1  ;;  %s1829_s21 = sphi %s1876_s21, %s16_s21  }
   0x2   : > { %p212_p1 = scmp.lt.s32.totalorder %s1829_s21, 3 }
   0x4   : > { %p213_p2 = pnand %p1462_p0, %p212_p1 }
   0x5   : > { %v322_v0 = vld [vmem:[%s2191_s3] sm:$0xff] (!%p213_p2)  ;;  %v323_v1 = vld [vmem:[%s2191_s3 + $0x8] sm:$0xff] (!%p213_p2)  ;;  %v324_v2 = vld [vmem:[%s2191_s3 + $0x10] sm:$0xff] (!%p213_p2)  ;;  %v1835_v3 = vmov (!%p213_p2), 0.0|0.0   ;;  %p242_p3 = scmp.lt.s32.totalorder (!%p213_p2), %s1882_s22, 1  ;;  %vm1836_vm0 = vmmov (!%p213_p2), 0   ;;  %s754_s17 = scalar_lea.vmem (!%p213_p2), %s2193_s5, %s1882_s22 }
   0x6   : > { %216 = sbr.rel (%p213_p2) target bundleno = 605 (0x25d), region = 44  ;;  %1727 = vmatprep.subr.bf16.mxu0 (!%p213_p2), %v1835_v3  ;;  %v1728_v4 = vpack.c.bf16 (!%p213_p2), %v323_v1, %v322_v0  ;;  %1733 = vmatprep.subr.bf16.mxu1 (!%p213_p2), %v1835_v3  ;;  %v325_v5 = vld [vmem:[%s2191_s3 + $0x18] sm:$0xff] (!%p213_p2)  ;;  %v1837_v6 = vmov (!%p213_p2), 0.0   ;;  %vm269_vm1 = vcmask (!%p213_p2), 261120   ;;  %vm565_vm2 = vcmask (!%p213_p2), 257024   ;;  %s2060_s23 = smov (!%p213_p2), 0  }
   0x7   : > { %1641 = vmatprep.mubr.msk.f32.mxu0 (!%p213_p2), %vm1836_vm0, %v1837_v6  ;;  %1652 = vmatprep.mubr.msk.f32.mxu1 (!%p213_p2), %vm1836_vm0, %v1837_v6  ;;  %v1731_v7 = vpack.c.bf16 (!%p213_p2), %v325_v5, %v324_v2  ;;  %vm567_vm3 = vcmask (!%p213_p2), 253952   ;;  %vm701_vm4 = vsmask.f32 (!%p213_p2), 7938  ;;  %vm707_vm5 = vsmask.f32 (!%p213_p2), 256 }
   0x8   : > { %1729 = vmatpush3.bf16.msra.mxu0 (!%p213_p2), %v1728_v4  ;;  %1735 = vmatpush3.bf16.msra.mxu1 (!%p213_p2), %v1728_v4  ;;  %vm2018_vm6 = vmand (!%p213_p2), %vm565_vm2, %vm701_vm4 }
   0x9   : > { %1730 = vmatprep.subr.bf16.mxu0 (!%p213_p2), %v1835_v3  ;;  %1736 = vmatprep.subr.bf16.mxu1 (!%p213_p2), %v1835_v3  ;;  %vm2024_vm7 = vmand (!%p213_p2), %vm567_vm3, %vm707_vm5 }
   0xc   : > { %1732 = vmatpush3.bf16.msra.mxu0 (!%p213_p2), %v1731_v7  ;;  %1738 = vmatpush3.bf16.msra.mxu1 (!%p213_p2), %v1731_v7 }
   0xd   : > { %s243_s7 = scalar_select %p242_p3, %s1882_s22, 1 }
   0xf   : > { %s1566_s8 = sshll.u32 %s243_s7, 5 }
  0x10   : > { %s246_s11 = scalar_lea.vmem %s2188_s0, %s1566_s8  ;;  %s1906_s14 = scalar_lea.vmem %s2194_s6, %s1566_s8 }
  0x11   : > { %v1578_v8 = vld [vmem:[%s246_s11] sm:$0xff]   ;;  %v1593_v9 = vld [vmem:[%s246_s11 + $0x8] sm:$0xff]   ;;  %v1594_v10 = vld [vmem:[%s246_s11 + $0x10] sm:$0xff]  }
  0x12   : > { %v1908_v11 = vunpack.c.l.bf16 %v1578_v8  ;;  %v1910_v12 = vunpack.c.h.bf16 %v1578_v8  ;;  %v1912_v13 = vunpack.c.l.bf16 %v1593_v9  ;;  %v1914_v14 = vunpack.c.h.bf16 %v1593_v9  ;;  %v1595_v16 = vld [vmem:[%s246_s11 + $0x18] sm:$0xff]   ;;  %v1992_v9 = vld [vmem:[%s754_s17] ss:$0 sm:$0xff] }
  0x13   : > { %v1916_v15 = vunpack.c.l.bf16 %v1594_v10  ;;  %v1924_v20 = vunpack.c.h.bf16 %v1594_v10  ;;  %v1934_v26 = vunpack.c.l.bf16 %v1595_v16  ;;  %v1945_v36 = vunpack.c.h.bf16 %v1595_v16 }
  0x14   : > { %v270_v17 = vsel %vm269_vm1, %v1908_v11, 0.0  ;;  %v271_v18 = vsel %vm269_vm1, %v1910_v12, 0.0  ;;  %v273_v19 = vsel %vm269_vm1, %v1912_v13, 0.0  ;;  %v275_v22 = vsel %vm269_vm1, %v1914_v14, 0.0 }
  0x15   : > { %v272_v21 = vadd.f32 %v271_v18, %v270_v17  ;;  %v292_v23 = vmul.f32 %v1908_v11, %v1908_v11  ;;  %v293_v24 = vmul.f32 %v1910_v12, %v1910_v12  ;;  %v294_v25 = vmul.f32 %v1912_v13, %v1912_v13 }
  0x16   : > { %v295_v28 = vmul.f32 %v1914_v14, %v1914_v14  ;;  %v277_v29 = vsel %vm269_vm1, %v1916_v15, 0.0  ;;  %v296_v30 = vmul.f32 %v1916_v15, %v1916_v15  ;;  %v279_v37 = vsel %vm269_vm1, %v1924_v20, 0.0 }
  0x17   : > { %v274_v27 = vadd.f32 %v273_v19, %v272_v21  ;;  %v300_v31 = vsel %vm269_vm1, %v292_v23, 0.0  ;;  %v301_v32 = vsel %vm269_vm1, %v293_v24, 0.0  ;;  %v303_v35 = vsel %vm269_vm1, %v294_v25, 0.0  ;;  %v474_v25 = vld [vmem:[%s2189_s1] sm:$0x1] }
  0x18   : > { %v302_v34 = vadd.f32 %v301_v32, %v300_v31  ;;  %v297_v38 = vmul.f32 %v1924_v20, %v1924_v20  ;;  %v305_v39 = vsel %vm269_vm1, %v295_v28, 0.0  ;;  %v281_v42 = vsel %vm269_vm1, %v1934_v26, 0.0 }
  0x19   : > { %v276_v33 = vadd.f32 %v275_v22, %v274_v27  ;;  %v298_v43 = vmul.f32 %v1934_v26, %v1934_v26  ;;  %v307_v44 = vsel %vm269_vm1, %v296_v30, 0.0  ;;  %v283_v47 = vsel %vm269_vm1, %v1945_v36, 0.0  ;;  %v478_v30 = vld [vmem:[%s2190_s2] sm:$0x1] }
  0x1a   : > { %v304_v41 = vadd.f32 %v303_v35, %v302_v34  ;;  %v299_v48 = vmul.f32 %v1945_v36, %v1945_v36  ;;  %v309_v49 = vsel %vm269_vm1, %v297_v38, 0.0  ;;  %v1838_v8 = vmov 0  }
  0x1b   : > { %v278_v40 = vadd.f32 %v277_v29, %v276_v33  ;;  %v311_v52 = vsel %vm269_vm1, %v298_v43, 0.0  ;;  %566 = vst.msk [vmem:[#allocation2] sm:$0xf] %vm565_vm2, %v1838_v8  ;;  %569 = vst.msk [vmem:[#allocation2 + $0x8] sm:$0xf] %vm565_vm2, %v1838_v8  ;;  %v482_v23 = vlaneseq }
  0x1c   : > { %v306_v46 = vadd.f32 %v305_v39, %v304_v41  ;;  %v313_v55 = vsel %vm269_vm1, %v299_v48, 0.0  ;;  %568 = vst.msk [vmem:[#allocation2 + $0x4] sm:$0x1] %vm567_vm3, %v1838_v8  ;;  %570 = vst.msk [vmem:[#allocation2 + $0xc] sm:$0x1] %vm567_vm3, %v1838_v8 }
  0x1d   : > { %v280_v45 = vadd.f32 %v279_v37, %v278_v40  ;;  %571 = vst.msk [vmem:[#allocation2 + $0x10] sm:$0xf] %vm565_vm2, %v1838_v8  ;;  %573 = vst.msk [vmem:[#allocation2 + $0x18] sm:$0xf] %vm565_vm2, %v1838_v8  ;;  %v483_v24 = vshrl.u32 %v482_v23, 7 }
  0x1e   : > { %v308_v51 = vadd.f32 %v307_v44, %v306_v46  ;;  %572 = vst.msk [vmem:[#allocation2 + $0x14] sm:$0x1] %vm567_vm3, %v1838_v8  ;;  %574 = vst.msk [vmem:[#allocation2 + $0x1c] sm:$0x1] %vm567_vm3, %v1838_v8 }
  0x1f   : > { %v282_v50 = vadd.f32 %v281_v42, %v280_v45  ;;  %575 = vst.msk [vmem:[#allocation2 + $0x20] sm:$0xf] %vm565_vm2, %v1838_v8  ;;  %577 = vst.msk [vmem:[#allocation2 + $0x28] sm:$0xf] %vm565_vm2, %v1838_v8  ;;  %v484_v27 = vsub.s32 0, %v483_v24 }
  0x20   : > { %v310_v54 = vadd.f32 %v309_v49, %v308_v51  ;;  %576 = vst.msk [vmem:[#allocation2 + $0x24] sm:$0x1] %vm567_vm3, %v1838_v8  ;;  %578 = vst.msk [vmem:[#allocation2 + $0x2c] sm:$0x1] %vm567_vm3, %v1838_v8 }
  0x21   : > { %v284_v53 = vadd.f32 %v283_v47, %v282_v50  ;;  %579 = vst.msk [vmem:[#allocation2 + $0x30] sm:$0xf] %vm565_vm2, %v1838_v8  ;;  %581 = vst.msk [vmem:[#allocation2 + $0x38] sm:$0xf] %vm565_vm2, %v1838_v8 }
  0x22   : > { %v312_v57 = vadd.f32 %v311_v52, %v310_v54  ;;  %580 = vst.msk [vmem:[#allocation2 + $0x34] sm:$0x1] %vm567_vm3, %v1838_v8  ;;  %582 = vst.msk [vmem:[#allocation2 + $0x3c] sm:$0x1] %vm567_vm3, %v1838_v8 }
  0x23   : > { %v285_v56 = vsel %vm269_vm1, %v284_v53, 0.0  ;;  %583 = vst.msk [vmem:[#allocation2 + $0x40] sm:$0xf] %vm565_vm2, %v1838_v8  ;;  %585 = vst.msk [vmem:[#allocation2 + $0x48] sm:$0xf] %vm565_vm2, %v1838_v8 }
  0x24   : > { %v286_v58 = vrot.slane %v285_v56, 4  ;;  %v314_v59 = vadd.f32 %v313_v55, %v312_v57  ;;  %584 = vst.msk [vmem:[#allocation2 + $0x44] sm:$0x1] %vm567_vm3, %v1838_v8  ;;  %586 = vst.msk [vmem:[#allocation2 + $0x4c] sm:$0x1] %vm567_vm3, %v1838_v8 }
  0x26   : > { %v287_v60 = vadd.f32 %v286_v58, %v285_v56  ;;  %v315_v61 = vsel %vm269_vm1, %v314_v59, 0.0 }
  0x27   : > { %v316_v63 = vrot.slane %v315_v61, 4 }
  0x28   : > { %v288_v62 = vrot.slane %v287_v60, 2 }
  0x29   : > { %v317_v1 = vadd.f32 %v316_v63, %v315_v61 }
  0x2a   : > { %v289_v0 = vadd.f32 %v288_v62, %v287_v60 }
  0x2b   : > { %v318_v3 = vrot.slane %v317_v1, 2 }
  0x2c   : > { %v290_v2 = vrot.slane %v289_v0, 1 }
  0x2d   : > { %v319_v5 = vadd.f32 %v318_v3, %v317_v1 }
  0x2e   : > { %v291_v4 = vadd.f32 %v290_v2, %v289_v0 }
  0x2f   : > { %v320_v6 = vrot.slane %v319_v5, 1 }
  0x30   : > { %1642 = vmatmul.mubr.msk.f32.vlgmr.msra.gmra.mrb[0].mxu0 %vm269_vm1, %v291_v4 }
  0x31   : > { %v321_v7 = vadd.f32 %v320_v6, %v319_v5 }
  0x33   : > { %1653 = vmatmul.mubr.msk.f32.vlgmr.msra.gmra.mrb[0].mxu1 %vm269_vm1, %v321_v7 }
 0x103   : > { %v395_v10 = vpop.f32.mrb[0].mxu0 }
 0x104   : > { %v472_v16 = vmul.f32 %v395_v10, %v395_v10  ;;  %v1643_v17 = vpop.f32.mrb[1].mxu0 }
 0x106   : > { %v468_v18 = vpop.f32.mrb[0].mxu1 }
 0x107   : > { %v473_v19 = vsub.f32 %v468_v18, %v472_v16  ;;  %v1654_v21 = vpop.f32.mrb[1].mxu1 }
 0x109   : > { %v475_v22 = vadd.f32 1e-05, %v473_v19 }
 0x10b   : > { %1761 = vrsqrt.f32 %v475_v22 }
 0x115   : > { %v1762_v28 = vpop.eup %1761 }
 0x116   : > { %v477_v29 = vmul.f32 %v1762_v28, %v474_v25 }
 0x118   : > { %v479_v31 = vmul.f32 %v477_v29, %v395_v10  ;;  %v485_v32 = vrot.slane %v477_v29, %v484_v27 }
 0x11a   : > { %v480_v33 = vsub.f32 %v478_v30, %v479_v31  ;;  %v487_v34 = vmul.f32 %v1908_v11, %v485_v32  ;;  %v488_v35 = vmul.f32 %v1910_v12, %v485_v32  ;;  %v489_v37 = vmul.f32 %v1912_v13, %v485_v32 }
 0x11b   : > { %v490_v38 = vmul.f32 %v1914_v14, %v485_v32  ;;  %v491_v40 = vmul.f32 %v1916_v15, %v485_v32  ;;  %v492_v41 = vmul.f32 %v1924_v20, %v485_v32  ;;  %v493_v42 = vmul.f32 %v1934_v26, %v485_v32 }
 0x11c   : > { %v499_v39 = vrot.slane %v480_v33, %v484_v27  ;;  %v494_v43 = vmul.f32 %v1945_v36, %v485_v32 }
 0x11e   : > { %v501_v44 = vadd.f32 %v499_v39, %v487_v34  ;;  %v502_v45 = vadd.f32 %v499_v39, %v488_v35  ;;  %v503_v46 = vadd.f32 %v499_v39, %v489_v37  ;;  %v504_v47 = vadd.f32 %v499_v39, %v490_v38 }
 0x11f   : > { %v505_v11 = vadd.f32 %v499_v39, %v491_v40  ;;  %v506_v48 = vadd.f32 %v499_v39, %v492_v41  ;;  %v2008_v12 = vadd.f32 %v499_v39, %v493_v42  ;;  %v2010_v13 = vadd.f32 %v499_v39, %v494_v43 }
 0x120   : > { %v1469_v14 = vmul.f32 -1.442695, %v501_v44  ;;  %v1470_v49 = vmul.f32 -1.442695, %v502_v45  ;;  %v1471_v50 = vmul.f32 -1.442695, %v503_v46 }
 0x121   : > { %v1472_v15 = vmul.f32 -1.442695, %v504_v47  ;;  %v1473_v20 = vmul.f32 -1.442695, %v505_v11  ;;  %v1474_v26 = vmul.f32 -1.442695, %v506_v48 }
 0x122   : > { %1763 = vpow2.f32 %v1469_v14  ;;  %v1475_v36 = vmul.f32 -1.442695, %v2008_v12  ;;  %v1476_v51 = vmul.f32 -1.442695, %v2010_v13 }
 0x123   : > { %1765 = vpow2.f32 %v1470_v49 }
 0x124   : > { %1767 = vpow2.f32 %v1471_v50 }
 0x125   : > { %1769 = vpow2.f32 %v1472_v15 }
 0x126   : > { %1771 = vpow2.f32 %v1473_v20  ;;  %v703_v20 = vld [vmem:[#allocation2 + $0x8] sm:$0xf] }
 0x127   : > { %1773 = vpow2.f32 %v1474_v26 }
 0x128   : > { %1775 = vpow2.f32 %v1475_v36 }
 0x129   : > { %1777 = vpow2.f32 %v1476_v51 }
 0x12c   : > { %v1764_v52 = vpop.eup %1763 }
 0x12d   : > { %v1766_v53 = vpop.eup %1765  ;;  %v533_v54 = vadd.f32 1.0, %v1764_v52 }
 0x12e   : > { %v1768_v55 = vpop.eup %1767  ;;  %v534_v56 = vadd.f32 1.0, %v1766_v53  ;;  %v709_v53 = vld [vmem:[#allocation2 + $0xc] sm:$0x1] }
 0x12f   : > { %v1770_v57 = vpop.eup %1769  ;;  %v535_v58 = vadd.f32 1.0, %v1768_v55  ;;  %1779 = vrcp.f32 %v533_v54 }
 0x130   : > { %v1772_v59 = vpop.eup %1771  ;;  %v536_v60 = vadd.f32 1.0, %v1770_v57  ;;  %1781 = vrcp.f32 %v534_v56 }
 0x131   : > { %v1774_v61 = vpop.eup %1773  ;;  %v537_v62 = vadd.f32 1.0, %v1772_v59  ;;  %1783 = vrcp.f32 %v535_v58  ;;  %v712_v59 = vld [vmem:[#allocation2 + $0x10] sm:$0xf] }
 0x132   : > { %v1776_v63 = vpop.eup %1775  ;;  %v538_v0 = vadd.f32 1.0, %v1774_v61  ;;  %1785 = vrcp.f32 %v536_v60  ;;  %v715_v60 = vld [vmem:[#allocation2 + $0x14] sm:$0x1]  ;;  %v718_v61 = vld [vmem:[#allocation2 + $0x18] sm:$0xf] }
 0x133   : > { %v1778_v1 = vpop.eup %1777  ;;  %v539_v2 = vadd.f32 1.0, %v1776_v63  ;;  %1787 = vrcp.f32 %v537_v62  ;;  %v721_v62 = vld [vmem:[#allocation2 + $0x1c] sm:$0x1] }
 0x134   : > { %v540_v3 = vadd.f32 1.0, %v1778_v1  ;;  %1789 = vrcp.f32 %v538_v0 }
 0x135   : > { %1791 = vrcp.f32 %v539_v2 }
 0x136   : > { %1793 = vrcp.f32 %v540_v3  ;;  %v724_v3 = vld [vmem:[#allocation2 + $0x20] sm:$0xf] }
 0x139   : > { %v1780_v4 = vpop.eup %1779 }
 0x13a   : > { %v1782_v5 = vpop.eup %1781  ;;  %v557_v6 = vmul.f32 %v1780_v4, %v501_v44  ;;  %v727_v4 = vld [vmem:[#allocation2 + $0x24] sm:$0x1] }
 0x13b   : > { %v1784_v7 = vpop.eup %1783  ;;  %v558_v8 = vmul.f32 %v1782_v5, %v502_v45  ;;  %v730_v5 = vld [vmem:[#allocation2 + $0x28] sm:$0xf] }
 0x13c   : > { %v1786_v10 = vpop.eup %1785  ;;  %v559_v16 = vmul.f32 %v1784_v7, %v503_v46  ;;  %v1568_v17 = vpack.c.bf16 %v557_v6, %v557_v6 }
 0x13d   : > { %v1788_v18 = vpop.eup %1787  ;;  %v560_v19 = vmul.f32 %v1786_v10, %v504_v47  ;;  %v1569_v21 = vpack.c.bf16 %v558_v8, %v558_v8 }
 0x13e   : > { %v1790_v22 = vpop.eup %1789  ;;  %v561_v23 = vmul.f32 %v1788_v18, %v505_v11  ;;  %v1570_v24 = vpack.c.bf16 %v559_v16, %v559_v16  ;;  %v620_v25 = vshrl.u32 %v1568_v17, 16  ;;  %v623_v27 = vshll.u32 %v1568_v17, 16  ;;  %v733_v16 = vld [vmem:[#allocation2 + $0x2c] sm:$0x1] }
 0x13f   : > { %v1792_v28 = vpop.eup %1791  ;;  %v562_v29 = vmul.f32 %v1790_v22, %v506_v48  ;;  %v1571_v30 = vpack.c.bf16 %v560_v19, %v560_v19  ;;  %v628_v31 = vshrl.u32 %v1569_v21, 16  ;;  %v631_v32 = vshll.u32 %v1569_v21, 16  ;;  %v736_v22 = vld [vmem:[#allocation2 + $0x30] sm:$0xf] }
 0x140   : > { %v1794_v33 = vpop.eup %1793  ;;  %v563_v34 = vmul.f32 %v1792_v28, %v2008_v12  ;;  %v1572_v35 = vpack.c.bf16 %v561_v23, %v561_v23  ;;  %v622_v37 = vrot.slane %v620_v25, 7  ;;  %v636_v38 = vshrl.u32 %v1570_v24, 16  ;;  %v739_v23 = vld [vmem:[#allocation2 + $0x34] sm:$0x1] }
 0x141   : > { %v564_v39 = vmul.f32 %v1794_v33, %v2010_v13  ;;  %v1573_v40 = vpack.c.bf16 %v562_v29, %v562_v29  ;;  %v630_v41 = vrot.slane %v628_v31, 7  ;;  %v639_v42 = vshll.u32 %v1570_v24, 16  ;;  %v742_v29 = vld [vmem:[#allocation2 + $0x38] sm:$0xf] }
 0x142   : > { %v1574_v43 = vpack.c.bf16 %v563_v34, %v563_v34  ;;  %v625_v44 = vor.u32 %v623_v27, %v622_v37  ;;  %v626_v45 = vrot.slane %v622_v37, 4  ;;  %v638_v46 = vrot.slane %v636_v38, 7  ;;  %v751_v37 = vld [vmem:[#allocation2 + $0x44] sm:$0x1] }
 0x143   : > { %v1575_v47 = vpack.c.bf16 %v564_v39, %v564_v39  ;;  %v633_v11 = vor.u32 %v631_v32, %v630_v41  ;;  %v634_v48 = vrot.slane %v630_v41, 4  ;;  %v644_v14 = vshrl.u32 %v1571_v30, 16 }
 0x144   : > { %v641_v49 = vor.u32 %v639_v42, %v638_v46  ;;  %v642_v50 = vrot.slane %v638_v46, 4  ;;  %v647_v15 = vshll.u32 %v1571_v30, 16  ;;  %v652_v12 = vshrl.u32 %v1572_v35, 16  ;;  %v745_v30 = vld [vmem:[#allocation2 + $0x3c] sm:$0x1] }
 0x145   : > { %v646_v26 = vrot.slane %v644_v14, 7  ;;  %v655_v36 = vshll.u32 %v1572_v35, 16  ;;  %v660_v51 = vshrl.u32 %v1573_v40, 16  ;;  %v663_v13 = vshll.u32 %v1573_v40, 16  ;;  %v748_v35 = vld [vmem:[#allocation2 + $0x40] sm:$0xf] }
 0x146   : > { %v654_v54 = vrot.slane %v652_v12, 7  ;;  %v668_v55 = vshrl.u32 %v1574_v43, 16  ;;  %v671_v56 = vshll.u32 %v1574_v43, 16  ;;  %v676_v57 = vshrl.u32 %v1575_v47, 16 }
 0x147   : > { %v649_v63 = vor.u32 %v647_v15, %v646_v26  ;;  %v650_v0 = vrot.slane %v646_v26, 4  ;;  %v662_v1 = vrot.slane %v660_v51, 7  ;;  %v679_v2 = vshll.u32 %v1575_v47, 16 }
 0x148   : > { %v657_v6 = vor.u32 %v655_v36, %v654_v54  ;;  %v658_v7 = vrot.slane %v654_v54, 4  ;;  %v670_v8 = vrot.slane %v668_v55, 7  ;;  %v678_v10 = vrot.slane %v676_v57, 7 }
 0x149   : > { %v665_v17 = vor.u32 %v663_v13, %v662_v1  ;;  %v666_v18 = vrot.slane %v662_v1, 4  ;;  %v704_v19 = vsel %vm2018_vm6, %v625_v44, %v703_v20  ;;  %v710_v21 = vsel %vm2024_vm7, %v626_v45, %v709_v53 }
 0x14a   : > { %v673_v24 = vor.u32 %v671_v56, %v670_v8  ;;  %v674_v25 = vrot.slane %v670_v8, 4  ;;  %v681_v27 = vor.u32 %v679_v2, %v678_v10  ;;  %v682_v28 = vrot.slane %v678_v10, 4  ;;  %705 = vst [vmem:[#allocation2 + $0x8] sm:$0xf] %v704_v19  ;;  %711 = vst [vmem:[#allocation2 + $0xc] sm:$0x1] %v710_v21 }
 0x14b   : > { %v713_v31 = vsel %vm2018_vm6, %v633_v11, %v712_v59  ;;  %v716_v32 = vsel %vm2024_vm7, %v634_v48, %v715_v60  ;;  %v719_v33 = vsel %vm2018_vm6, %v641_v49, %v718_v61  ;;  %v722_v34 = vsel %vm2024_vm7, %v642_v50, %v721_v62 }
 0x14c   : > { %714 = vst [vmem:[#allocation2 + $0x10] sm:$0xf] %v713_v31  ;;  %717 = vst [vmem:[#allocation2 + $0x14] sm:$0x1] %v716_v32  ;;  %v725_v38 = vsel %vm2018_vm6, %v649_v63, %v724_v3  ;;  %v728_v39 = vsel %vm2024_vm7, %v650_v0, %v727_v4  ;;  %v731_v40 = vsel %vm2018_vm6, %v657_v6, %v730_v5 }
 0x14d   : > { %720 = vst [vmem:[#allocation2 + $0x18] sm:$0xf] %v719_v33  ;;  %723 = vst [vmem:[#allocation2 + $0x1c] sm:$0x1] %v722_v34  ;;  %v734_v41 = vsel %vm2024_vm7, %v658_v7, %v733_v16  ;;  %v737_v42 = vsel %vm2018_vm6, %v665_v17, %v736_v22  ;;  %v740_v43 = vsel %vm2024_vm7, %v666_v18, %v739_v23 }
 0x14e   : > { %726 = vst [vmem:[#allocation2 + $0x20] sm:$0xf] %v725_v38  ;;  %729 = vst [vmem:[#allocation2 + $0x24] sm:$0x1] %v728_v39  ;;  %v743_v44 = vsel %vm2018_vm6, %v673_v24, %v742_v29  ;;  %v746_v45 = vsel %vm2024_vm7, %v674_v25, %v745_v30  ;;  %v749_v46 = vsel %vm2018_vm6, %v681_v27, %v748_v35 }
 0x14f   : > { %732 = vst [vmem:[#allocation2 + $0x28] sm:$0xf] %v731_v40  ;;  %735 = vst [vmem:[#allocation2 + $0x2c] sm:$0x1] %v734_v41  ;;  %v752_v47 = vsel %vm2024_vm7, %v682_v28, %v751_v37 }
 0x150   : > { %738 = vst [vmem:[#allocation2 + $0x30] sm:$0xf] %v737_v42  ;;  %741 = vst [vmem:[#allocation2 + $0x34] sm:$0x1] %v740_v43 }
 0x151   : > { %744 = vst [vmem:[#allocation2 + $0x38] sm:$0xf] %v743_v44  ;;  %747 = vst [vmem:[#allocation2 + $0x3c] sm:$0x1] %v746_v45 }
 0x152   : > { %750 = vst [vmem:[#allocation2 + $0x40] sm:$0xf] %v749_v46  ;;  %753 = vst [vmem:[#allocation2 + $0x44] sm:$0x1] %v752_v47 }
 0x153 LB: >> { %v1795_v11 = vld [vmem:[%s2192_s4 + $0x10] sm:$0xff]   ;;  %v1839_v48 = vmov 0.0   ;;  %v1796_v14 = vld [vmem:[%s2192_s4] sm:$0xff]   ;;  %v1797_v49 = vld [vmem:[%s2192_s4 + $0x18] sm:$0xff]   ;;  %vm1840_vm8 = vmmov 0   ;;  %s1576_s30 = sshll.u32 %s1833_s23, 3  ;;  %s1833_s23 = sphi %s2060_s23, %s761_s23  }
 0x154   : >> { %1655 = vmatprep.subr.bf16.mxu0 %v1839_v48  ;;  %1663 = vmatprep.subr.bf16.mxu1 %v1839_v48  ;;  %v1798_v50 = vld [vmem:[%s2192_s4 + $0x8] sm:$0xff]   ;;  %s2086_s9 = scalar_lea.vmem [#allocation2], %s1576_s30  ;;  %v1801_v51 = vld [vmem:[%s2192_s4 + $0x30] sm:$0xff]   ;;  %v1800_v53 = vld [vmem:[%s2192_s4 + $0x20] sm:$0xff]  }
 0x155   : >> { %1656 = vmatpush3.bf16.msra.mxu0 %v1795_v11  ;;  %1659 = vmatprep.mubr.msk.bf16.mxu0 %vm1840_vm8, %v1839_v48  ;;  %v1803_v55 = vld [vmem:[%s2192_s4 + $0x38] sm:$0xff]   ;;  %v1802_v56 = vld [vmem:[%s2192_s4 + $0x28] sm:$0xff]   ;;  %v1806_v61 = vld [vmem:[%s2192_s4 + $0x50] sm:$0xff]  }
 0x156   : >> { %1664 = vmatpush3.bf16.msra.mxu1 %v1796_v14  ;;  %1657 = vmatprep.subr.bf16.mxu0 %v1839_v48  ;;  %v1805_v2 = vld [vmem:[%s2192_s4 + $0x40] sm:$0xff]   ;;  %v1808_v3 = vld [vmem:[%s2192_s4 + $0x58] sm:$0xff]   ;;  %v1807_v16 = vld [vmem:[%s2192_s4 + $0x48] sm:$0xff]  }
 0x157   : >> { %1665 = vmatprep.subr.bf16.mxu1 %v1839_v48  ;;  %1667 = vmatprep.mubr.msk.bf16.mxu1 %vm1840_vm8, %v1839_v48  ;;  %v1812_v18 = vld [vmem:[%s2192_s4 + $0x70] sm:$0xff]   ;;  %v1810_v22 = vld [vmem:[%s2192_s4 + $0x60] sm:$0xff]   ;;  %v1814_v25 = vld [vmem:[%s2192_s4 + $0x78] sm:$0xff]  }
 0x158   : >> { %v1813_v27 = vld [vmem:[%s2192_s4 + $0x68] sm:$0xff]   ;;  %v1815_v30 = vld [vmem:[%s2192_s4 + $0x80] sm:$0xff]  }
 0x159   : >> { %v765_v15 = vld [vmem:[%s2086_s9] sm:$0xf]  ;;  %v770_v12 = vld [vmem:[%s2086_s9 + $0x4] sm:$0x1]  ;;  %1658 = vmatpush3.bf16.msra.mxu0 %v1797_v49  ;;  %v1507_v58 = vld [vmem:[%s2086_s9 + $0x8] sm:$0xf] }
 0x15a   : >> { %v1491_v20 = vcombine.low %v765_v15, %v770_v12  ;;  %1666 = vmatpush3.bf16.msra.mxu1 %v1798_v50  ;;  %1671 = vmatprep.subr.bf16.mxu0 %v1839_v48  ;;  %v898_v13 = vld [vmem:[%s2086_s9] sm:$0xe]  ;;  %v1515_v59 = vld [vmem:[%s2086_s9 + $0x8] sm:$0xf]  ;;  %v1516_v60 = vld [vmem:[%s2086_s9 + $0xc] sm:$0x1] }
 0x15b   : >> { %1679 = vmatprep.subr.bf16.mxu1 %v1839_v48  ;;  %v1502_v57 = vcombine.low %v898_v13, %v770_v12  ;;  %v1521_v62 = vcombine.low %v1515_v59, %v1516_v60  ;;  %v1525_v63 = vld [vmem:[%s2086_s9 + $0x8] sm:$0xe]  ;;  %v1543_v5 = vld [vmem:[%s2086_s9 + $0x10] sm:$0xf]  ;;  %v1544_v6 = vld [vmem:[%s2086_s9 + $0x14] sm:$0x1] }
 0x15c   : >> { %v782_v26 = vshrl.u32 %v1491_v20, 16  ;;  %v784_v36 = vshll.u32 %v1491_v20, 16  ;;  %v1530_v4 = vcombine.low %v1525_v63, %v1516_v60  ;;  %v1549_v10 = vcombine.low %v1543_v5, %v1544_v6  ;;  %v1535_v29 = vld [vmem:[%s2086_s9 + $0x10] sm:$0xf]  ;;  %v1817_v33 = vld [vmem:[%s2192_s4 + $0x88] sm:$0xff]  }
 0x15d   : >> { %1668 = vmatmul.mubr.msk.bf16.vlgmr.msra.gmra.mrb[0].mxu1 %vm269_vm1, %v765_v15  ;;  %v907_v0 = vrot.slane %v1502_v57, 1  ;;  %v1045_v1 = vshll.u32 %v1521_v62, 16  ;;  %v1043_v7 = vshrl.u32 %v1521_v62, 16  ;;  %v1553_v31 = vld [vmem:[%s2086_s9 + $0x10] sm:$0xe]  ;;  %s1563_s9 = sshll.u32 %s1833_s23, 2 }
 0x15e   : >> { %v786_v52 = vrot.slane %v784_v36, 1  ;;  %1680 = vmatpush3.bf16.msra.mxu1 %v1801_v51  ;;  %1683 = vmatprep.mubr.msk.bf16.mxu1 %vm1840_vm8, %v1839_v48  ;;  %v1114_v17 = vrot.slane %v1530_v4, 1  ;;  %v1252_v19 = vshll.u32 %v1549_v10, 16  ;;  %v1250_v23 = vshrl.u32 %v1549_v10, 16  ;;  %s1385_s19 = scalar_lea.vmem %s1906_s14, %s1563_s9  ;;  %s761_s23 = sadd.s32 1, %s1833_s23  }
 0x15f   : >> { %1681 = vmatprep.subr.bf16.mxu1 %v1839_v48  ;;  %v1047_v8 = vrot.slane %v1045_v1, 1  ;;  %v1558_v32 = vcombine.low %v1553_v31, %v1544_v6  ;;  %p758_p4 = scmp.ge.s32.totalorder %s761_s23, 8  }
 0x160   : >> { %v787_v54 = vor.u32 %v786_v52, %v782_v26  ;;  %v1254_v24 = vrot.slane %v1252_v19, 1 }
 0x161   : >> { %v1048_v21 = vor.u32 %v1047_v8, %v1043_v7  ;;  %v1321_v34 = vrot.slane %v1558_v32, 1 }
 0x162   : >> { %1660 = vmatmul.mubr.msk.bf16.vlgmr.msra.gmra.mrb[0].mxu0 %vm269_vm1, %v787_v54  ;;  %1682 = vmatpush3.bf16.msra.mxu1 %v1803_v55  ;;  %v1255_v28 = vor.u32 %v1254_v24, %v1250_v23 }
 0x163   : >> { %1672 = vmatpush3.bf16.msra.mxu0 %v1800_v53  ;;  %1675 = vmatprep.mubr.msk.bf16.mxu0 %vm1840_vm8, %v1839_v48 }
 0x164   : >> { %1673 = vmatprep.subr.bf16.mxu0 %v1839_v48  ;;  %1695 = vmatprep.subr.bf16.mxu1 %v1839_v48 }
 0x165   : >> { %1684 = vmatmul.mubr.msk.bf16.vlgmr.msra.gmra.mrb[4].mxu1 %vm269_vm1, %v1507_v58 }
 0x166   : >> { %1696 = vmatpush3.bf16.msra.mxu1 %v1806_v61  ;;  %1699 = vmatprep.mubr.msk.bf16.mxu1 %vm1840_vm8, %v1839_v48 }
 0x167   : >> { %1674 = vmatpush3.bf16.msra.mxu0 %v1802_v56  ;;  %1697 = vmatprep.subr.bf16.mxu1 %v1839_v48 }
 0x168   : >> { %1687 = vmatprep.subr.bf16.mxu0 %v1839_v48 }
 0x16a   : >> { %1676 = vmatmul.mubr.msk.bf16.vlgmr.msra.gmra.mrb[4].mxu0 %vm269_vm1, %v907_v0  ;;  %1698 = vmatpush3.bf16.msra.mxu1 %v1808_v3 }
 0x16b   : >> { %1688 = vmatpush3.bf16.msra.mxu0 %v1805_v2  ;;  %1691 = vmatprep.mubr.msk.bf16.mxu0 %vm1840_vm8, %v1839_v48 }
 0x16c   : >> { %1689 = vmatprep.subr.bf16.mxu0 %v1839_v48  ;;  %1711 = vmatprep.subr.bf16.mxu1 %v1839_v48 }
 0x16d   : >> { %1700 = vmatmul.mubr.msk.bf16.vlgmr.msra.gmra.mrb[8].mxu1 %vm269_vm1, %v1114_v17 }
 0x16e   : >> { %1712 = vmatpush3.bf16.msra.mxu1 %v1812_v18  ;;  %1715 = vmatprep.mubr.msk.bf16.mxu1 %vm1840_vm8, %v1839_v48 }
 0x16f   : >> { %1690 = vmatpush3.bf16.msra.mxu0 %v1807_v16  ;;  %1713 = vmatprep.subr.bf16.mxu1 %v1839_v48 }
 0x170   : >> { %1703 = vmatprep.subr.bf16.mxu0 %v1839_v48 }
 0x172   : >> { %1692 = vmatmul.mubr.msk.bf16.vlgmr.msra.gmra.mrb[8].mxu0 %vm269_vm1, %v1048_v21  ;;  %1714 = vmatpush3.bf16.msra.mxu1 %v1814_v25 }
 0x173   : >> { %1704 = vmatpush3.bf16.msra.mxu0 %v1810_v22  ;;  %1707 = vmatprep.mubr.msk.bf16.mxu0 %vm1840_vm8, %v1839_v48 }
 0x174   : >> { %1705 = vmatprep.subr.bf16.mxu0 %v1839_v48 }
 0x175   : >> { %1716 = vmatmul.mubr.msk.bf16.vlgmr.msra.gmra.mrb[12].mxu1 %vm269_vm1, %v1255_v28 }
 0x177   : >> { %1706 = vmatpush3.bf16.msra.mxu0 %v1813_v27 }
 0x178   : >> { %1719 = vmatprep.subr.bf16.mxu0 %v1839_v48 }
 0x17a   : >> { %1708 = vmatmul.mubr.msk.bf16.vlgmr.msra.gmra.mrb[12].mxu0 %vm269_vm1, %v1535_v29 }
 0x17b   : >> { %1720 = vmatpush3.bf16.msra.mxu0 %v1815_v30  ;;  %1723 = vmatprep.mubr.msk.bf16.mxu0 %vm1840_vm8, %v1839_v48 }
 0x17c   : >> { %1721 = vmatprep.subr.bf16.mxu0 %v1839_v48 }
 0x17f   : >> { %1722 = vmatpush3.bf16.msra.mxu0 %v1817_v33 }
 0x182   : >> { %1724 = vmatmul.mubr.msk.bf16.vlgmr.msra.gmra.mrb[16].mxu0 %vm269_vm1, %v1321_v34 }
 0x230   : >> { %v892_v35 = vpop.f32.mrb[0].mxu1 }
 0x231   : >> { %v1669_v37 = vpop.f32.mrb[1].mxu1 }
 0x232   : >> { %v895_v38 = vpop.f32.mrb[2].mxu1 }
 0x233   : >> { %v1670_v40 = vpop.f32.mrb[3].mxu1 }
 0x235   : >> { %v837_v39 = vpop.f32.mrb[0].mxu0 }
 0x236   : >> { %v893_v41 = vadd.f32 %v892_v35, %v837_v39  ;;  %v1661_v42 = vpop.f32.mrb[1].mxu0 }
 0x237   : >> { %v840_v43 = vpop.f32.mrb[2].mxu0 }
 0x238   : >> { %v1662_v44 = vpop.f32.mrb[3].mxu0  ;;  %v1023_v45 = vpop.f32.mrb[4].mxu1 }
 0x239   : >> { %v1685_v46 = vpop.f32.mrb[5].mxu1 }
 0x23a   : >> { %v1026_v47 = vpop.f32.mrb[6].mxu1 }
 0x23b   : >> { %v1686_v14 = vpop.f32.mrb[7].mxu1 }
 0x23d   : >> { %v957_v11 = vpop.f32.mrb[4].mxu0 }
 0x23e   : >> { %v963_v49 = vadd.f32 %v957_v11, %v893_v41  ;;  %v1677_v48 = vpop.f32.mrb[5].mxu0 }
 0x23f   : >> { %v960_v50 = vpop.f32.mrb[6].mxu0 }
 0x240   : >> { %v1029_v15 = vadd.f32 %v1023_v45, %v963_v49  ;;  %v1678_v12 = vpop.f32.mrb[7].mxu0  ;;  %v1164_v20 = vpop.f32.mrb[8].mxu1 }
 0x241   : >> { %v1701_v26 = vpop.f32.mrb[9].mxu1 }
 0x242   : >> { %v1167_v36 = vpop.f32.mrb[10].mxu1 }
 0x243   : >> { %v1702_v13 = vpop.f32.mrb[11].mxu1 }
 0x245   : >> { %v1098_v51 = vpop.f32.mrb[8].mxu0 }
 0x246   : >> { %v1104_v52 = vadd.f32 %v1098_v51, %v1029_v15  ;;  %v1693_v53 = vpop.f32.mrb[9].mxu0 }
 0x247   : >> { %v1101_v54 = vpop.f32.mrb[10].mxu0 }
 0x248   : >> { %v1170_v55 = vadd.f32 %v1164_v20, %v1104_v52  ;;  %v1694_v56 = vpop.f32.mrb[11].mxu0  ;;  %v1305_v57 = vpop.f32.mrb[12].mxu1 }
 0x249   : >> { %v1717_v58 = vpop.f32.mrb[13].mxu1 }
 0x24a   : >> { %v1308_v59 = vpop.f32.mrb[14].mxu1 }
 0x24b   : >> { %v1718_v61 = vpop.f32.mrb[15].mxu1 }
 0x24d   : >> { %v1230_v60 = vpop.f32.mrb[12].mxu0 }
 0x24e   : >> { %v1236_v62 = vadd.f32 %v1230_v60, %v1170_v55  ;;  %v1709_v63 = vpop.f32.mrb[13].mxu0 }
 0x24f   : >> { %v1233_v0 = vpop.f32.mrb[14].mxu0 }
 0x250   : >> { %v1311_v1 = vadd.f32 %v1305_v57, %v1236_v62  ;;  %v1710_v2 = vpop.f32.mrb[15].mxu0 }
 0x255   : >> { %v1371_v3 = vpop.f32.mrb[16].mxu0 }
 0x256   : >> { %v1377_v4 = vadd.f32 %v1371_v3, %v1311_v1  ;;  %v1725_v5 = vpop.f32.mrb[17].mxu0  ;;  %760 = sbr.rel (!%p758_p4) target bundleno = 339 (0x153), region = 95 }
 0x257   : >> { %v1374_v6 = vpop.f32.mrb[18].mxu0 }
 0x258   : >> { %v1382_v7 = vadd.f32 %v1992_v9, %v1377_v4  ;;  %v1726_v8 = vpop.f32.mrb[19].mxu0 }
 0x25a   : >> { %v1383_v10 = vpack.c.bf16 %v1382_v7, %v1382_v7 }
 0x25c   : >> { %1386 = vst.msk [vmem:[%s1385_s19] sm:$0xf] %vm565_vm2, %v1383_v10 }
 0x25d PF: > { %s16_s21 = sadd.s32 1, %s1829_s21  }
 0x25e   : > { %p13_p5 = scmp.ge.s32.totalorder %s16_s21, 4  }
 0x260   :  { %15 = sbr.rel (!%p13_p5) target bundleno = 1 (0x1), region = 106 }

// kernel: block_forward.9
= control target key start
LH: loop header
LB: loop body
LE: loop exit
PB: predicated region body
PF: predicated region fallthrough
CT: control target
= control target key end

     0   :  { %s1951_s24 = smov 0   ;;  %s2273_s0 = inlined_call_operand.vmem [shape: bf16[2,8,8,32], index: 0, kind: input, shape index: {}]   ;;  %s2274_s1 = inlined_call_operand.vmem [shape: f32[1,32], index: 1, kind: input, shape index: {}]   ;;  %s2275_s2 = inlined_call_operand.vmem [shape: f32[1,32], index: 2, kind: input, shape index: {}]   ;;  %s2276_s3 = inlined_call_operand.vmem [shape: f32[32,32], index: 3, kind: input, shape index: {}]   ;;  %s2277_s4 = inlined_call_operand.vmem [shape: bf16[9,32,32], index: 4, kind: input, shape index: {}]   ;;  %s2278_s5 = inlined_call_operand.vmem [shape: f32[1,32], index: 5, kind: input, shape index: {}]   ;;  %s2279_s6 = inlined_call_operand.vmem [shape: bf16[2,8,8,32], index: 6, kind: input, shape index: {}]   ;;  %s2280_s7 = inlined_call_operand.vmem [shape: bf16[2,8,8,32], index: 7, kind: output, shape index: {}]  }
   0x1 LB: > { %s1524_s25 = sadd.s32 4294967295, %s1899_s24   ;;  %p1528_p0 = scmp.ge.s32.totalorder %s1899_s24, 1  ;;  %s1899_s24 = sphi %s1951_s24, %s17_s24  }
   0x2   : > { %p247_p1 = scmp.lt.s32.totalorder %s1899_s24, 3 }
   0x4   : > { %p248_p2 = pnand %p1528_p0, %p247_p1 }
   0x5   : > { %v369_v0 = vld [vmem:[%s2276_s3] sm:$0xff] (!%p248_p2)  ;;  %v370_v1 = vld [vmem:[%s2276_s3 + $0x8] sm:$0xff] (!%p248_p2)  ;;  %v371_v2 = vld [vmem:[%s2276_s3 + $0x10] sm:$0xff] (!%p248_p2)  ;;  %v1905_v3 = vmov (!%p248_p2), 0.0|0.0   ;;  %p284_p3 = scmp.lt.s32.totalorder (!%p248_p2), %s1524_s25, 1  ;;  %vm1906_vm0 = vmmov (!%p248_p2), 0  }
   0x6   : > { %251 = sbr.rel (%p248_p2) target bundleno = 606 (0x25e), region = 48  ;;  %1797 = vmatprep.subr.bf16.mxu0 (!%p248_p2), %v1905_v3  ;;  %v1798_v4 = vpack.c.bf16 (!%p248_p2), %v370_v1, %v369_v0  ;;  %1803 = vmatprep.subr.bf16.mxu1 (!%p248_p2), %v1905_v3  ;;  %v372_v5 = vld [vmem:[%s2276_s3 + $0x18] sm:$0xff] (!%p248_p2)  ;;  %v1907_v6 = vmov (!%p248_p2), 0.0   ;;  %vm316_vm1 = vcmask (!%p248_p2), 261120   ;;  %vm612_vm2 = vcmask (!%p248_p2), 257024   ;;  %s2136_s28 = smov (!%p248_p2), 0  }
   0x7   : > { %1711 = vmatprep.mubr.msk.f32.mxu0 (!%p248_p2), %vm1906_vm0, %v1907_v6  ;;  %1722 = vmatprep.mubr.msk.f32.mxu1 (!%p248_p2), %vm1906_vm0, %v1907_v6  ;;  %v1801_v7 = vpack.c.bf16 (!%p248_p2), %v372_v5, %v371_v2  ;;  %vm614_vm3 = vcmask (!%p248_p2), 253952   ;;  %vm748_vm4 = vsmask.f32 (!%p248_p2), 7938  ;;  %vm754_vm5 = vsmask.f32 (!%p248_p2), 256 }
   0x8   : > { %1799 = vmatpush3.bf16.msra.mxu0 (!%p248_p2), %v1798_v4  ;;  %1805 = vmatpush3.bf16.msra.mxu1 (!%p248_p2), %v1798_v4  ;;  %vm2094_vm6 = vmand (!%p248_p2), %vm612_vm2, %vm748_vm4 }
   0x9   : > { %1800 = vmatprep.subr.bf16.mxu0 (!%p248_p2), %v1905_v3  ;;  %1806 = vmatprep.subr.bf16.mxu1 (!%p248_p2), %v1905_v3  ;;  %vm2100_vm7 = vmand (!%p248_p2), %vm614_vm3, %vm754_vm5 }
   0xc   : > { %1802 = vmatpush3.bf16.msra.mxu0 (!%p248_p2), %v1801_v7  ;;  %1808 = vmatpush3.bf16.msra.mxu1 (!%p248_p2), %v1801_v7 }
   0xd   : > { %s2286_s25 = smov (!%p284_p3, %s1524_s25), 1 }
   0xe   : > { %s1971_s11 = sshll.u32 %s2286_s25, 5 }
   0xf   : > { %s288_s14 = scalar_lea.vmem %s2273_s0, %s1971_s11  ;;  %s293_s17 = scalar_lea.vmem %s2279_s6, %s1971_s11 }
  0x10   : > { %s298_s20 = scalar_lea.vmem %s2280_s7, %s1971_s11  ;;  %v1648_v8 = vld [vmem:[%s288_s14] sm:$0xff]   ;;  %v1663_v9 = vld [vmem:[%s288_s14 + $0x8] sm:$0xff]   ;;  %v1664_v10 = vld [vmem:[%s288_s14 + $0x10] sm:$0xff]  }
  0x11   : > { %v1985_v11 = vunpack.c.l.bf16 %v1648_v8  ;;  %v1987_v12 = vunpack.c.h.bf16 %v1648_v8  ;;  %v1989_v13 = vunpack.c.l.bf16 %v1663_v9  ;;  %v1991_v14 = vunpack.c.h.bf16 %v1663_v9  ;;  %v1665_v16 = vld [vmem:[%s288_s14 + $0x18] sm:$0xff]   ;;  %v2068_v9 = vld [vmem:[%s2278_s5] ss:$0 sm:$0xff] }
  0x12   : > { %v1993_v15 = vunpack.c.l.bf16 %v1664_v10  ;;  %v2001_v20 = vunpack.c.h.bf16 %v1664_v10  ;;  %v2011_v26 = vunpack.c.l.bf16 %v1665_v16  ;;  %v2022_v36 = vunpack.c.h.bf16 %v1665_v16 }
  0x13   : > { %v317_v17 = vsel %vm316_vm1, %v1985_v11, 0.0  ;;  %v318_v18 = vsel %vm316_vm1, %v1987_v12, 0.0  ;;  %v320_v19 = vsel %vm316_vm1, %v1989_v13, 0.0  ;;  %v322_v22 = vsel %vm316_vm1, %v1991_v14, 0.0 }
  0x14   : > { %v319_v21 = vadd.f32 %v318_v18, %v317_v17  ;;  %v339_v23 = vmul.f32 %v1985_v11, %v1985_v11  ;;  %v340_v24 = vmul.f32 %v1987_v12, %v1987_v12  ;;  %v341_v25 = vmul.f32 %v1989_v13, %v1989_v13 }
  0x15   : > { %v342_v28 = vmul.f32 %v1991_v14, %v1991_v14  ;;  %v324_v29 = vsel %vm316_vm1, %v1993_v15, 0.0  ;;  %v343_v30 = vmul.f32 %v1993_v15, %v1993_v15  ;;  %v326_v37 = vsel %vm316_vm1, %v2001_v20, 0.0 }
  0x16   : > { %v321_v27 = vadd.f32 %v320_v19, %v319_v21  ;;  %v347_v31 = vsel %vm316_vm1, %v339_v23, 0.0  ;;  %v348_v32 = vsel %vm316_vm1, %v340_v24, 0.0  ;;  %v350_v35 = vsel %vm316_vm1, %v341_v25, 0.0  ;;  %v521_v25 = vld [vmem:[%s2274_s1] sm:$0x1] }
  0x17   : > { %v349_v34 = vadd.f32 %v348_v32, %v347_v31  ;;  %v344_v38 = vmul.f32 %v2001_v20, %v2001_v20  ;;  %v352_v39 = vsel %vm316_vm1, %v342_v28, 0.0  ;;  %v328_v42 = vsel %vm316_vm1, %v2011_v26, 0.0 }
  0x18   : > { %v323_v33 = vadd.f32 %v322_v22, %v321_v27  ;;  %v345_v43 = vmul.f32 %v2011_v26, %v2011_v26  ;;  %v354_v44 = vsel %vm316_vm1, %v343_v30, 0.0  ;;  %v330_v47 = vsel %vm316_vm1, %v2022_v36, 0.0  ;;  %v525_v30 = vld [vmem:[%s2275_s2] sm:$0x1] }
  0x19   : > { %v351_v41 = vadd.f32 %v350_v35, %v349_v34  ;;  %v346_v48 = vmul.f32 %v2022_v36, %v2022_v36  ;;  %v356_v49 = vsel %vm316_vm1, %v344_v38, 0.0  ;;  %v1908_v8 = vmov 0  }
  0x1a   : > { %v325_v40 = vadd.f32 %v324_v29, %v323_v33  ;;  %v358_v52 = vsel %vm316_vm1, %v345_v43, 0.0  ;;  %613 = vst.msk [vmem:[#allocation2] sm:$0xf] %vm612_vm2, %v1908_v8  ;;  %616 = vst.msk [vmem:[#allocation2 + $0x8] sm:$0xf] %vm612_vm2, %v1908_v8  ;;  %v529_v23 = vlaneseq }
  0x1b   : > { %v353_v46 = vadd.f32 %v352_v39, %v351_v41  ;;  %v360_v55 = vsel %vm316_vm1, %v346_v48, 0.0  ;;  %615 = vst.msk [vmem:[#allocation2 + $0x4] sm:$0x1] %vm614_vm3, %v1908_v8  ;;  %617 = vst.msk [vmem:[#allocation2 + $0xc] sm:$0x1] %vm614_vm3, %v1908_v8 }
  0x1c   : > { %v327_v45 = vadd.f32 %v326_v37, %v325_v40  ;;  %618 = vst.msk [vmem:[#allocation2 + $0x10] sm:$0xf] %vm612_vm2, %v1908_v8  ;;  %620 = vst.msk [vmem:[#allocation2 + $0x18] sm:$0xf] %vm612_vm2, %v1908_v8  ;;  %v530_v24 = vshrl.u32 %v529_v23, 7 }
  0x1d   : > { %v355_v51 = vadd.f32 %v354_v44, %v353_v46  ;;  %619 = vst.msk [vmem:[#allocation2 + $0x14] sm:$0x1] %vm614_vm3, %v1908_v8  ;;  %621 = vst.msk [vmem:[#allocation2 + $0x1c] sm:$0x1] %vm614_vm3, %v1908_v8 }
  0x1e   : > { %v329_v50 = vadd.f32 %v328_v42, %v327_v45  ;;  %622 = vst.msk [vmem:[#allocation2 + $0x20] sm:$0xf] %vm612_vm2, %v1908_v8  ;;  %624 = vst.msk [vmem:[#allocation2 + $0x28] sm:$0xf] %vm612_vm2, %v1908_v8  ;;  %v531_v27 = vsub.s32 0, %v530_v24 }
  0x1f   : > { %v357_v54 = vadd.f32 %v356_v49, %v355_v51  ;;  %623 = vst.msk [vmem:[#allocation2 + $0x24] sm:$0x1] %vm614_vm3, %v1908_v8  ;;  %625 = vst.msk [vmem:[#allocation2 + $0x2c] sm:$0x1] %vm614_vm3, %v1908_v8 }
  0x20   : > { %v331_v53 = vadd.f32 %v330_v47, %v329_v50  ;;  %626 = vst.msk [vmem:[#allocation2 + $0x30] sm:$0xf] %vm612_vm2, %v1908_v8  ;;  %628 = vst.msk [vmem:[#allocation2 + $0x38] sm:$0xf] %vm612_vm2, %v1908_v8 }
  0x21   : > { %v359_v57 = vadd.f32 %v358_v52, %v357_v54  ;;  %627 = vst.msk [vmem:[#allocation2 + $0x34] sm:$0x1] %vm614_vm3, %v1908_v8  ;;  %629 = vst.msk [vmem:[#allocation2 + $0x3c] sm:$0x1] %vm614_vm3, %v1908_v8 }
  0x22   : > { %v332_v56 = vsel %vm316_vm1, %v331_v53, 0.0  ;;  %630 = vst.msk [vmem:[#allocation2 + $0x40] sm:$0xf] %vm612_vm2, %v1908_v8  ;;  %632 = vst.msk [vmem:[#allocation2 + $0x48] sm:$0xf] %vm612_vm2, %v1908_v8 }
  0x23   : > { %v333_v58 = vrot.slane %v332_v56, 4  ;;  %v361_v59 = vadd.f32 %v360_v55, %v359_v57  ;;  %631 = vst.msk [vmem:[#allocation2 + $0x44] sm:$0x1] %vm614_vm3, %v1908_v8  ;;  %633 = vst.msk [vmem:[#allocation2 + $0x4c] sm:$0x1] %vm614_vm3, %v1908_v8 }
  0x25   : > { %v334_v60 = vadd.f32 %v333_v58, %v332_v56  ;;  %v362_v61 = vsel %vm316_vm1, %v361_v59, 0.0 }
  0x26   : > { %v363_v63 = vrot.slane %v362_v61, 4 }
  0x27   : > { %v335_v62 = vrot.slane %v334_v60, 2 }
  0x28   : > { %v364_v1 = vadd.f32 %v363_v63, %v362_v61 }
  0x29   : > { %v336_v0 = vadd.f32 %v335_v62, %v334_v60 }
  0x2a   : > { %v365_v3 = vrot.slane %v364_v1, 2 }
  0x2b   : > { %v337_v2 = vrot.slane %v336_v0, 1 }
  0x2c   : > { %v366_v5 = vadd.f32 %v365_v3, %v364_v1 }
  0x2d   : > { %v338_v4 = vadd.f32 %v337_v2, %v336_v0 }
  0x2e   : > { %v367_v6 = vrot.slane %v366_v5, 1 }
  0x2f   : > { %1712 = vmatmul.mubr.msk.f32.vlgmr.msra.gmra.mrb[0].mxu0 %vm316_vm1, %v338_v4 }
  0x30   : > { %v368_v7 = vadd.f32 %v367_v6, %v366_v5 }
  0x32   : > { %1723 = vmatmul.mubr.msk.f32.vlgmr.msra.gmra.mrb[0].mxu1 %vm316_vm1, %v368_v7 }
 0x102   : > { %v442_v10 = vpop.f32.mrb[0].mxu0 }
 0x103   : > { %v519_v16 = vmul.f32 %v442_v10, %v442_v10  ;;  %v1713_v17 = vpop.f32.mrb[1].mxu0 }
 0x105   : > { %v515_v18 = vpop.f32.mrb[0].mxu1 }
 0x106   : > { %v520_v19 = vsub.f32 %v515_v18, %v519_v16  ;;  %v1724_v21 = vpop.f32.mrb[1].mxu1 }
 0x108   : > { %v522_v22 = vadd.f32 1e-05, %v520_v19 }
 0x10a   : > { %1831 = vrsqrt.f32 %v522_v22 }
 0x114   : > { %v1832_v28 = vpop.eup %1831 }
 0x115   : > { %v524_v29 = vmul.f32 %v1832_v28, %v521_v25 }
 0x117   : > { %v526_v31 = vmul.f32 %v524_v29, %v442_v10  ;;  %v532_v32 = vrot.slane %v524_v29, %v531_v27 }
 0x119   : > { %v527_v33 = vsub.f32 %v525_v30, %v526_v31  ;;  %v534_v34 = vmul.f32 %v1985_v11, %v532_v32  ;;  %v535_v35 = vmul.f32 %v1987_v12, %v532_v32  ;;  %v536_v37 = vmul.f32 %v1989_v13, %v532_v32 }
 0x11a   : > { %v537_v38 = vmul.f32 %v1991_v14, %v532_v32  ;;  %v538_v40 = vmul.f32 %v1993_v15, %v532_v32  ;;  %v539_v41 = vmul.f32 %v2001_v20, %v532_v32  ;;  %v540_v42 = vmul.f32 %v2011_v26, %v532_v32 }
 0x11b   : > { %v546_v39 = vrot.slane %v527_v33, %v531_v27  ;;  %v541_v43 = vmul.f32 %v2022_v36, %v532_v32 }
 0x11d   : > { %v548_v44 = vadd.f32 %v546_v39, %v534_v34  ;;  %v549_v45 = vadd.f32 %v546_v39, %v535_v35  ;;  %v550_v46 = vadd.f32 %v546_v39, %v536_v37  ;;  %v551_v47 = vadd.f32 %v546_v39, %v537_v38 }
 0x11e   : > { %v552_v11 = vadd.f32 %v546_v39, %v538_v40  ;;  %v553_v48 = vadd.f32 %v546_v39, %v539_v41  ;;  %v2084_v12 = vadd.f32 %v546_v39, %v540_v42  ;;  %v2086_v13 = vadd.f32 %v546_v39, %v541_v43 }
 0x11f   : > { %v1537_v14 = vmul.f32 -1.442695, %v548_v44  ;;  %v1538_v49 = vmul.f32 -1.442695, %v549_v45  ;;  %v1539_v50 = vmul.f32 -1.442695, %v550_v46 }
 0x120   : > { %v1540_v15 = vmul.f32 -1.442695, %v551_v47  ;;  %v1541_v20 = vmul.f32 -1.442695, %v552_v11  ;;  %v1542_v26 = vmul.f32 -1.442695, %v553_v48 }
 0x121   : > { %1833 = vpow2.f32 %v1537_v14  ;;  %v1543_v36 = vmul.f32 -1.442695, %v2084_v12  ;;  %v1544_v51 = vmul.f32 -1.442695, %v2086_v13 }
 0x122   : > { %1835 = vpow2.f32 %v1538_v49 }
 0x123   : > { %1837 = vpow2.f32 %v1539_v50 }
 0x124   : > { %1839 = vpow2.f32 %v1540_v15 }
 0x125   : > { %1841 = vpow2.f32 %v1541_v20  ;;  %v750_v20 = vld [vmem:[#allocation2 + $0x8] sm:$0xf] }
 0x126   : > { %1843 = vpow2.f32 %v1542_v26 }
 0x127   : > { %1845 = vpow2.f32 %v1543_v36 }
 0x128   : > { %1847 = vpow2.f32 %v1544_v51 }
 0x12b   : > { %v1834_v52 = vpop.eup %1833 }
 0x12c   : > { %v1836_v53 = vpop.eup %1835  ;;  %v580_v54 = vadd.f32 1.0, %v1834_v52 }
 0x12d   : > { %v1838_v55 = vpop.eup %1837  ;;  %v581_v56 = vadd.f32 1.0, %v1836_v53  ;;  %v756_v53 = vld [vmem:[#allocation2 + $0xc] sm:$0x1] }
 0x12e   : > { %v1840_v57 = vpop.eup %1839  ;;  %v582_v58 = vadd.f32 1.0, %v1838_v55  ;;  %1849 = vrcp.f32 %v580_v54 }
 0x12f   : > { %v1842_v59 = vpop.eup %1841  ;;  %v583_v60 = vadd.f32 1.0, %v1840_v57  ;;  %1851 = vrcp.f32 %v581_v56 }
 0x130   : > { %v1844_v61 = vpop.eup %1843  ;;  %v584_v62 = vadd.f32 1.0, %v1842_v59  ;;  %1853 = vrcp.f32 %v582_v58  ;;  %v759_v59 = vld [vmem:[#allocation2 + $0x10] sm:$0xf] }
 0x131   : > { %v1846_v63 = vpop.eup %1845  ;;  %v585_v0 = vadd.f32 1.0, %v1844_v61  ;;  %1855 = vrcp.f32 %v583_v60  ;;  %v762_v60 = vld [vmem:[#allocation2 + $0x14] sm:$0x1]  ;;  %v765_v61 = vld [vmem:[#allocation2 + $0x18] sm:$0xf] }
 0x132   : > { %v1848_v1 = vpop.eup %1847  ;;  %v586_v2 = vadd.f32 1.0, %v1846_v63  ;;  %1857 = vrcp.f32 %v584_v62  ;;  %v768_v62 = vld [vmem:[#allocation2 + $0x1c] sm:$0x1] }
 0x133   : > { %v587_v3 = vadd.f32 1.0, %v1848_v1  ;;  %1859 = vrcp.f32 %v585_v0 }
 0x134   : > { %1861 = vrcp.f32 %v586_v2 }
 0x135   : > { %1863 = vrcp.f32 %v587_v3  ;;  %v771_v3 = vld [vmem:[#allocation2 + $0x20] sm:$0xf] }
 0x138   : > { %v1850_v4 = vpop.eup %1849 }
 0x139   : > { %v1852_v5 = vpop.eup %1851  ;;  %v604_v6 = vmul.f32 %v1850_v4, %v548_v44  ;;  %v774_v4 = vld [vmem:[#allocation2 + $0x24] sm:$0x1] }
 0x13a   : > { %v1854_v7 = vpop.eup %1853  ;;  %v605_v8 = vmul.f32 %v1852_v5, %v549_v45  ;;  %v777_v5 = vld [vmem:[#allocation2 + $0x28] sm:$0xf] }
 0x13b   : > { %v1856_v10 = vpop.eup %1855  ;;  %v606_v16 = vmul.f32 %v1854_v7, %v550_v46  ;;  %v1638_v17 = vpack.c.bf16 %v604_v6, %v604_v6 }
 0x13c   : > { %v1858_v18 = vpop.eup %1857  ;;  %v607_v19 = vmul.f32 %v1856_v10, %v551_v47  ;;  %v1639_v21 = vpack.c.bf16 %v605_v8, %v605_v8 }
 0x13d   : > { %v1860_v22 = vpop.eup %1859  ;;  %v608_v23 = vmul.f32 %v1858_v18, %v552_v11  ;;  %v1640_v24 = vpack.c.bf16 %v606_v16, %v606_v16  ;;  %v667_v25 = vshrl.u32 %v1638_v17, 16  ;;  %v670_v27 = vshll.u32 %v1638_v17, 16  ;;  %v780_v16 = vld [vmem:[#allocation2 + $0x2c] sm:$0x1] }
 0x13e   : > { %v1862_v28 = vpop.eup %1861  ;;  %v609_v29 = vmul.f32 %v1860_v22, %v553_v48  ;;  %v1641_v30 = vpack.c.bf16 %v607_v19, %v607_v19  ;;  %v675_v31 = vshrl.u32 %v1639_v21, 16  ;;  %v678_v32 = vshll.u32 %v1639_v21, 16  ;;  %v783_v22 = vld [vmem:[#allocation2 + $0x30] sm:$0xf] }
 0x13f   : > { %v1864_v33 = vpop.eup %1863  ;;  %v610_v34 = vmul.f32 %v1862_v28, %v2084_v12  ;;  %v1642_v35 = vpack.c.bf16 %v608_v23, %v608_v23  ;;  %v669_v37 = vrot.slane %v667_v25, 7  ;;  %v683_v38 = vshrl.u32 %v1640_v24, 16  ;;  %v786_v23 = vld [vmem:[#allocation2 + $0x34] sm:$0x1] }
 0x140   : > { %v611_v39 = vmul.f32 %v1864_v33, %v2086_v13  ;;  %v1643_v40 = vpack.c.bf16 %v609_v29, %v609_v29  ;;  %v677_v41 = vrot.slane %v675_v31, 7  ;;  %v686_v42 = vshll.u32 %v1640_v24, 16  ;;  %v789_v29 = vld [vmem:[#allocation2 + $0x38] sm:$0xf] }
 0x141   : > { %v1644_v43 = vpack.c.bf16 %v610_v34, %v610_v34  ;;  %v672_v44 = vor.u32 %v670_v27, %v669_v37  ;;  %v673_v45 = vrot.slane %v669_v37, 4  ;;  %v685_v46 = vrot.slane %v683_v38, 7  ;;  %v798_v37 = vld [vmem:[#allocation2 + $0x44] sm:$0x1] }
 0x142   : > { %v1645_v47 = vpack.c.bf16 %v611_v39, %v611_v39  ;;  %v680_v11 = vor.u32 %v678_v32, %v677_v41  ;;  %v681_v48 = vrot.slane %v677_v41, 4  ;;  %v691_v14 = vshrl.u32 %v1641_v30, 16 }
 0x143   : > { %v688_v49 = vor.u32 %v686_v42, %v685_v46  ;;  %v689_v50 = vrot.slane %v685_v46, 4  ;;  %v694_v15 = vshll.u32 %v1641_v30, 16  ;;  %v699_v12 = vshrl.u32 %v1642_v35, 16  ;;  %v792_v30 = vld [vmem:[#allocation2 + $0x3c] sm:$0x1] }
 0x144   : > { %v693_v26 = vrot.slane %v691_v14, 7  ;;  %v702_v36 = vshll.u32 %v1642_v35, 16  ;;  %v707_v51 = vshrl.u32 %v1643_v40, 16  ;;  %v710_v13 = vshll.u32 %v1643_v40, 16  ;;  %v795_v35 = vld [vmem:[#allocation2 + $0x40] sm:$0xf] }
 0x145   : > { %v701_v54 = vrot.slane %v699_v12, 7  ;;  %v715_v55 = vshrl.u32 %v1644_v43, 16  ;;  %v718_v56 = vshll.u32 %v1644_v43, 16  ;;  %v723_v57 = vshrl.u32 %v1645_v47, 16 }
 0x146   : > { %v696_v63 = vor.u32 %v694_v15, %v693_v26  ;;  %v697_v0 = vrot.slane %v693_v26, 4  ;;  %v709_v1 = vrot.slane %v707_v51, 7  ;;  %v726_v2 = vshll.u32 %v1645_v47, 16 }
 0x147   : > { %v704_v6 = vor.u32 %v702_v36, %v701_v54  ;;  %v705_v7 = vrot.slane %v701_v54, 4  ;;  %v717_v8 = vrot.slane %v715_v55, 7  ;;  %v725_v10 = vrot.slane %v723_v57, 7 }
 0x148   : > { %v712_v17 = vor.u32 %v710_v13, %v709_v1  ;;  %v713_v18 = vrot.slane %v709_v1, 4  ;;  %v751_v19 = vsel %vm2094_vm6, %v672_v44, %v750_v20  ;;  %v757_v21 = vsel %vm2100_vm7, %v673_v45, %v756_v53 }
 0x149   : > { %v720_v24 = vor.u32 %v718_v56, %v717_v8  ;;  %v721_v25 = vrot.slane %v717_v8, 4  ;;  %v728_v27 = vor.u32 %v726_v2, %v725_v10  ;;  %v729_v28 = vrot.slane %v725_v10, 4  ;;  %752 = vst [vmem:[#allocation2 + $0x8] sm:$0xf] %v751_v19  ;;  %758 = vst [vmem:[#allocation2 + $0xc] sm:$0x1] %v757_v21 }
 0x14a   : > { %v760_v31 = vsel %vm2094_vm6, %v680_v11, %v759_v59  ;;  %v763_v32 = vsel %vm2100_vm7, %v681_v48, %v762_v60  ;;  %v766_v33 = vsel %vm2094_vm6, %v688_v49, %v765_v61  ;;  %v769_v34 = vsel %vm2100_vm7, %v689_v50, %v768_v62 }
 0x14b   : > { %761 = vst [vmem:[#allocation2 + $0x10] sm:$0xf] %v760_v31  ;;  %764 = vst [vmem:[#allocation2 + $0x14] sm:$0x1] %v763_v32  ;;  %v772_v38 = vsel %vm2094_vm6, %v696_v63, %v771_v3  ;;  %v775_v39 = vsel %vm2100_vm7, %v697_v0, %v774_v4  ;;  %v778_v40 = vsel %vm2094_vm6, %v704_v6, %v777_v5 }
 0x14c   : > { %767 = vst [vmem:[#allocation2 + $0x18] sm:$0xf] %v766_v33  ;;  %770 = vst [vmem:[#allocation2 + $0x1c] sm:$0x1] %v769_v34  ;;  %v781_v41 = vsel %vm2100_vm7, %v705_v7, %v780_v16  ;;  %v784_v42 = vsel %vm2094_vm6, %v712_v17, %v783_v22  ;;  %v787_v43 = vsel %vm2100_vm7, %v713_v18, %v786_v23 }
 0x14d   : > { %773 = vst [vmem:[#allocation2 + $0x20] sm:$0xf] %v772_v38  ;;  %776 = vst [vmem:[#allocation2 + $0x24] sm:$0x1] %v775_v39  ;;  %v790_v44 = vsel %vm2094_vm6, %v720_v24, %v789_v29  ;;  %v793_v45 = vsel %vm2100_vm7, %v721_v25, %v792_v30  ;;  %v796_v46 = vsel %vm2094_vm6, %v728_v27, %v795_v35 }
 0x14e   : > { %779 = vst [vmem:[#allocation2 + $0x28] sm:$0xf] %v778_v40  ;;  %782 = vst [vmem:[#allocation2 + $0x2c] sm:$0x1] %v781_v41  ;;  %v799_v47 = vsel %vm2100_vm7, %v729_v28, %v798_v37 }
 0x14f   : > { %785 = vst [vmem:[#allocation2 + $0x30] sm:$0xf] %v784_v42  ;;  %788 = vst [vmem:[#allocation2 + $0x34] sm:$0x1] %v787_v43 }
 0x150   : > { %791 = vst [vmem:[#allocation2 + $0x38] sm:$0xf] %v790_v44  ;;  %794 = vst [vmem:[#allocation2 + $0x3c] sm:$0x1] %v793_v45 }
 0x151   : > { %797 = vst [vmem:[#allocation2 + $0x40] sm:$0xf] %v796_v46  ;;  %800 = vst [vmem:[#allocation2 + $0x44] sm:$0x1] %v799_v47 }
 0x152 LB: >> { %v1865_v11 = vld [vmem:[%s2277_s4 + $0x10] sm:$0xff]   ;;  %v1909_v48 = vmov 0.0   ;;  %v1866_v14 = vld [vmem:[%s2277_s4] sm:$0xff]   ;;  %v1867_v49 = vld [vmem:[%s2277_s4 + $0x18] sm:$0xff]   ;;  %vm1910_vm8 = vmmov 0   ;;  %s1646_s13 = sshll.u32 %s1903_s28, 3  ;;  %s1903_s28 = sphi %s2136_s28, %s807_s28  }
 0x153   : >> { %1725 = vmatprep.subr.bf16.mxu0 %v1909_v48  ;;  %1733 = vmatprep.subr.bf16.mxu1 %v1909_v48  ;;  %v1868_v50 = vld [vmem:[%s2277_s4 + $0x8] sm:$0xff]   ;;  %s2162_s16 = scalar_lea.vmem [#allocation2], %s1646_s13  ;;  %v1871_v51 = vld [vmem:[%s2277_s4 + $0x30] sm:$0xff]   ;;  %v1870_v53 = vld [vmem:[%s2277_s4 + $0x20] sm:$0xff]  }
 0x154   : >> { %1726 = vmatpush3.bf16.msra.mxu0 %v1865_v11  ;;  %1729 = vmatprep.mubr.msk.bf16.mxu0 %vm1910_vm8, %v1909_v48  ;;  %v1873_v55 = vld [vmem:[%s2277_s4 + $0x38] sm:$0xff]   ;;  %v1872_v56 = vld [vmem:[%s2277_s4 + $0x28] sm:$0xff]   ;;  %v1876_v61 = vld [vmem:[%s2277_s4 + $0x50] sm:$0xff]  }
 0x155   : >> { %1734 = vmatpush3.bf16.msra.mxu1 %v1866_v14  ;;  %1727 = vmatprep.subr.bf16.mxu0 %v1909_v48  ;;  %v1875_v2 = vld [vmem:[%s2277_s4 + $0x40] sm:$0xff]   ;;  %v1878_v3 = vld [vmem:[%s2277_s4 + $0x58] sm:$0xff]   ;;  %v1877_v16 = vld [vmem:[%s2277_s4 + $0x48] sm:$0xff]  }
 0x156   : >> { %1735 = vmatprep.subr.bf16.mxu1 %v1909_v48  ;;  %1737 = vmatprep.mubr.msk.bf16.mxu1 %vm1910_vm8, %v1909_v48  ;;  %v1882_v18 = vld [vmem:[%s2277_s4 + $0x70] sm:$0xff]   ;;  %v1880_v22 = vld [vmem:[%s2277_s4 + $0x60] sm:$0xff]   ;;  %v1884_v25 = vld [vmem:[%s2277_s4 + $0x78] sm:$0xff]  }
 0x157   : >> { %v1883_v27 = vld [vmem:[%s2277_s4 + $0x68] sm:$0xff]   ;;  %v1885_v30 = vld [vmem:[%s2277_s4 + $0x80] sm:$0xff]  }
 0x158   : >> { %v811_v15 = vld [vmem:[%s2162_s16] sm:$0xf]  ;;  %v816_v12 = vld [vmem:[%s2162_s16 + $0x4] sm:$0x1]  ;;  %1728 = vmatpush3.bf16.msra.mxu0 %v1867_v49  ;;  %v1575_v58 = vld [vmem:[%s2162_s16 + $0x8] sm:$0xf] }
 0x159   : >> { %v1559_v20 = vcombine.low %v811_v15, %v816_v12  ;;  %1736 = vmatpush3.bf16.msra.mxu1 %v1868_v50  ;;  %1741 = vmatprep.subr.bf16.mxu0 %v1909_v48  ;;  %v944_v13 = vld [vmem:[%s2162_s16] sm:$0xe]  ;;  %v1583_v59 = vld [vmem:[%s2162_s16 + $0x8] sm:$0xf]  ;;  %v1584_v60 = vld [vmem:[%s2162_s16 + $0xc] sm:$0x1] }
 0x15a   : >> { %1749 = vmatprep.subr.bf16.mxu1 %v1909_v48  ;;  %v1570_v57 = vcombine.low %v944_v13, %v816_v12  ;;  %v1589_v62 = vcombine.low %v1583_v59, %v1584_v60  ;;  %v1593_v63 = vld [vmem:[%s2162_s16 + $0x8] sm:$0xe]  ;;  %v1611_v5 = vld [vmem:[%s2162_s16 + $0x10] sm:$0xf]  ;;  %v1612_v6 = vld [vmem:[%s2162_s16 + $0x14] sm:$0x1] }
 0x15b   : >> { %v828_v26 = vshrl.u32 %v1559_v20, 16  ;;  %v830_v36 = vshll.u32 %v1559_v20, 16  ;;  %v1598_v4 = vcombine.low %v1593_v63, %v1584_v60  ;;  %v1617_v10 = vcombine.low %v1611_v5, %v1612_v6  ;;  %v1603_v29 = vld [vmem:[%s2162_s16 + $0x10] sm:$0xf]  ;;  %v1887_v33 = vld [vmem:[%s2277_s4 + $0x88] sm:$0xff]  }
 0x15c   : >> { %1738 = vmatmul.mubr.msk.bf16.vlgmr.msra.gmra.mrb[0].mxu1 %vm316_vm1, %v811_v15  ;;  %v953_v0 = vrot.slane %v1570_v57, 1  ;;  %v1091_v1 = vshll.u32 %v1589_v62, 16  ;;  %v1089_v7 = vshrl.u32 %v1589_v62, 16  ;;  %v1621_v31 = vld [vmem:[%s2162_s16 + $0x10] sm:$0xe]  ;;  %s1631_s16 = sshll.u32 %s1903_s28, 2 }
 0x15d   : >> { %v832_v52 = vrot.slane %v830_v36, 1  ;;  %1750 = vmatpush3.bf16.msra.mxu1 %v1871_v51  ;;  %1753 = vmatprep.mubr.msk.bf16.mxu1 %vm1910_vm8, %v1909_v48  ;;  %v1160_v17 = vrot.slane %v1598_v4, 1  ;;  %v1298_v19 = vshll.u32 %v1617_v10, 16  ;;  %v1296_v23 = vshrl.u32 %v1617_v10, 16  ;;  %s1432_s12 = scalar_lea.vmem %s293_s17, %s1631_s16  ;;  %s1438_s15 = scalar_lea.vmem %s298_s20, %s1631_s16 }
 0x15e   : >> { %1751 = vmatprep.subr.bf16.mxu1 %v1909_v48  ;;  %v1093_v8 = vrot.slane %v1091_v1, 1  ;;  %v1626_v32 = vcombine.low %v1621_v31, %v1612_v6  ;;  %s807_s28 = sadd.s32 1, %s1903_s28  }
 0x15f   : >> { %v833_v54 = vor.u32 %v832_v52, %v828_v26  ;;  %v1300_v24 = vrot.slane %v1298_v19, 1  ;;  %p804_p4 = scmp.ge.s32.totalorder %s807_s28, 8  }
 0x160   : >> { %v1094_v21 = vor.u32 %v1093_v8, %v1089_v7  ;;  %v1367_v34 = vrot.slane %v1626_v32, 1 }
 0x161   : >> { %1730 = vmatmul.mubr.msk.bf16.vlgmr.msra.gmra.mrb[0].mxu0 %vm316_vm1, %v833_v54  ;;  %1752 = vmatpush3.bf16.msra.mxu1 %v1873_v55  ;;  %v1301_v28 = vor.u32 %v1300_v24, %v1296_v23 }
 0x162   : >> { %1742 = vmatpush3.bf16.msra.mxu0 %v1870_v53  ;;  %1745 = vmatprep.mubr.msk.bf16.mxu0 %vm1910_vm8, %v1909_v48 }
 0x163   : >> { %1743 = vmatprep.subr.bf16.mxu0 %v1909_v48  ;;  %1765 = vmatprep.subr.bf16.mxu1 %v1909_v48 }
 0x164   : >> { %1754 = vmatmul.mubr.msk.bf16.vlgmr.msra.gmra.mrb[4].mxu1 %vm316_vm1, %v1575_v58 }
 0x165   : >> { %1766 = vmatpush3.bf16.msra.mxu1 %v1876_v61  ;;  %1769 = vmatprep.mubr.msk.bf16.mxu1 %vm1910_vm8, %v1909_v48 }
 0x166   : >> { %1744 = vmatpush3.bf16.msra.mxu0 %v1872_v56  ;;  %1767 = vmatprep.subr.bf16.mxu1 %v1909_v48 }
 0x167   : >> { %1757 = vmatprep.subr.bf16.mxu0 %v1909_v48 }
 0x169   : >> { %1746 = vmatmul.mubr.msk.bf16.vlgmr.msra.gmra.mrb[4].mxu0 %vm316_vm1, %v953_v0  ;;  %1768 = vmatpush3.bf16.msra.mxu1 %v1878_v3  ;;  %v1433_v3 = vld [vmem:[%s1432_s12] sm:$0xf] }
 0x16a   : >> { %1758 = vmatpush3.bf16.msra.mxu0 %v1875_v2  ;;  %1761 = vmatprep.mubr.msk.bf16.mxu0 %vm1910_vm8, %v1909_v48  ;;  %v1434_v6 = vunpack.c.l.bf16 %v1433_v3 }
 0x16b   : >> { %1759 = vmatprep.subr.bf16.mxu0 %v1909_v48  ;;  %1781 = vmatprep.subr.bf16.mxu1 %v1909_v48 }
 0x16c   : >> { %1770 = vmatmul.mubr.msk.bf16.vlgmr.msra.gmra.mrb[8].mxu1 %vm316_vm1, %v1160_v17 }
 0x16d   : >> { %1782 = vmatpush3.bf16.msra.mxu1 %v1882_v18  ;;  %1785 = vmatprep.mubr.msk.bf16.mxu1 %vm1910_vm8, %v1909_v48 }
 0x16e   : >> { %1760 = vmatpush3.bf16.msra.mxu0 %v1877_v16  ;;  %1783 = vmatprep.subr.bf16.mxu1 %v1909_v48 }
 0x16f   : >> { %1773 = vmatprep.subr.bf16.mxu0 %v1909_v48 }
 0x171   : >> { %1762 = vmatmul.mubr.msk.bf16.vlgmr.msra.gmra.mrb[8].mxu0 %vm316_vm1, %v1094_v21  ;;  %1784 = vmatpush3.bf16.msra.mxu1 %v1884_v25 }
 0x172   : >> { %1774 = vmatpush3.bf16.msra.mxu0 %v1880_v22  ;;  %1777 = vmatprep.mubr.msk.bf16.mxu0 %vm1910_vm8, %v1909_v48 }
 0x173   : >> { %1775 = vmatprep.subr.bf16.mxu0 %v1909_v48 }
 0x174   : >> { %1786 = vmatmul.mubr.msk.bf16.vlgmr.msra.gmra.mrb[12].mxu1 %vm316_vm1, %v1301_v28 }
 0x176   : >> { %1776 = vmatpush3.bf16.msra.mxu0 %v1883_v27 }
 0x177   : >> { %1789 = vmatprep.subr.bf16.mxu0 %v1909_v48 }
 0x179   : >> { %1778 = vmatmul.mubr.msk.bf16.vlgmr.msra.gmra.mrb[12].mxu0 %vm316_vm1, %v1603_v29 }
 0x17a   : >> { %1790 = vmatpush3.bf16.msra.mxu0 %v1885_v30  ;;  %1793 = vmatprep.mubr.msk.bf16.mxu0 %vm1910_vm8, %v1909_v48 }
 0x17b   : >> { %1791 = vmatprep.subr.bf16.mxu0 %v1909_v48 }
 0x17e   : >> { %1792 = vmatpush3.bf16.msra.mxu0 %v1887_v33 }
 0x181   : >> { %1794 = vmatmul.mubr.msk.bf16.vlgmr.msra.gmra.mrb[16].mxu0 %vm316_vm1, %v1367_v34 }
 0x22f   : >> { %v938_v35 = vpop.f32.mrb[0].mxu1 }
 0x230   : >> { %v1739_v37 = vpop.f32.mrb[1].mxu1 }
 0x231   : >> { %v941_v38 = vpop.f32.mrb[2].mxu1 }
 0x232   : >> { %v1740_v40 = vpop.f32.mrb[3].mxu1 }
 0x234   : >> { %v883_v39 = vpop.f32.mrb[0].mxu0 }
 0x235   : >> { %v939_v41 = vadd.f32 %v938_v35, %v883_v39  ;;  %v1731_v42 = vpop.f32.mrb[1].mxu0 }
 0x236   : >> { %v886_v43 = vpop.f32.mrb[2].mxu0 }
 0x237   : >> { %v1732_v44 = vpop.f32.mrb[3].mxu0  ;;  %v1069_v45 = vpop.f32.mrb[4].mxu1 }
 0x238   : >> { %v1755_v46 = vpop.f32.mrb[5].mxu1 }
 0x239   : >> { %v1072_v47 = vpop.f32.mrb[6].mxu1 }
 0x23a   : >> { %v1756_v14 = vpop.f32.mrb[7].mxu1 }
 0x23c   : >> { %v1003_v11 = vpop.f32.mrb[4].mxu0 }
 0x23d   : >> { %v1009_v49 = vadd.f32 %v1003_v11, %v939_v41  ;;  %v1747_v48 = vpop.f32.mrb[5].mxu0 }
 0x23e   : >> { %v1006_v50 = vpop.f32.mrb[6].mxu0 }
 0x23f   : >> { %v1075_v15 = vadd.f32 %v1069_v45, %v1009_v49  ;;  %v1748_v12 = vpop.f32.mrb[7].mxu0  ;;  %v1210_v20 = vpop.f32.mrb[8].mxu1 }
 0x240   : >> { %v1771_v26 = vpop.f32.mrb[9].mxu1 }
 0x241   : >> { %v1213_v36 = vpop.f32.mrb[10].mxu1 }
 0x242   : >> { %v1772_v13 = vpop.f32.mrb[11].mxu1 }
 0x244   : >> { %v1144_v51 = vpop.f32.mrb[8].mxu0 }
 0x245   : >> { %v1150_v52 = vadd.f32 %v1144_v51, %v1075_v15  ;;  %v1763_v53 = vpop.f32.mrb[9].mxu0 }
 0x246   : >> { %v1147_v54 = vpop.f32.mrb[10].mxu0 }
 0x247   : >> { %v1216_v55 = vadd.f32 %v1210_v20, %v1150_v52  ;;  %v1764_v56 = vpop.f32.mrb[11].mxu0  ;;  %v1351_v57 = vpop.f32.mrb[12].mxu1 }
 0x248   : >> { %v1787_v58 = vpop.f32.mrb[13].mxu1 }
 0x249   : >> { %v1354_v59 = vpop.f32.mrb[14].mxu1 }
 0x24a   : >> { %v1788_v61 = vpop.f32.mrb[15].mxu1 }
 0x24c   : >> { %v1276_v60 = vpop.f32.mrb[12].mxu0 }
 0x24d   : >> { %v1282_v62 = vadd.f32 %v1276_v60, %v1216_v55  ;;  %v1779_v63 = vpop.f32.mrb[13].mxu0 }
 0x24e   : >> { %v1279_v0 = vpop.f32.mrb[14].mxu0 }
 0x24f   : >> { %v1357_v1 = vadd.f32 %v1351_v57, %v1282_v62  ;;  %v1780_v2 = vpop.f32.mrb[15].mxu0 }
 0x254   : >> { %v1417_v4 = vpop.f32.mrb[16].mxu0 }
 0x255   : >> { %v1423_v5 = vadd.f32 %v1417_v4, %v1357_v1  ;;  %v1795_v7 = vpop.f32.mrb[17].mxu0 }
 0x256   : >> { %v1420_v8 = vpop.f32.mrb[18].mxu0 }
 0x257   : >> { %v1430_v10 = vadd.f32 %v2068_v9, %v1423_v5  ;;  %v1796_v16 = vpop.f32.mrb[19].mxu0  ;;  %806 = sbr.rel (!%p804_p4) target bundleno = 338 (0x152), region = 102 }
 0x259   : >> { %v1435_v17 = vadd.f32 %v1434_v6, %v1430_v10 }
 0x25b   : >> { %v1436_v18 = vpack.c.bf16 %v1435_v17, %v1435_v17 }
 0x25d   : >> { %1439 = vst.msk [vmem:[%s1438_s15] sm:$0xf] %vm612_vm2, %v1436_v18 }
 0x25e PF: > { %s17_s24 = sadd.s32 1, %s1899_s24  }
 0x25f   : > { %p14_p5 = scmp.ge.s32.totalorder %s17_s24, 4  }
 0x261   :  { %16 = sbr.rel (!%p14_p5) target bundleno = 1 (0x1), region = 113 }

// kernel: block_forward.10
= control target key start
LH: loop header
LB: loop body
LE: loop exit
PB: predicated region body
PF: predicated region fallthrough
CT: control target
= control target key end

     0   :  { %s4684_s21 = smov 0   ;;  %s5548_s0 = inlined_call_operand.vmem [shape: bf16[2,64,32], index: 0, kind: input, shape index: {}]   ;;  %s5549_s1 = inlined_call_operand.vmem [shape: f32[1,32], index: 1, kind: input, shape index: {}]   ;;  %s5550_s2 = inlined_call_operand.vmem [shape: f32[1,32], index: 2, kind: input, shape index: {}]   ;;  %s5551_s3 = inlined_call_operand.vmem [shape: f32[32,32], index: 3, kind: input, shape index: {}]   ;;  %s5552_s4 = inlined_call_operand.vmem [shape: bf16[4,32,8], index: 4, kind: input, shape index: {}]   ;;  %s5553_s5 = inlined_call_operand.vmem [shape: bf16[4,32,8], index: 5, kind: input, shape index: {}]   ;;  %s5554_s6 = inlined_call_operand.vmem [shape: bf16[4,32,8], index: 6, kind: input, shape index: {}]   ;;  %s5555_s7 = inlined_call_operand.vmem [shape: f32[4,1,8], index: 7, kind: input, shape index: {}]   ;;  %s5556_s8 = inlined_call_operand.vmem [shape: f32[4,1,8], index: 8, kind: input, shape index: {}]   ;;  %s5557_s9 = inlined_call_operand.vmem [shape: f32[4,1,8], index: 9, kind: input, shape index: {}]   ;;  %s5558_s10 = inlined_call_operand.vmem [shape: bf16[4,8,32], index: 10, kind: input, shape index: {}]   ;;  %s5559_s11 = inlined_call_operand.vmem [shape: f32[1,32], index: 11, kind: input, shape index: {}]   ;;  %s5560_s12 = inlined_call_operand.vmem [shape: bf16[2,64,32], index: 12, kind: output, shape index: {}]  }
   0x1 LB: > { %s3584_s22 = sadd.s32 4294967295, %s4614_s21   ;;  %p3588_p0 = scmp.ge.s32.totalorder %s4614_s21, 1  ;;  %s4614_s21 = sphi %s4684_s21, %s22_s21  }
   0x2   : > { %p362_p1 = scmp.lt.s32.totalorder %s4614_s21, 3 }
   0x4   : > { %p363_p2 = pnand %p3588_p0, %p362_p1 }
   0x5   : > { %v482_v0 = vld [vmem:[%s5551_s3] sm:$0xff] (!%p363_p2)  ;;  %v483_v1 = vld [vmem:[%s5551_s3 + $0x8] sm:$0xff] (!%p363_p2)  ;;  %v484_v2 = vld [vmem:[%s5551_s3 + $0x10] sm:$0xff] (!%p363_p2)  ;;  %v4616_v3 = vmov (!%p363_p2), 0.0|0.0   ;;  %p404_p3 = scmp.lt.s32.totalorder (!%p363_p2), %s3584_s22, 1  ;;  %vm4617_vm0 = vmmov (!%p363_p2), 0  }
   0x6   : > { %366 = sbr.rel (%p363_p2) target bundleno = 3792 (0xed0), region = 68  ;;  %4315 = vmatprep.subr.bf16.mxu0 (!%p363_p2), %v4616_v3  ;;  %v4316_v4 = vpack.c.bf16 (!%p363_p2), %v483_v1, %v482_v0  ;;  %4321 = vmatprep.subr.bf16.mxu1 (!%p363_p2), %v4616_v3  ;;  %v485_v5 = vld [vmem:[%s5551_s3 + $0x18] sm:$0xff] (!%p363_p2)  ;;  %v4618_v6 = vmov (!%p363_p2), 0.0   ;;  %vm431_vm1 = vcmask (!%p363_p2), 261120   ;;  %vm984_vm2 = vcmask (!%p363_p2), 64512  }
   0x7   : > { %3989 = vmatprep.mubr.msk.f32.mxu0 (!%p363_p2), %vm4617_vm0, %v4618_v6  ;;  %4000 = vmatprep.mubr.msk.f32.mxu1 (!%p363_p2), %vm4617_vm0, %v4618_v6  ;;  %v4319_v7 = vpack.c.bf16 (!%p363_p2), %v485_v5, %v484_v2  ;;  %v4390_v6 = vld [vmem:[%s5552_s4] sm:$0xff] (!%p363_p2)   ;;  %vm1074_vm3 = vcmask (!%p363_p2), 523264   ;;  %vm1317_vm4 = vcmask (!%p363_p2), 1043456   ;;  %vm3520_vm5 = vcmask (!%p363_p2), 257024  }
   0x8   : > { %4317 = vmatpush3.bf16.msra.mxu0 (!%p363_p2), %v4316_v4  ;;  %4323 = vmatpush3.bf16.msra.mxu1 (!%p363_p2), %v4316_v4 }
   0x9   : > { %4318 = vmatprep.subr.bf16.mxu0 (!%p363_p2), %v4616_v3  ;;  %4324 = vmatprep.subr.bf16.mxu1 (!%p363_p2), %v4616_v3 }
   0xc   : > { %4320 = vmatpush3.bf16.msra.mxu0 (!%p363_p2), %v4319_v7  ;;  %4326 = vmatpush3.bf16.msra.mxu1 (!%p363_p2), %v4319_v7  ;;  %v4391_v7 = vld [vmem:[%s5554_s6] sm:$0xff] (!%p363_p2)  }
   0xd   : > { %s5562_s22 = smov (!%p404_p3, %s3584_s22), 1  ;;  %4003 = vmatprep.subr.bf16.mxu1 %v4390_v6  ;;  %4027 = vmatprep.subr.bf16.mxu0 %v4391_v7 }
   0xe   : > { %s3786_s13 = sshll.u32 %s5562_s22, 5 }
   0xf   : > { %s408_s16 = scalar_lea.vmem %s5548_s0, %s3786_s13  ;;  %s5523_s15 = scalar_lea.vmem %s5560_s12, %s3786_s13 }
  0x10   : > { %v3797_v8 = vld [vmem:[%s408_s16] sm:$0xff]   ;;  %v3812_v9 = vld [vmem:[%s408_s16 + $0x8] sm:$0xff]   ;;  %v3813_v10 = vld [vmem:[%s408_s16 + $0x10] sm:$0xff]  }
  0x11   : > { %v4712_v11 = vunpack.c.l.bf16 %v3797_v8  ;;  %v4714_v12 = vunpack.c.h.bf16 %v3797_v8  ;;  %v4716_v13 = vunpack.c.l.bf16 %v3812_v9  ;;  %v4718_v14 = vunpack.c.h.bf16 %v3812_v9  ;;  %v3814_v15 = vld [vmem:[%s408_s16 + $0x18] sm:$0xff]   ;;  %v4392_v8 = vld [vmem:[%s5552_s4 + $0x8] sm:$0xff]  }
  0x12   : > { %v4720_v16 = vunpack.c.l.bf16 %v3813_v10  ;;  %v4722_v17 = vunpack.c.h.bf16 %v3813_v10  ;;  %v4724_v18 = vunpack.c.l.bf16 %v3814_v15  ;;  %v4732_v22 = vunpack.c.h.bf16 %v3814_v15  ;;  %v4393_v9 = vld [vmem:[%s5554_s6 + $0x8] sm:$0xff]   ;;  %v4394_v10 = vld [vmem:[%s5553_s5] sm:$0xff]  }
  0x13   : > { %v432_v19 = vsel %vm431_vm1, %v4712_v11, 0.0  ;;  %v433_v20 = vsel %vm431_vm1, %v4714_v12, 0.0  ;;  %v435_v21 = vsel %vm431_vm1, %v4716_v13, 0.0  ;;  %v437_v24 = vsel %vm431_vm1, %v4718_v14, 0.0 }
  0x14   : > { %v434_v23 = vadd.f32 %v433_v20, %v432_v19  ;;  %v439_v25 = vsel %vm431_vm1, %v4720_v16, 0.0  ;;  %v441_v26 = vsel %vm431_vm1, %v4722_v17, 0.0  ;;  %v453_v27 = vmul.f32 %v4712_v11, %v4712_v11 }
  0x15   : > { %v454_v28 = vmul.f32 %v4714_v12, %v4714_v12  ;;  %v455_v29 = vmul.f32 %v4716_v13, %v4716_v13  ;;  %v456_v31 = vmul.f32 %v4718_v14, %v4718_v14  ;;  %v457_v32 = vmul.f32 %v4720_v16, %v4720_v16 }
  0x16   : > { %v436_v30 = vadd.f32 %v435_v21, %v434_v23  ;;  %v458_v33 = vmul.f32 %v4722_v17, %v4722_v17  ;;  %v461_v34 = vsel %vm431_vm1, %v453_v27, 0.0  ;;  %v443_v37 = vsel %vm431_vm1, %v4724_v18, 0.0 }
  0x17   : > { %v462_v35 = vsel %vm431_vm1, %v454_v28, 0.0  ;;  %v464_v39 = vsel %vm431_vm1, %v455_v29, 0.0  ;;  %v445_v40 = vsel %vm431_vm1, %v4732_v22, 0.0  ;;  %v466_v41 = vsel %vm431_vm1, %v456_v31, 0.0  ;;  %v634_v28 = vld [vmem:[%s5549_s1] sm:$0x1] }
  0x18   : > { %v438_v36 = vadd.f32 %v437_v24, %v436_v30  ;;  %v463_v38 = vadd.f32 %v462_v35, %v461_v34  ;;  %v468_v42 = vsel %vm431_vm1, %v457_v32, 0.0  ;;  %v470_v43 = vsel %vm431_vm1, %v458_v33, 0.0  ;;  %v638_v32 = vld [vmem:[%s5550_s2] sm:$0x1] }
  0x19   : > { %v459_v46 = vmul.f32 %v4724_v18, %v4724_v18  ;;  %v460_v49 = vmul.f32 %v4732_v22, %v4732_v22 }
  0x1a   : > { %v440_v44 = vadd.f32 %v439_v25, %v438_v36  ;;  %v465_v45 = vadd.f32 %v464_v39, %v463_v38 }
  0x1b   : > { %v472_v52 = vsel %vm431_vm1, %v459_v46, 0.0  ;;  %v474_v55 = vsel %vm431_vm1, %v460_v49, 0.0 }
  0x1c   : > { %v442_v47 = vadd.f32 %v441_v26, %v440_v44  ;;  %v467_v48 = vadd.f32 %v466_v41, %v465_v45  ;;  %v642_v26 = vlaneseq }
  0x1e   : > { %v444_v50 = vadd.f32 %v443_v37, %v442_v47  ;;  %v469_v51 = vadd.f32 %v468_v42, %v467_v48  ;;  %v643_v27 = vshrl.u32 %v642_v26, 7 }
  0x20   : > { %v446_v53 = vadd.f32 %v445_v40, %v444_v50  ;;  %v471_v54 = vadd.f32 %v470_v43, %v469_v51  ;;  %v644_v29 = vsub.s32 0, %v643_v27 }
  0x22   : > { %v447_v56 = vrot.slane %v446_v53, 4  ;;  %v473_v57 = vadd.f32 %v472_v52, %v471_v54 }
  0x24   : > { %v448_v58 = vadd.f32 %v447_v56, %v446_v53  ;;  %v475_v59 = vadd.f32 %v474_v55, %v473_v57  ;;  %v4395_v57 = vld [vmem:[%s5553_s5 + $0x8] sm:$0xff]  }
  0x26   : > { %v449_v60 = vrot.slane %v448_v58, 2  ;;  %v476_v61 = vrot.slane %v475_v59, 4 }
  0x28   : > { %v450_v62 = vadd.f32 %v449_v60, %v448_v58  ;;  %v477_v63 = vadd.f32 %v476_v61, %v475_v59  ;;  %v3596_v58 = vld [vmem:[%s5555_s7] ss:$0 sm:$0xff] }
  0x29   : > { %v3610_v61 = vld [vmem:[%s5557_s9] ss:$0 sm:$0xff] }
  0x2a   : > { %v451_v0 = vrot.slane %v450_v62, 1  ;;  %v478_v1 = vrot.slane %v477_v63, 2 }
  0x2c   : > { %v452_v2 = vadd.f32 %v451_v0, %v450_v62  ;;  %v479_v3 = vadd.f32 %v478_v1, %v477_v63 }
  0x2e   : > { %3990 = vmatmul.mubr.msk.f32.vlgmr.msra.gmra.mrb[0].mxu0 %vm431_vm1, %v452_v2  ;;  %v480_v4 = vrot.slane %v479_v3, 1 }
  0x2f   : > { %4028 = vmatpush3.bf16.msra.mxu0 %v4391_v7 }
  0x30   : > { %v481_v5 = vadd.f32 %v480_v4, %v479_v3  ;;  %4029 = vmatprep.subr.bf16.mxu0 %v4393_v9 }
  0x32   : > { %4001 = vmatmul.mubr.msk.f32.vlgmr.msra.gmra.mrb[0].mxu1 %vm431_vm1, %v481_v5 }
  0x33   : > { %4004 = vmatpush3.bf16.msra.mxu1 %v4390_v6  ;;  %4030 = vmatpush3.bf16.msra.mxu0 %v4393_v9 }
  0x34   : > { %4005 = vmatprep.subr.bf16.mxu1 %v4392_v8 }
  0x37   : > { %4006 = vmatpush3.bf16.msra.mxu1 %v4392_v8 }
  0x38   : > { %4015 = vmatprep.subr.bf16.mxu1 %v4394_v10 }
 0x101   : > { %v555_v15 = vpop.f32.mrb[0].mxu0 }
 0x102   : > { %v632_v19 = vmul.f32 %v555_v15, %v555_v15  ;;  %v3991_v20 = vpop.f32.mrb[1].mxu0 }
 0x105   : > { %v628_v21 = vpop.f32.mrb[0].mxu1 }
 0x106   : > { %v633_v23 = vsub.f32 %v628_v21, %v632_v19  ;;  %v4002_v24 = vpop.f32.mrb[1].mxu1 }
 0x108   : > { %v635_v25 = vadd.f32 1e-05, %v633_v23 }
 0x10a   : > { %4414 = vrsqrt.f32 %v635_v25 }
 0x114   : > { %v4415_v30 = vpop.eup %4414 }
 0x115   : > { %v637_v31 = vmul.f32 %v4415_v30, %v634_v28 }
 0x117   : > { %v639_v33 = vmul.f32 %v637_v31, %v555_v15  ;;  %v645_v34 = vrot.slane %v637_v31, %v644_v29 }
 0x119   : > { %v640_v35 = vsub.f32 %v638_v32, %v639_v33  ;;  %v647_v36 = vmul.f32 %v4712_v11, %v645_v34  ;;  %v648_v37 = vmul.f32 %v4714_v12, %v645_v34  ;;  %v649_v38 = vmul.f32 %v4716_v13, %v645_v34 }
 0x11a   : > { %v650_v39 = vmul.f32 %v4718_v14, %v645_v34  ;;  %v651_v41 = vmul.f32 %v4720_v16, %v645_v34  ;;  %v652_v42 = vmul.f32 %v4722_v17, %v645_v34  ;;  %v653_v43 = vmul.f32 %v4724_v18, %v645_v34 }
 0x11b   : > { %v659_v40 = vrot.slane %v640_v35, %v644_v29  ;;  %v654_v44 = vmul.f32 %v4732_v22, %v645_v34 }
 0x11d   : > { %v661_v45 = vadd.f32 %v659_v40, %v647_v36  ;;  %v662_v46 = vadd.f32 %v659_v40, %v648_v37  ;;  %v663_v47 = vadd.f32 %v659_v40, %v649_v38  ;;  %v664_v48 = vadd.f32 %v659_v40, %v650_v39 }
 0x11e   : > { %v665_v49 = vadd.f32 %v659_v40, %v651_v41  ;;  %v666_v50 = vadd.f32 %v659_v40, %v652_v42  ;;  %v667_v51 = vadd.f32 %v659_v40, %v653_v43  ;;  %v668_v52 = vadd.f32 %v659_v40, %v654_v44 }
 0x11f   : > { %v4799_v53 = vpack.c.bf16 %v662_v46, %v661_v45  ;;  %v4801_v54 = vpack.c.bf16 %v664_v48, %v663_v47 }
 0x120   : > { %v4803_v55 = vpack.c.bf16 %v666_v50, %v665_v49  ;;  %v4805_v56 = vpack.c.bf16 %v668_v52, %v667_v51 }
 0x121   : > { %4007 = vmatprep.mubr.msk.bf16.mxu1 %vm431_vm1, %v4799_v53  ;;  %4031 = vmatprep.mubr.msk.bf16.mxu0 %vm431_vm1, %v4799_v53 }
 0x122   : > { %4008 = vmatmul.mubr.msk.bf16.vlgmr.msra.gmra.mrb[4].mxu1 %vm431_vm1, %v4801_v54  ;;  %4032 = vmatmul.mubr.msk.bf16.vlgmr.msra.gmra.mrb[4].mxu0 %vm431_vm1, %v4801_v54 }
 0x123   : > { %4016 = vmatpush3.bf16.msra.mxu1 %v4394_v10  ;;  %4011 = vmatprep.mubr.msk.bf16.mxu1 %vm431_vm1, %v4803_v55 }
 0x124   : > { %4035 = vmatprep.mubr.msk.bf16.mxu0 %vm431_vm1, %v4803_v55  ;;  %4017 = vmatprep.subr.bf16.mxu1 %v4395_v57 }
 0x127   : > { %4018 = vmatpush3.bf16.msra.mxu1 %v4395_v57  ;;  %v3603_v57 = vld [vmem:[%s5556_s8] ss:$0 sm:$0xff] }
 0x12a   : > { %4012 = vmatmul.mubr.msk.bf16.gmra.mrb[8].mxu1 %vm431_vm1, %v4805_v56  ;;  %4036 = vmatmul.mubr.msk.bf16.gmra.mrb[8].mxu0 %vm431_vm1, %v4805_v56 }
 0x12b   : > { %4019 = vmatprep.mubr.msk.bf16.mxu1 %vm431_vm1, %v4799_v53 }
 0x132   : > { %4020 = vmatmul.mubr.msk.bf16.vlgmr.msra.gmra.mrb[12].mxu1 %vm431_vm1, %v4801_v54 }
 0x133   : > { %4023 = vmatprep.mubr.msk.bf16.mxu1 %vm431_vm1, %v4803_v55 }
 0x13a   : > { %4024 = vmatmul.mubr.msk.bf16.gmra.mrb[16].mxu1 %vm431_vm1, %v4805_v56 }
 0x1f5   : > { %v4009_v59 = vpop.f32.mrb[4].mxu1  ;;  %v4033_v60 = vpop.f32.mrb[4].mxu0 }
 0x1f6   : > { %v766_v62 = vadd.f32 %v4009_v59, %v3596_v58  ;;  %v757_v63 = vpop.f32.mrb[5].mxu1  ;;  %v933_v0 = vpop.f32.mrb[5].mxu0  ;;  %v942_v4 = vadd.f32 %v4033_v60, %v3610_v61 }
 0x1f7   : > { %v758_v1 = vadd.f32 %v3596_v58, %v757_v63  ;;  %v4010_v2 = vpop.f32.mrb[6].mxu1  ;;  %v4034_v3 = vpop.f32.mrb[6].mxu0  ;;  %v934_v9 = vadd.f32 %v3610_v61, %v933_v0 }
 0x1f8   : > { %v769_v5 = vadd.f32 %v4010_v2, %v3596_v58  ;;  %v945_v6 = vadd.f32 %v4034_v3, %v3610_v61  ;;  %v760_v7 = vpop.f32.mrb[7].mxu1  ;;  %v936_v8 = vpop.f32.mrb[7].mxu0  ;;  %v4840_v19 = vmul.f32 0.35355338, %v766_v62 }
 0x1f9   : > { %v761_v10 = vadd.f32 %v3596_v58, %v760_v7  ;;  %v937_v15 = vadd.f32 %v3610_v61, %v936_v8  ;;  %v964_v23 = vmul.f32 0.35355338, %v758_v1 }
 0x1fa   : > { %v4842_v20 = vmul.f32 0.35355338, %v769_v5  ;;  %v981_v21 = vpack.c.bf16 %v945_v6, %v942_v4 }
 0x1fb   : > { %v965_v24 = vmul.f32 0.35355338, %v761_v10  ;;  %v980_v25 = vpack.c.bf16 %v937_v15, %v934_v9 }
 0x1fc   : > { %v973_v26 = vpack.c.bf16 %v4842_v20, %v4840_v19  ;;  %v4399_v19 = vld [vmem:[%s5554_s6 + $0x18] sm:$0xff]  }
 0x1fd   : > { %v972_v27 = vpack.c.bf16 %v965_v24, %v964_v23  ;;  %v4013_v28 = vpop.f32.mrb[8].mxu1  ;;  %v4037_v29 = vpop.f32.mrb[8].mxu0  ;;  %4055 = vmatprep.subr.bf16.mxu0 %v980_v25 }
 0x1fe   : > { %v782_v30 = vadd.f32 %v4013_v28, %v3596_v58  ;;  %v773_v31 = vpop.f32.mrb[9].mxu1  ;;  %v949_v32 = vpop.f32.mrb[9].mxu0  ;;  %4056 = vmatpush3.bf16.msra.mxu0 %v980_v25  ;;  %v958_v36 = vadd.f32 %v4037_v29, %v3610_v61  ;;  %v4397_v29 = vld [vmem:[%s5552_s4 + $0x18] sm:$0xff]  }
 0x1ff   : > { %v774_v33 = vadd.f32 %v3596_v58, %v773_v31  ;;  %v4014_v34 = vpop.f32.mrb[10].mxu1  ;;  %v4038_v35 = vpop.f32.mrb[10].mxu0  ;;  %4047 = vmatprep.mubr.msk.bf16.mxu1 %vm984_vm2, %v972_v27  ;;  %4057 = vmatprep.subr.bf16.mxu0 %v981_v21  ;;  %v950_v41 = vadd.f32 %v3610_v61, %v949_v32  ;;  %v4396_v27 = vld [vmem:[%s5552_s4 + $0x10] sm:$0xff]  }
 0x200   : > { %v785_v37 = vadd.f32 %v4014_v34, %v3596_v58  ;;  %v961_v38 = vadd.f32 %v4038_v35, %v3610_v61  ;;  %v776_v39 = vpop.f32.mrb[11].mxu1  ;;  %v952_v40 = vpop.f32.mrb[11].mxu0  ;;  %v970_v44 = vmul.f32 0.35355338, %v782_v30  ;;  %v4398_v30 = vld [vmem:[%s5554_s6 + $0x10] sm:$0xff]  }
 0x201   : > { %v777_v42 = vadd.f32 %v3596_v58, %v776_v39  ;;  %v953_v43 = vadd.f32 %v3610_v61, %v952_v40  ;;  %v968_v47 = vmul.f32 0.35355338, %v774_v33 }
 0x202   : > { %v971_v45 = vmul.f32 0.35355338, %v785_v37  ;;  %v983_v46 = vpack.c.bf16 %v961_v38, %v958_v36  ;;  %4058 = vmatpush3.bf16.msra.mxu0 %v981_v21 }
 0x203   : > { %v969_v48 = vmul.f32 0.35355338, %v777_v42  ;;  %v982_v49 = vpack.c.bf16 %v953_v43, %v950_v41 }
 0x204   : > { %v975_v50 = vpack.c.bf16 %v971_v45, %v970_v44  ;;  %v3634_v44 = vld [vmem:[%s5555_s7 + $0x1] ss:$0 sm:$0xff] }
 0x205   : > { %v974_v51 = vpack.c.bf16 %v969_v48, %v968_v47  ;;  %v4021_v52 = vpop.f32.mrb[12].mxu1  ;;  %4059 = vmatprep.subr.bf16.mxu0 %v982_v49 }
 0x206   : > { %v845_v59 = vpop.f32.mrb[13].mxu1  ;;  %4060 = vmatpush3.bf16.msra.mxu0 %v982_v49  ;;  %v854_v58 = vadd.f32 %v4021_v52, %v3603_v57 }
 0x207   : > { %v4022_v60 = vpop.f32.mrb[14].mxu1  ;;  %4061 = vmatprep.subr.bf16.mxu0 %v983_v46  ;;  %v846_v63 = vadd.f32 %v3603_v57, %v845_v59 }
 0x208   : > { %v857_v61 = vadd.f32 %v4022_v60, %v3603_v57  ;;  %v848_v62 = vpop.f32.mrb[15].mxu1 }
 0x209   : > { %v849_v0 = vadd.f32 %v3603_v57, %v848_v62 }
 0x20a   : > { %v977_v1 = vpack.c.bf16 %v857_v61, %v854_v58  ;;  %4062 = vmatpush3.bf16.msra.mxu0 %v983_v46 }
 0x20b   : > { %v976_v2 = vpack.c.bf16 %v849_v0, %v846_v63 }
 0x20c   : > { %v1001_v24 = vsel %vm984_vm2, %v977_v1, 0 }
 0x20d   : > { %v4025_v3 = vpop.f32.mrb[16].mxu1  ;;  %4359 = vmatprep.subr.msk.bf16.mxu1 %vm984_vm2, %v976_v2  ;;  %v998_v4 = vsel %vm984_vm2, %v976_v2, 0 }
 0x20e   : > { %v861_v5 = vpop.f32.mrb[17].mxu1  ;;  %4040 = vmatpush3.bf16.xpose.msra.mxu1 %v998_v4  ;;  %v870_v7 = vadd.f32 %v4025_v3, %v3603_v57 }
 0x20f   : > { %v4026_v6 = vpop.f32.mrb[18].mxu1  ;;  %4360 = vmatprep.subr.msk.bf16.mxu1 %vm984_vm2, %v977_v1  ;;  %v862_v10 = vadd.f32 %v3603_v57, %v861_v5 }
 0x210   : > { %v873_v8 = vadd.f32 %v4026_v6, %v3603_v57  ;;  %v864_v9 = vpop.f32.mrb[19].mxu1 }
 0x211   : > { %v865_v15 = vadd.f32 %v3603_v57, %v864_v9 }
 0x212   : > { %v979_v21 = vpack.c.bf16 %v873_v8, %v870_v7 }
 0x213   : > { %v978_v23 = vpack.c.bf16 %v865_v15, %v862_v10 }
 0x214   : > { %v1007_v28 = vsel %vm984_vm2, %v979_v21, 0 }
 0x215   : > { %v1004_v25 = vsel %vm984_vm2, %v978_v23, 0 }
 0x216   : > { %4042 = vmatpush3.bf16.xpose.msra.mxu1 %v1001_v24 }
 0x217   : > { %4361 = vmatprep.subr.msk.bf16.mxu1 %vm984_vm2, %v978_v23 }
 0x21e   : > { %4044 = vmatpush3.bf16.xpose.msra.mxu1 %v1004_v25  ;;  %v3658_v25 = vld [vmem:[%s5557_s9 + $0x1] ss:$0 sm:$0xff] }
 0x21f   : > { %4362 = vmatprep.subr.msk.bf16.mxu1 %vm984_vm2, %v979_v21 }
 0x226   : > { %4046 = vmatpush3.bf16.xpose.msra.mxu1 %v1007_v28 }
 0x227   : > { %4081 = vmatprep.subr.bf16.mxu1 %v4396_v27 }
 0x22d   : > { %4048 = vmatmul.mubr.msk.bf16.vlgmr.msra.gmra.mrb[20].mxu1 %vm984_vm2, %v973_v26 }
 0x22e   : > { %4051 = vmatprep.mubr.msk.bf16.mxu1 %vm984_vm2, %v974_v51  ;;  %4082 = vmatpush3.bf16.msra.mxu1 %v4396_v27 }
 0x22f   : > { %4083 = vmatprep.subr.bf16.mxu1 %v4397_v29 }
 0x232   : > { %4084 = vmatpush3.bf16.msra.mxu1 %v4397_v29 }
 0x233   : > { %4105 = vmatprep.subr.bf16.mxu1 %v4398_v30 }
 0x235   : > { %4052 = vmatmul.mubr.msk.bf16.gmra.mrb[24].mxu1 %vm984_vm2, %v975_v50 }
 0x236   : > { %4085 = vmatprep.mubr.msk.bf16.mxu1 %vm431_vm1, %v4799_v53 }
 0x23d   : > { %4086 = vmatmul.mubr.msk.bf16.vlgmr.msra.gmra.mrb[28].mxu1 %vm431_vm1, %v4801_v54 }
 0x23e   : > { %4089 = vmatprep.mubr.msk.bf16.mxu1 %vm431_vm1, %v4803_v55  ;;  %4106 = vmatpush3.bf16.msra.mxu1 %v4398_v30 }
 0x23f   : > { %4107 = vmatprep.subr.bf16.mxu1 %v4399_v19 }
 0x242   : > { %4108 = vmatpush3.bf16.msra.mxu1 %v4399_v19 }
 0x245   : > { %4090 = vmatmul.mubr.msk.bf16.gmra.mrb[32].mxu1 %vm431_vm1, %v4805_v56 }
 0x246   : > { %4109 = vmatprep.mubr.msk.bf16.mxu1 %vm431_vm1, %v4799_v53 }
 0x24d   : > { %4110 = vmatmul.mubr.msk.bf16.vlgmr.msra.gmra.mrb[36].mxu1 %vm431_vm1, %v4801_v54 }
 0x24e   : > { %4113 = vmatprep.mubr.msk.bf16.mxu1 %vm431_vm1, %v4803_v55 }
 0x255   : > { %4114 = vmatmul.mubr.msk.bf16.gmra.mrb[40].mxu1 %vm431_vm1, %v4805_v56 }
 0x300   : > { %v4892_v20 = vpop.f32.mrb[20].mxu1 }
 0x301   : > { %v4894_v26 = vpop.f32.mrb[21].mxu1  ;;  %v1081_v31 = vsel %vm1074_vm3, %v4892_v20, -inf }
 0x302   : > { %1082 = vmax.xlane.f32.xlu1 %v1081_v31  ;;  %v4898_v32 = vpop.f32.mrb[22].mxu1  ;;  %v1075_v33 = vsel %vm1074_vm3, %v4894_v26, -inf }
 0x303   : > { %1076 = vmax.xlane.f32.xlu0 %v1075_v33  ;;  %v4902_v34 = vpop.f32.mrb[23].mxu1  ;;  %v1084_v35 = vsel %vm1074_vm3, %v4898_v32, -inf }
 0x304   : > { %v1078_v36 = vsel %vm1074_vm3, %v4902_v34, -inf }
 0x306   : > { %1085 = vmax.xlane.f32.xlu1 %v1084_v35 }
 0x307   : > { %1079 = vmax.xlane.f32.xlu0 %v1078_v36 }
 0x308   : > { %v4908_v37 = vpop.f32.mrb[24].mxu1 }
 0x309   : > { %v4910_v38 = vpop.f32.mrb[25].mxu1  ;;  %v1093_v43 = vsel %vm1074_vm3, %v4908_v37, -inf }
 0x30a   : > { %v4912_v39 = vpop.f32.mrb[26].mxu1  ;;  %v1087_v40 = vsel %vm1074_vm3, %v4910_v38, -inf }
 0x30b   : > { %1088 = vmax.xlane.f32.xlu0 %v1087_v40  ;;  %v4916_v41 = vpop.f32.mrb[27].mxu1  ;;  %v1096_v46 = vsel %vm1074_vm3, %v4912_v39, -inf }
 0x30c   : > { %v1090_v42 = vsel %vm1074_vm3, %v4916_v41, -inf }
 0x30d   : > { %1091 = vmax.xlane.f32.xlu1 %v1090_v42 }
 0x30f   : > { %1094 = vmax.xlane.f32.xlu0 %v1093_v43 }
 0x310   : > { %v4087_v45 = vpop.f32.mrb[28].mxu1 }
 0x311   : > { %v1462_v47 = vadd.f32 %v4087_v45, %v3634_v44  ;;  %v1453_v48 = vpop.f32.mrb[29].mxu1  ;;  %1097 = vmax.xlane.f32.xlu1 %v1096_v46 }
 0x312   : > { %v1454_v49 = vadd.f32 %v3634_v44, %v1453_v48  ;;  %v4088_v50 = vpop.f32.mrb[30].mxu1 }
 0x313   : > { %v1465_v51 = vadd.f32 %v4088_v50, %v3634_v44  ;;  %v1456_v52 = vpop.f32.mrb[31].mxu1  ;;  %v4927_v59 = vmul.f32 0.35355338, %v1462_v47 }
 0x314   : > { %v1457_v57 = vadd.f32 %v3634_v44, %v1456_v52  ;;  %v4931_v58 = vmul.f32 0.35355338, %v1454_v49 }
 0x315   : > { %v4929_v60 = vmul.f32 0.35355338, %v1465_v51 }
 0x316   : > { %v4933_v61 = vmul.f32 0.35355338, %v1457_v57 }
 0x317   : > { %v1673_v62 = vpack.c.bf16 %v4929_v60, %v4927_v59 }
 0x318   : > { %v1672_v63 = vpack.c.bf16 %v4933_v61, %v4931_v58  ;;  %v4091_v0 = vpop.f32.mrb[32].mxu1 }
 0x319   : > { %v1478_v1 = vadd.f32 %v4091_v0, %v3634_v44  ;;  %v1469_v2 = vpop.f32.mrb[33].mxu1 }
 0x31a   : > { %v1470_v3 = vadd.f32 %v3634_v44, %v1469_v2  ;;  %v4092_v4 = vpop.f32.mrb[34].mxu1 }
 0x31b   : > { %v1481_v5 = vadd.f32 %v4092_v4, %v3634_v44  ;;  %v1472_v6 = vpop.f32.mrb[35].mxu1  ;;  %v4939_v8 = vmul.f32 0.35355338, %v1478_v1 }
 0x31c   : > { %v1473_v7 = vadd.f32 %v3634_v44, %v1472_v6  ;;  %v4943_v10 = vmul.f32 0.35355338, %v1470_v3 }
 0x31d   : > { %v4941_v9 = vmul.f32 0.35355338, %v1481_v5 }
 0x31e   : > { %v4945_v15 = vmul.f32 0.35355338, %v1473_v7 }
 0x31f   : > { %v1675_v21 = vpack.c.bf16 %v4941_v9, %v4939_v8 }
 0x320   : > { %v1674_v23 = vpack.c.bf16 %v4945_v15, %v4943_v10  ;;  %v4111_v24 = vpop.f32.mrb[36].mxu1 }
 0x321   : > { %v1633_v27 = vpop.f32.mrb[37].mxu1  ;;  %v1642_v29 = vadd.f32 %v4111_v24, %v3658_v25 }
 0x322   : > { %v4112_v28 = vpop.f32.mrb[38].mxu1  ;;  %v1634_v31 = vadd.f32 %v3658_v25, %v1633_v27 }
 0x323   : > { %v1645_v30 = vadd.f32 %v4112_v28, %v3658_v25  ;;  %v1636_v19 = vpop.f32.mrb[39].mxu1 }
 0x324   : > { %v1637_v33 = vadd.f32 %v3658_v25, %v1636_v19 }
 0x325   : > { %v1681_v35 = vpack.c.bf16 %v1645_v30, %v1642_v29 }
 0x326   : > { %v1680_v36 = vpack.c.bf16 %v1637_v33, %v1634_v31 }
 0x328   : > { %v4115_v40 = vpop.f32.mrb[40].mxu1  ;;  %4133 = vmatprep.subr.bf16.mxu1 %v1680_v36 }
 0x329   : > { %v1649_v42 = vpop.f32.mrb[41].mxu1  ;;  %4134 = vmatpush3.bf16.msra.mxu1 %v1680_v36  ;;  %v1658_v44 = vadd.f32 %v4115_v40, %v3658_v25 }
 0x32a   : > { %v4116_v43 = vpop.f32.mrb[42].mxu1  ;;  %4135 = vmatprep.subr.bf16.mxu1 %v1681_v35  ;;  %v1650_v47 = vadd.f32 %v3658_v25, %v1649_v42 }
 0x32b   : > { %v1661_v45 = vadd.f32 %v4116_v43, %v3658_v25  ;;  %v1652_v46 = vpop.f32.mrb[43].mxu1 }
 0x32c   : > { %v1653_v48 = vadd.f32 %v3658_v25, %v1652_v46 }
 0x32d   : > { %v1683_v49 = vpack.c.bf16 %v1661_v45, %v1658_v44  ;;  %4136 = vmatpush3.bf16.msra.mxu1 %v1681_v35 }
 0x32e   : > { %v1682_v50 = vpack.c.bf16 %v1653_v48, %v1650_v47 }
 0x330   : > { %4137 = vmatprep.subr.bf16.mxu1 %v1682_v50 }
 0x331   : > { %4138 = vmatpush3.bf16.msra.mxu1 %v1682_v50 }
 0x332   : > { %4139 = vmatprep.subr.bf16.mxu1 %v1683_v49 }
 0x335   : > { %4140 = vmatpush3.bf16.msra.mxu1 %v1683_v49 }
 0x38f   : > { %v4954_v51 = vpop.xlane.xlu1 %1082 }
 0x390   : > { %v1101_v52 = vmax.f32 %v4954_v51, -1e+30  ;;  %v4957_v57 = vpop.xlane.xlu0 %1076 }
 0x391   : > { %v1099_v0 = vmax.f32 %v4957_v57, -1e+30 }
 0x392   : > { %v1133_v1 = vsub.f32 %v4892_v20, %v1101_v52 }
 0x393   : > { %v1131_v2 = vsub.f32 %v4894_v26, %v1099_v0  ;;  %v4966_v3 = vpop.xlane.xlu1 %1085 }
 0x394   : > { %v1102_v4 = vmax.f32 %v4966_v3, -1e+30  ;;  %v4969_v5 = vpop.xlane.xlu0 %1079  ;;  %v1143_v24 = vmul.f32 1.442695, %v1133_v1 }
 0x395   : > { %v1139_v6 = vmul.f32 1.442695, %v1131_v2  ;;  %v1100_v7 = vmax.f32 %v4969_v5, -1e+30 }
 0x396   : > { %v1134_v25 = vsub.f32 %v4898_v32, %v1102_v4 }
 0x397   : > { %v1132_v20 = vsub.f32 %v4902_v34, %v1100_v7  ;;  %4416 = vpow2.f32 %v1139_v6 }
 0x398   : > { %v1145_v27 = vmul.f32 1.442695, %v1134_v25  ;;  %v4978_v26 = vpop.xlane.xlu0 %1088  ;;  %4418 = vpow2.f32 %v1143_v24 }
 0x399   : > { %v1141_v28 = vmul.f32 1.442695, %v1132_v20  ;;  %v1103_v29 = vmax.f32 %v4978_v26, -1e+30 }
 0x39a   : > { %v4981_v30 = vpop.xlane.xlu1 %1091  ;;  %4420 = vpow2.f32 %v1145_v27 }
 0x39b   : > { %v1135_v19 = vsub.f32 %v4910_v38, %v1103_v29  ;;  %v1104_v32 = vmax.f32 %v4981_v30, -1e+30  ;;  %4422 = vpow2.f32 %v1141_v28  ;;  %v1111_v51 = vsub.f32 -1e+30, %v1103_v29 }
 0x39c   : > { %v4987_v31 = vpop.xlane.xlu0 %1094 }
 0x39d   : > { %v1147_v34 = vmul.f32 1.442695, %v1135_v19  ;;  %v1136_v33 = vsub.f32 %v4916_v41, %v1104_v32  ;;  %v1105_v35 = vmax.f32 %v4987_v31, -1e+30  ;;  %v1123_v5 = vmul.f32 1.442695, %v1111_v51 }
 0x39e   : > { %v4993_v36 = vpop.xlane.xlu1 %1097 }
 0x39f   : > { %v1106_v40 = vmax.f32 %v4993_v36, -1e+30  ;;  %4424 = vpow2.f32 %v1147_v34  ;;  %v1149_v42 = vmul.f32 1.442695, %v1136_v33  ;;  %v1137_v38 = vsub.f32 %v4908_v37, %v1105_v35  ;;  %v1304_v36 = vld [vmem:[%s5558_s10] sm:$0xf] }
 0x3a0   : > { %4363 = vmatprep.subr.msk.bf16.mxu0 %vm1317_vm4, %v1304_v36 }
 0x3a1   : > { %v1138_v43 = vsub.f32 %v4912_v39, %v1106_v40  ;;  %4426 = vpow2.f32 %v1149_v42  ;;  %v1151_v44 = vmul.f32 1.442695, %v1137_v38  ;;  %v4417_v45 = vpop.eup %4416  ;;  %v1319_v42 = vsel %vm1317_vm4, %v1304_v36, 0  ;;  %v5018_v38 = vld [vmem:[%s5553_s5 + $0x10] sm:$0xff]  }
 0x3a2   : > { %v4419_v47 = vpop.eup %4418  ;;  %v1163_v48 = vsel %vm1074_vm3, %v4417_v45, 0.0 }
 0x3a3   : > { %v1153_v46 = vmul.f32 1.442695, %v1138_v43  ;;  %4428 = vpow2.f32 %v1151_v44  ;;  %1164 = vadd.xlane.f32.xlu0 %v1163_v48  ;;  %v1169_v1 = vsel %vm1074_vm3, %v4419_v47, 0.0  ;;  %v1109_v43 = vsub.f32 -1e+30, %v1101_v52 }
 0x3a4   : > { %v4421_v41 = vpop.eup %4420  ;;  %v1107_v44 = vsub.f32 -1e+30, %v1099_v0  ;;  %v1114_v52 = vsub.f32 -1e+30, %v1106_v40  ;;  %v1112_v0 = vsub.f32 -1e+30, %v1104_v32 }
 0x3a5   : > { %v1196_v49 = vpack.c.bf16 %v4421_v41, %v4419_v47  ;;  %v4423_v50 = vpop.eup %4422  ;;  %4430 = vpow2.f32 %v1153_v46  ;;  %v1172_v25 = vsel %vm1074_vm3, %v4421_v41, 0.0  ;;  %v1108_v46 = vsub.f32 -1e+30, %v1100_v7 }
 0x3a6   : > { %v1166_v2 = vsel %vm1074_vm3, %v4423_v50, 0.0  ;;  %v1195_v37 = vpack.c.bf16 %v4423_v50, %v4417_v45  ;;  %v1110_v45 = vsub.f32 -1e+30, %v1102_v4  ;;  %v1119_v47 = vmul.f32 1.442695, %v1109_v43 }
 0x3a7   : > { %1170 = vadd.xlane.f32.xlu0 %v1169_v1  ;;  %1167 = vadd.xlane.f32.xlu1 %v1166_v2  ;;  %v1115_v48 = vmul.f32 1.442695, %v1107_v44  ;;  %v1113_v50 = vsub.f32 -1e+30, %v1105_v35  ;;  %v1129_v7 = vmul.f32 1.442695, %v1114_v52 }
 0x3a8   : > { %4063 = vmatprep.mubr.msk.bf16.mxu0 %vm1074_vm3, %v1195_v37  ;;  %v1121_v41 = vmul.f32 1.442695, %v1110_v45  ;;  %4432 = vpow2.f32 %v1119_v47  ;;  %v1125_v1 = vmul.f32 1.442695, %v1112_v0 }
 0x3a9   : > { %v4425_v39 = vpop.eup %4424  ;;  %4064 = vmatmul.mubr.msk.bf16.vlgmr.msra.gmra.mrb[12].mxu0 %vm1074_vm3, %v1196_v49  ;;  %v1117_v49 = vmul.f32 1.442695, %v1108_v46  ;;  %4434 = vpow2.f32 %v1115_v48  ;;  %v1127_v3 = vmul.f32 1.442695, %v1113_v50 }
 0x3aa   : > { %v1175_v6 = vsel %vm1074_vm3, %v4425_v39, 0.0  ;;  %4072 = vmatpush3.bf16.msra.mxu0 %v1319_v42  ;;  %4436 = vpow2.f32 %v1121_v41 }
 0x3ab   : > { %v4427_v24 = vpop.eup %4426  ;;  %1176 = vadd.xlane.f32.xlu0 %v1175_v6  ;;  %1173 = vadd.xlane.f32.xlu1 %v1172_v25  ;;  %4438 = vpow2.f32 %v1117_v49 }
 0x3ac   : > { %v1197_v20 = vpack.c.bf16 %v4427_v24, %v4425_v39  ;;  %v1178_v19 = vsel %vm1074_vm3, %v4427_v24, 0.0  ;;  %4093 = vmatprep.subr.bf16.mxu0 %v5018_v38  ;;  %4440 = vpow2.f32 %v1127_v3 }
 0x3ad   : > { %v4429_v27 = vpop.eup %4428  ;;  %4442 = vpow2.f32 %v1123_v5 }
 0x3ae   : > { %4067 = vmatprep.mubr.msk.bf16.mxu0 %vm1074_vm3, %v1197_v20  ;;  %v1181_v28 = vsel %vm1074_vm3, %v4429_v27, 0.0  ;;  %4444 = vpow2.f32 %v1129_v7 }
 0x3af   : > { %v4431_v31 = vpop.eup %4430  ;;  %1182 = vadd.xlane.f32.xlu0 %v1181_v28  ;;  %1179 = vadd.xlane.f32.xlu1 %v1178_v19  ;;  %4446 = vpow2.f32 %v1125_v1 }
 0x3b0   : > { %v1198_v34 = vpack.c.bf16 %v4431_v31, %v4429_v27  ;;  %v1184_v33 = vsel %vm1074_vm3, %v4431_v31, 0.0 }
 0x3b2   : > { %4068 = vmatmul.mubr.msk.bf16.gmra.mrb[16].mxu0 %vm1074_vm3, %v1198_v34  ;;  %v4433_v37 = vpop.eup %4432 }
 0x3b3   : > { %1185 = vadd.xlane.f32.xlu1 %v1184_v33  ;;  %v4435_v35 = vpop.eup %4434  ;;  %v1157_v40 = vmul.f32 0.0, %v4433_v37 }
 0x3b4   : > { %v4437_v26 = vpop.eup %4436  ;;  %v1155_v6 = vmul.f32 0.0, %v4435_v35 }
 0x3b5   : > { %v4439_v29 = vpop.eup %4438  ;;  %v1158_v32 = vmul.f32 0.0, %v4437_v26 }
 0x3b6   : > { %v1156_v20 = vmul.f32 0.0, %v4439_v29  ;;  %v4441_v31 = vpop.eup %4440 }
 0x3b7   : > { %v4443_v34 = vpop.eup %4442  ;;  %v1161_v43 = vmul.f32 0.0, %v4441_v31 }
 0x3b8   : > { %v4445_v33 = vpop.eup %4444  ;;  %v1159_v44 = vmul.f32 0.0, %v4443_v34 }
 0x3b9   : > { %v4447_v42 = vpop.eup %4446  ;;  %v1162_v47 = vmul.f32 0.0, %v4445_v33 }
 0x3ba   : > { %v1160_v41 = vmul.f32 0.0, %v4447_v42 }
 0x430   : > { %v1165_v57 = vpop.xlane.xlu0 %1164 }
 0x431   : > { %v1187_v25 = vadd.f32 %v1165_v57, %v1155_v6 }
 0x434   : > { %v1168_v4 = vpop.xlane.xlu1 %1167  ;;  %v1171_v2 = vpop.xlane.xlu0 %1170 }
 0x435   : > { %v1189_v24 = vadd.f32 %v1171_v2, %v1157_v40  ;;  %v1188_v19 = vadd.f32 %v1168_v4, %v1156_v20 }
 0x437   : > { %4448 = vrcp.f32 %v1189_v24 }
 0x438   : > { %v1174_v39 = vpop.xlane.xlu1 %1173  ;;  %v1177_v30 = vpop.xlane.xlu0 %1176  ;;  %4450 = vrcp.f32 %v1187_v25 }
 0x439   : > { %v1190_v27 = vadd.f32 %v1174_v39, %v1158_v32  ;;  %v1191_v48 = vadd.f32 %v1177_v30, %v1159_v44 }
 0x43b   : > { %4452 = vrcp.f32 %v1190_v27 }
 0x43c   : > { %v1180_v28 = vpop.xlane.xlu1 %1179  ;;  %v1183_v36 = vpop.xlane.xlu0 %1182  ;;  %4454 = vrcp.f32 %v1188_v19 }
 0x43d   : > { %v1193_v46 = vadd.f32 %v1183_v36, %v1161_v43  ;;  %v1192_v50 = vadd.f32 %v1180_v28, %v1160_v41 }
 0x43f   : > { %4456 = vrcp.f32 %v1193_v46 }
 0x440   : > { %v1186_v45 = vpop.xlane.xlu1 %1185  ;;  %4458 = vrcp.f32 %v1191_v48 }
 0x441   : > { %v1194_v49 = vadd.f32 %v1186_v45, %v1162_v47  ;;  %v4449_v0 = vpop.eup %4448 }
 0x442   : > { %v4451_v5 = vpop.eup %4450 }
 0x443   : > { %4460 = vrcp.f32 %v1194_v49 }
 0x444   : > { %4462 = vrcp.f32 %v1192_v50 }
 0x445   : > { %v4453_v37 = vpop.eup %4452 }
 0x446   : > { %v4455_v26 = vpop.eup %4454 }
 0x47c   : > { %v4065_v51 = vpop.f32.mrb[12].mxu0 }
 0x47d   : > { %v1278_v52 = vadd.f32 %v4065_v51, %v1157_v40  ;;  %v1245_v57 = vpop.f32.mrb[13].mxu0 }
 0x47e   : > { %v1276_v3 = vadd.f32 %v1245_v57, %v1155_v6  ;;  %v4066_v4 = vpop.f32.mrb[14].mxu0  ;;  %v4401_v6 = vld [vmem:[%s5553_s5 + $0x18] sm:$0xff]  }
 0x47f   : > { %v1294_v7 = vmul.f32 %v4449_v0, %v1278_v52  ;;  %v1279_v1 = vadd.f32 %v4066_v4, %v1158_v32  ;;  %v1248_v2 = vpop.f32.mrb[15].mxu0  ;;  %v4457_v32 = vpop.eup %4456 }
 0x480   : > { %v1292_v35 = vmul.f32 %v4451_v5, %v1276_v3  ;;  %v1277_v39 = vadd.f32 %v1248_v2, %v1156_v20  ;;  %v4459_v20 = vpop.eup %4458 }
 0x481   : > { %v1295_v29 = vmul.f32 %v4453_v37, %v1279_v1  ;;  %v4461_v42 = vpop.eup %4460 }
 0x482   : > { %v1293_v24 = vmul.f32 %v4455_v26, %v1277_v39  ;;  %v4463_v48 = vpop.eup %4462 }
 0x483   : > { %v1301_v30 = vpack.c.bf16 %v1295_v29, %v1294_v7 }
 0x484   : > { %v1300_v25 = vpack.c.bf16 %v1293_v24, %v1292_v35 }
 0x485   : > { %v4069_v40 = vpop.f32.mrb[16].mxu0 }
 0x486   : > { %v1282_v27 = vadd.f32 %v4069_v40, %v1161_v43  ;;  %v1261_v28 = vpop.f32.mrb[17].mxu0  ;;  %4073 = vmatprep.mubr.msk.bf16.mxu0 %vm984_vm2, %v1300_v25 }
 0x487   : > { %v1280_v19 = vadd.f32 %v1261_v28, %v1159_v44  ;;  %v4070_v31 = vpop.f32.mrb[18].mxu0  ;;  %4074 = vmatmul.mubr.msk.bf16.vlgmr.msra.gmra.mrb[20].mxu0 %vm984_vm2, %v1301_v30  ;;  %v3646_v44 = vld [vmem:[%s5556_s8 + $0x1] ss:$0 sm:$0xff] }
 0x488   : > { %v1298_v34 = vmul.f32 %v4457_v32, %v1282_v27  ;;  %v1283_v33 = vadd.f32 %v4070_v31, %v1162_v47  ;;  %v1264_v36 = vpop.f32.mrb[19].mxu0  ;;  %4094 = vmatpush3.bf16.msra.mxu0 %v5018_v38 }
 0x489   : > { %v1296_v45 = vmul.f32 %v4459_v20, %v1280_v19  ;;  %v1281_v46 = vadd.f32 %v1264_v36, %v1160_v41  ;;  %4095 = vmatprep.subr.bf16.mxu0 %v4401_v6 }
 0x48a   : > { %v1299_v43 = vmul.f32 %v4461_v42, %v1283_v33 }
 0x48b   : > { %v1297_v49 = vmul.f32 %v4463_v48, %v1281_v46 }
 0x48c   : > { %v1303_v50 = vpack.c.bf16 %v1299_v43, %v1298_v34  ;;  %4096 = vmatpush3.bf16.msra.mxu0 %v4401_v6  ;;  %v4402_v34 = vld [vmem:[%s5552_s4 + $0x20] sm:$0xff]  }
 0x48d   : > { %v1302_v51 = vpack.c.bf16 %v1297_v49, %v1296_v45  ;;  %4159 = vmatprep.subr.bf16.mxu1 %v4402_v34 }
 0x48f   : > { %4077 = vmatprep.mubr.msk.bf16.mxu0 %vm984_vm2, %v1302_v51 }
 0x490   : > { %4078 = vmatmul.mubr.msk.bf16.gmra.mrb[24].mxu0 %vm984_vm2, %v1303_v50 }
 0x491   : > { %4097 = vmatprep.mubr.msk.bf16.mxu0 %vm431_vm1, %v4799_v53 }
 0x498   : > { %4098 = vmatmul.mubr.msk.bf16.vlgmr.msra.gmra.mrb[28].mxu0 %vm431_vm1, %v4801_v54 }
 0x499   : > { %4101 = vmatprep.mubr.msk.bf16.mxu0 %vm431_vm1, %v4803_v55 }
 0x4a0   : > { %4102 = vmatmul.mubr.msk.bf16.gmra.mrb[32].mxu0 %vm431_vm1, %v4805_v56 }
 0x4a1   : > { %4125 = vmatprep.mubr.msk.bf16.mxu0 %vm984_vm2, %v1672_v63 }
 0x56b   : > { %v4099_v38 = vpop.f32.mrb[28].mxu0 }
 0x56c   : > { %v1543_v47 = vpop.f32.mrb[29].mxu0  ;;  %v1552_v52 = vadd.f32 %v4099_v38, %v3646_v44 }
 0x56d   : > { %v4100_v41 = vpop.f32.mrb[30].mxu0  ;;  %v1544_v3 = vadd.f32 %v3646_v44, %v1543_v47 }
 0x56e   : > { %v1555_v57 = vadd.f32 %v4100_v41, %v3646_v44  ;;  %v1546_v0 = vpop.f32.mrb[31].mxu0 }
 0x56f   : > { %v1547_v4 = vadd.f32 %v3646_v44, %v1546_v0 }
 0x570   : > { %v1677_v5 = vpack.c.bf16 %v1555_v57, %v1552_v52 }
 0x571   : > { %v1676_v7 = vpack.c.bf16 %v1547_v4, %v1544_v3 }
 0x572   : > { %v1700_v30 = vsel %vm984_vm2, %v1677_v5, 0 }
 0x573   : > { %v4103_v1 = vpop.f32.mrb[32].mxu0  ;;  %4364 = vmatprep.subr.msk.bf16.mxu0 %vm984_vm2, %v1676_v7  ;;  %v1697_v58 = vsel %vm984_vm2, %v1676_v7, 0 }
 0x574   : > { %v1559_v61 = vpop.f32.mrb[33].mxu0  ;;  %4118 = vmatpush3.bf16.xpose.msra.mxu0 %v1697_v58  ;;  %v1568_v2 = vadd.f32 %v4103_v1, %v3646_v44 }
 0x575   : > { %v4104_v63 = vpop.f32.mrb[34].mxu0  ;;  %4365 = vmatprep.subr.msk.bf16.mxu0 %vm984_vm2, %v1677_v5  ;;  %v1560_v39 = vadd.f32 %v3646_v44, %v1559_v61 }
 0x576   : > { %v1571_v37 = vadd.f32 %v4104_v63, %v3646_v44  ;;  %v1562_v35 = vpop.f32.mrb[35].mxu0 }
 0x577   : > { %v1563_v26 = vadd.f32 %v3646_v44, %v1562_v35 }
 0x578   : > { %v1679_v29 = vpack.c.bf16 %v1571_v37, %v1568_v2 }
 0x579   : > { %v1678_v24 = vpack.c.bf16 %v1563_v26, %v1560_v39 }
 0x57a   : > { %v1706_v40 = vsel %vm984_vm2, %v1679_v29, 0 }
 0x57b   : > { %v1703_v25 = vsel %vm984_vm2, %v1678_v24, 0 }
 0x57c   : > { %4120 = vmatpush3.bf16.xpose.msra.mxu0 %v1700_v30 }
 0x57d   : > { %4366 = vmatprep.subr.msk.bf16.mxu0 %vm984_vm2, %v1678_v24 }
 0x584   : > { %4122 = vmatpush3.bf16.xpose.msra.mxu0 %v1703_v25 }
 0x585   : > { %4367 = vmatprep.subr.msk.bf16.mxu0 %vm984_vm2, %v1679_v29 }
 0x58c   : > { %4124 = vmatpush3.bf16.xpose.msra.mxu0 %v1706_v40 }
 0x593   : > { %4126 = vmatmul.mubr.msk.bf16.vlgmr.msra.gmra.mrb[36].mxu0 %vm984_vm2, %v1673_v62 }
 0x594   : > { %4129 = vmatprep.mubr.msk.bf16.mxu0 %vm984_vm2, %v1674_v23 }
 0x59b   : > { %4130 = vmatmul.mubr.msk.bf16.gmra.mrb[40].mxu0 %vm984_vm2, %v1675_v21 }
 0x666   : > { %v4127_v6 = vpop.f32.mrb[36].mxu0 }
 0x667   : > { %v1742_v27 = vpop.f32.mrb[37].mxu0  ;;  %v1779_v60 = vsel %vm1074_vm3, %v4127_v6, -inf }
 0x668   : > { %v4128_v28 = vpop.f32.mrb[38].mxu0  ;;  %v1773_v32 = vsel %vm1074_vm3, %v1742_v27, -inf }
 0x669   : > { %1774 = vmax.xlane.f32.xlu0 %v1773_v32  ;;  %v1745_v19 = vpop.f32.mrb[39].mxu0  ;;  %v1782_v10 = vsel %vm1074_vm3, %v4128_v28, -inf }
 0x66a   : > { %v1776_v59 = vsel %vm1074_vm3, %v1745_v19, -inf }
 0x66b   : > { %1777 = vmax.xlane.f32.xlu1 %v1776_v59 }
 0x66d   : > { %1780 = vmax.xlane.f32.xlu0 %v1779_v60 }
 0x66e   : > { %v4131_v62 = vpop.f32.mrb[40].mxu0 }
 0x66f   : > { %1783 = vmax.xlane.f32.xlu1 %v1782_v10  ;;  %v1758_v8 = vpop.f32.mrb[41].mxu0  ;;  %v1791_v31 = vsel %vm1074_vm3, %v4131_v62, -inf }
 0x670   : > { %v4132_v9 = vpop.f32.mrb[42].mxu0  ;;  %v1785_v15 = vsel %vm1074_vm3, %v1758_v8, -inf }
 0x671   : > { %1786 = vmax.xlane.f32.xlu0 %v1785_v15  ;;  %v1761_v21 = vpop.f32.mrb[43].mxu0  ;;  %v1794_v20 = vsel %vm1074_vm3, %v4132_v9, -inf }
 0x672   : > { %v1788_v23 = vsel %vm1074_vm3, %v1761_v21, -inf }
 0x673   : > { %1789 = vmax.xlane.f32.xlu1 %v1788_v23  ;;  %v4404_v23 = vld [vmem:[%s5553_s5 + $0x20] sm:$0xff]  }
 0x675   : > { %1792 = vmax.xlane.f32.xlu0 %v1791_v31 }
 0x677   : > { %1795 = vmax.xlane.f32.xlu1 %v1794_v20 }
 0x6f6   : > { %v5087_v33 = vpop.xlane.xlu0 %1774 }
 0x6f7   : > { %v1797_v36 = vmax.f32 %v5087_v33, -1e+30 }
 0x6f8   : > { %v5090_v42 = vpop.xlane.xlu1 %1777 }
 0x6f9   : > { %v1829_v45 = vsub.f32 %v1742_v27, %v1797_v36  ;;  %v1798_v46 = vmax.f32 %v5090_v42, -1e+30 }
 0x6fa   : > { %v5095_v48 = vpop.xlane.xlu0 %1780 }
 0x6fb   : > { %v1837_v43 = vmul.f32 1.442695, %v1829_v45  ;;  %v1830_v49 = vsub.f32 %v1745_v19, %v1798_v46  ;;  %v1799_v50 = vmax.f32 %v5095_v48, -1e+30 }
 0x6fc   : > { %v5100_v51 = vpop.xlane.xlu1 %1783 }
 0x6fd   : > { %v1839_v38 = vmul.f32 1.442695, %v1830_v49  ;;  %v1800_v44 = vmax.f32 %v5100_v51, -1e+30  ;;  %4464 = vpow2.f32 %v1837_v43  ;;  %v1831_v47 = vsub.f32 %v4127_v6, %v1799_v50  ;;  %v4405_v49 = vld [vmem:[%s5553_s5 + $0x28] sm:$0xff]  }
 0x6fe   : > { %v5105_v41 = vpop.xlane.xlu0 %1786 }
 0x6ff   : > { %v1832_v52 = vsub.f32 %v4128_v28, %v1800_v44  ;;  %v1801_v57 = vmax.f32 %v5105_v41, -1e+30  ;;  %4466 = vpow2.f32 %v1839_v38  ;;  %v1841_v0 = vmul.f32 1.442695, %v1831_v47  ;;  %v3673_v38 = vld [vmem:[%s5558_s10 + $0x4] sm:$0xf] }
 0x700   : > { %v5110_v3 = vpop.xlane.xlu1 %1789  ;;  %4368 = vmatprep.subr.msk.bf16.mxu0 %vm1317_vm4, %v3673_v38  ;;  %v2017_v47 = vsel %vm1317_vm4, %v3673_v38, 0 }
 0x701   : > { %v1843_v4 = vmul.f32 1.442695, %v1832_v52  ;;  %v1833_v5 = vsub.f32 %v1758_v8, %v1801_v57  ;;  %v1802_v7 = vmax.f32 %v5110_v3, -1e+30  ;;  %4468 = vpow2.f32 %v1841_v0  ;;  %4150 = vmatpush3.bf16.msra.mxu0 %v2017_v47  ;;  %v5172_v52 = vld [vmem:[%s5554_s6 + $0x20] sm:$0xff]  }
 0x702   : > { %v5115_v1 = vpop.xlane.xlu0 %1792  ;;  %4183 = vmatprep.subr.bf16.mxu0 %v5172_v52  ;;  %v1807_v0 = vsub.f32 -1e+30, %v1799_v50  ;;  %v1809_v48 = vsub.f32 -1e+30, %v1801_v57 }
 0x703   : > { %v1845_v58 = vmul.f32 1.442695, %v1833_v5  ;;  %v1803_v61 = vmax.f32 %v5115_v1, -1e+30  ;;  %v1834_v63 = vsub.f32 %v1761_v21, %v1802_v7  ;;  %4470 = vpow2.f32 %v1843_v4 }
 0x704   : > { %v5120_v2 = vpop.xlane.xlu1 %1795  ;;  %v1805_v4 = vsub.f32 -1e+30, %v1797_v36  ;;  %v1808_v5 = vsub.f32 -1e+30, %v1800_v44  ;;  %v1810_v42 = vsub.f32 -1e+30, %v1802_v7 }
 0x705   : > { %v1835_v37 = vsub.f32 %v4131_v62, %v1803_v61  ;;  %v1804_v35 = vmax.f32 %v5120_v2, -1e+30  ;;  %v1847_v39 = vmul.f32 1.442695, %v1834_v63  ;;  %4472 = vpow2.f32 %v1845_v58  ;;  %v4403_v62 = vld [vmem:[%s5552_s4 + $0x28] sm:$0xff]  }
 0x706   : > { %v1806_v58 = vsub.f32 -1e+30, %v1798_v46  ;;  %v1817_v63 = vmul.f32 1.442695, %v1807_v0  ;;  %v1821_v51 = vmul.f32 1.442695, %v1809_v48 }
 0x707   : > { %v1849_v26 = vmul.f32 1.442695, %v1835_v37  ;;  %v4465_v29 = vpop.eup %4464  ;;  %v1836_v24 = vsub.f32 %v4132_v9, %v1804_v35  ;;  %4474 = vpow2.f32 %v1847_v39  ;;  %v1813_v37 = vmul.f32 1.442695, %v1805_v4 }
 0x708   : > { %v1861_v30 = vsel %vm1074_vm3, %v4465_v29, 0.0  ;;  %v1819_v39 = vmul.f32 1.442695, %v1808_v5  ;;  %v1812_v33 = vsub.f32 -1e+30, %v1804_v35 }
 0x709   : > { %v4467_v25 = vpop.eup %4466  ;;  %v1851_v40 = vmul.f32 1.442695, %v1836_v24  ;;  %1862 = vadd.xlane.f32.xlu0 %v1861_v30  ;;  %4476 = vpow2.f32 %v1849_v26  ;;  %v1815_v26 = vmul.f32 1.442695, %v1806_v58  ;;  %v1823_v24 = vmul.f32 1.442695, %v1810_v42 }
 0x70a   : > { %v1864_v6 = vsel %vm1074_vm3, %v4467_v25, 0.0  ;;  %v1893_v27 = vpack.c.bf16 %v4467_v25, %v4465_v29  ;;  %v1811_v29 = vsub.f32 -1e+30, %v1803_v61  ;;  %v1827_v44 = vmul.f32 1.442695, %v1812_v33 }
 0x70b   : > { %1865 = vadd.xlane.f32.xlu1 %v1864_v6  ;;  %v4469_v28 = vpop.eup %4468  ;;  %4478 = vpow2.f32 %v1851_v40 }
 0x70c   : > { %4141 = vmatprep.mubr.msk.bf16.mxu1 %vm1074_vm3, %v1893_v27  ;;  %v1867_v32 = vsel %vm1074_vm3, %v4469_v28, 0.0  ;;  %4480 = vpow2.f32 %v1817_v63  ;;  %v1825_v46 = vmul.f32 1.442695, %v1811_v29 }
 0x70d   : > { %v4471_v19 = vpop.eup %4470  ;;  %1868 = vadd.xlane.f32.xlu0 %v1867_v32  ;;  %4482 = vpow2.f32 %v1813_v37 }
 0x70e   : > { %v1894_v59 = vpack.c.bf16 %v4471_v19, %v4469_v28  ;;  %v1870_v60 = vsel %vm1074_vm3, %v4471_v19, 0.0  ;;  %4484 = vpow2.f32 %v1819_v39 }
 0x70f   : > { %v4473_v10 = vpop.eup %4472  ;;  %1871 = vadd.xlane.f32.xlu1 %v1870_v60  ;;  %4486 = vpow2.f32 %v1815_v26 }
 0x710   : > { %4142 = vmatmul.mubr.msk.bf16.vlgmr.msra.gmra.mrb[44].mxu1 %vm1074_vm3, %v1894_v59  ;;  %v1873_v8 = vsel %vm1074_vm3, %v4473_v10, 0.0  ;;  %4488 = vpow2.f32 %v1825_v46 }
 0x711   : > { %v4475_v9 = vpop.eup %4474  ;;  %4160 = vmatpush3.bf16.msra.mxu1 %v4402_v34  ;;  %1874 = vadd.xlane.f32.xlu0 %v1873_v8  ;;  %4490 = vpow2.f32 %v1821_v51 }
 0x712   : > { %v1876_v15 = vsel %vm1074_vm3, %v4475_v9, 0.0  ;;  %v1895_v21 = vpack.c.bf16 %v4475_v9, %v4473_v10  ;;  %4161 = vmatprep.subr.bf16.mxu1 %v4403_v62  ;;  %4492 = vpow2.f32 %v1827_v44 }
 0x713   : > { %v4477_v31 = vpop.eup %4476  ;;  %1877 = vadd.xlane.f32.xlu1 %v1876_v15  ;;  %4494 = vpow2.f32 %v1823_v24 }
 0x714   : > { %4145 = vmatprep.mubr.msk.bf16.mxu1 %vm1074_vm3, %v1895_v21  ;;  %v1879_v20 = vsel %vm1074_vm3, %v4477_v31, 0.0 }
 0x715   : > { %v4479_v45 = vpop.eup %4478  ;;  %1880 = vadd.xlane.f32.xlu0 %v1879_v20  ;;  %4162 = vmatpush3.bf16.msra.mxu1 %v4403_v62 }
 0x716   : > { %v1882_v34 = vsel %vm1074_vm3, %v4479_v45, 0.0  ;;  %v1896_v43 = vpack.c.bf16 %v4479_v45, %v4477_v31  ;;  %4171 = vmatprep.subr.bf16.mxu1 %v4404_v23  ;;  %v4481_v61 = vpop.eup %4480 }
 0x717   : > { %1883 = vadd.xlane.f32.xlu1 %v1882_v34  ;;  %v4483_v57 = vpop.eup %4482  ;;  %v1855_v30 = vmul.f32 0.0, %v4481_v61 }
 0x718   : > { %4146 = vmatmul.mubr.msk.bf16.gmra.mrb[48].mxu1 %vm1074_vm3, %v1896_v43  ;;  %v4485_v2 = vpop.eup %4484  ;;  %v1853_v25 = vmul.f32 0.0, %v4483_v57 }
 0x719   : > { %4163 = vmatprep.mubr.msk.bf16.mxu1 %vm431_vm1, %v4799_v53  ;;  %v4487_v35 = vpop.eup %4486  ;;  %v1856_v7 = vmul.f32 0.0, %v4485_v2 }
 0x71a   : > { %v1854_v27 = vmul.f32 0.0, %v4487_v35  ;;  %v4489_v19 = vpop.eup %4488 }
 0x71b   : > { %v4491_v60 = vpop.eup %4490  ;;  %v1859_v9 = vmul.f32 0.0, %v4489_v19 }
 0x71c   : > { %v4493_v62 = vpop.eup %4492  ;;  %v1857_v15 = vmul.f32 0.0, %v4491_v60 }
 0x71d   : > { %v4495_v8 = vpop.eup %4494  ;;  %v1860_v31 = vmul.f32 0.0, %v4493_v62 }
 0x71e   : > { %v1858_v45 = vmul.f32 0.0, %v4495_v8 }
 0x720   : > { %4164 = vmatmul.mubr.msk.bf16.vlgmr.msra.gmra.mrb[52].mxu1 %vm431_vm1, %v4801_v54 }
 0x721   : > { %4172 = vmatpush3.bf16.msra.mxu1 %v4404_v23  ;;  %4167 = vmatprep.mubr.msk.bf16.mxu1 %vm431_vm1, %v4803_v55 }
 0x722   : > { %4173 = vmatprep.subr.bf16.mxu1 %v4405_v49 }
 0x725   : > { %4174 = vmatpush3.bf16.msra.mxu1 %v4405_v49 }
 0x728   : > { %4168 = vmatmul.mubr.msk.bf16.gmra.mrb[56].mxu1 %vm431_vm1, %v4805_v56 }
 0x729   : > { %4175 = vmatprep.mubr.msk.bf16.mxu1 %vm431_vm1, %v4799_v53 }
 0x730   : > { %4176 = vmatmul.mubr.msk.bf16.vlgmr.msra.gmra.mrb[60].mxu1 %vm431_vm1, %v4801_v54 }
 0x731   : > { %4179 = vmatprep.mubr.msk.bf16.mxu1 %vm431_vm1, %v4803_v55 }
 0x738   : > { %4180 = vmatmul.mubr.msk.bf16.gmra.mrb[64].mxu1 %vm431_vm1, %v4805_v56 }
 0x796   : > { %v1863_v36 = vpop.xlane.xlu0 %1862 }
 0x797   : > { %v1885_v6 = vadd.f32 %v1863_v36, %v1853_v25 }
 0x798   : > { %v1866_v50 = vpop.xlane.xlu1 %1865 }
 0x799   : > { %v1886_v59 = vadd.f32 %v1866_v50, %v1854_v27 }
 0x79a   : > { %v1869_v1 = vpop.xlane.xlu0 %1868 }
 0x79b   : > { %v1887_v3 = vadd.f32 %v1869_v1, %v1855_v30  ;;  %v4407_v1 = vld [vmem:[%s5554_s6 + $0x28] sm:$0xff]  }
 0x79c   : > { %v1872_v41 = vpop.xlane.xlu1 %1871 }
 0x79d   : > { %v1888_v32 = vadd.f32 %v1872_v41, %v1856_v7  ;;  %4496 = vrcp.f32 %v1887_v3 }
 0x79e   : > { %v1875_v40 = vpop.xlane.xlu0 %1874  ;;  %4498 = vrcp.f32 %v1885_v6 }
 0x79f   : > { %4500 = vrcp.f32 %v1888_v32  ;;  %v1889_v20 = vadd.f32 %v1875_v40, %v1857_v15  ;;  %v3683_v32 = vld [vmem:[%s5555_s7 + $0x2] ss:$0 sm:$0xff] }
 0x7a0   : > { %v1878_v28 = vpop.xlane.xlu1 %1877  ;;  %4502 = vrcp.f32 %v1886_v59 }
 0x7a1   : > { %v1890_v43 = vadd.f32 %v1878_v28, %v1858_v45 }
 0x7a2   : > { %v1881_v10 = vpop.xlane.xlu0 %1880 }
 0x7a3   : > { %v1891_v23 = vadd.f32 %v1881_v10, %v1859_v9 }
 0x7a4   : > { %v1884_v21 = vpop.xlane.xlu1 %1883 }
 0x7a5   : > { %v1892_v34 = vadd.f32 %v1884_v21, %v1860_v31  ;;  %4504 = vrcp.f32 %v1891_v23 }
 0x7a6   : > { %4506 = vrcp.f32 %v1889_v20 }
 0x7a7   : > { %v4497_v0 = vpop.eup %4496  ;;  %4508 = vrcp.f32 %v1892_v34 }
 0x7a8   : > { %v4499_v58 = vpop.eup %4498  ;;  %4510 = vrcp.f32 %v1890_v43 }
 0x7a9   : > { %v4501_v26 = vpop.eup %4500 }
 0x7aa   : > { %v4503_v33 = vpop.eup %4502 }
 0x7af   : > { %v4505_v61 = vpop.eup %4504 }
 0x7b0   : > { %v4507_v2 = vpop.eup %4506 }
 0x7b1   : > { %v4509_v40 = vpop.eup %4508 }
 0x7b2   : > { %v4511_v6 = vpop.eup %4510 }
 0x7e3   : > { %v4143_v49 = vpop.f32.mrb[44].mxu1 }
 0x7e4   : > { %v1976_v38 = vadd.f32 %v4143_v49, %v1855_v30  ;;  %v1943_v47 = vpop.f32.mrb[45].mxu1 }
 0x7e5   : > { %v1974_v4 = vadd.f32 %v1943_v47, %v1853_v25  ;;  %v4144_v5 = vpop.f32.mrb[46].mxu1 }
 0x7e6   : > { %v1992_v63 = vmul.f32 %v4497_v0, %v1976_v38  ;;  %v1977_v37 = vadd.f32 %v4144_v5, %v1856_v7  ;;  %v1946_v39 = vpop.f32.mrb[47].mxu1 }
 0x7e7   : > { %v1990_v29 = vmul.f32 %v4499_v58, %v1974_v4  ;;  %v1975_v48 = vadd.f32 %v1946_v39, %v1854_v27 }
 0x7e8   : > { %v1993_v36 = vmul.f32 %v4501_v26, %v1977_v37 }
 0x7e9   : > { %v1991_v42 = vmul.f32 %v4503_v33, %v1975_v48 }
 0x7ea   : > { %v1999_v46 = vpack.c.bf16 %v1993_v36, %v1992_v63 }
 0x7eb   : > { %v1998_v50 = vpack.c.bf16 %v1991_v42, %v1990_v29  ;;  %v4147_v51 = vpop.f32.mrb[48].mxu1  ;;  %v3695_v42 = vld [vmem:[%s5556_s8 + $0x2] ss:$0 sm:$0xff] }
 0x7ec   : > { %v1980_v44 = vadd.f32 %v4147_v51, %v1859_v9  ;;  %v1959_v24 = vpop.f32.mrb[49].mxu1 }
 0x7ed   : > { %v1978_v41 = vadd.f32 %v1959_v24, %v1857_v15  ;;  %v4148_v57 = vpop.f32.mrb[50].mxu1  ;;  %4151 = vmatprep.mubr.msk.bf16.mxu0 %vm984_vm2, %v1998_v50 }
 0x7ee   : > { %v1996_v35 = vmul.f32 %v4505_v61, %v1980_v44  ;;  %v1981_v30 = vadd.f32 %v4148_v57, %v1860_v31  ;;  %v1962_v25 = vpop.f32.mrb[51].mxu1  ;;  %4152 = vmatmul.mubr.msk.bf16.vlgmr.msra.gmra.mrb[20].mxu0 %vm984_vm2, %v1999_v46 }
 0x7ef   : > { %v1994_v3 = vmul.f32 %v4507_v2, %v1978_v41  ;;  %v1979_v7 = vadd.f32 %v1962_v25, %v1858_v45  ;;  %4184 = vmatpush3.bf16.msra.mxu0 %v5172_v52 }
 0x7f0   : > { %v1997_v27 = vmul.f32 %v4509_v40, %v1981_v30  ;;  %4185 = vmatprep.subr.bf16.mxu0 %v4407_v1 }
 0x7f1   : > { %v1995_v28 = vmul.f32 %v4511_v6, %v1979_v7 }
 0x7f2   : > { %v2001_v19 = vpack.c.bf16 %v1997_v27, %v1996_v35 }
 0x7f3   : > { %v2000_v59 = vpack.c.bf16 %v1995_v28, %v1994_v3  ;;  %v4165_v60 = vpop.f32.mrb[52].mxu1  ;;  %4186 = vmatpush3.bf16.msra.mxu0 %v4407_v1 }
 0x7f4   : > { %v2160_v62 = vadd.f32 %v4165_v60, %v3683_v32  ;;  %v2151_v10 = vpop.f32.mrb[53].mxu1  ;;  %v4408_v60 = vld [vmem:[%s5552_s4 + $0x30] sm:$0xff]  }
 0x7f5   : > { %v2152_v8 = vadd.f32 %v3683_v32, %v2151_v10  ;;  %4155 = vmatprep.mubr.msk.bf16.mxu0 %vm984_vm2, %v2000_v59  ;;  %v4166_v9 = vpop.f32.mrb[54].mxu1  ;;  %v4409_v10 = vld [vmem:[%s5552_s4 + $0x38] sm:$0xff]  }
 0x7f6   : > { %v2163_v15 = vadd.f32 %v4166_v9, %v3683_v32  ;;  %4156 = vmatmul.mubr.msk.bf16.gmra.mrb[24].mxu0 %vm984_vm2, %v2001_v19  ;;  %v2154_v52 = vpop.f32.mrb[55].mxu1  ;;  %v2364_v23 = vmul.f32 0.35355338, %v2160_v62  ;;  %v4411_v9 = vld [vmem:[%s5554_s6 + $0x38] sm:$0xff]  }
 0x7f7   : > { %v2155_v21 = vadd.f32 %v3683_v32, %v2154_v52  ;;  %4187 = vmatprep.mubr.msk.bf16.mxu0 %vm431_vm1, %v4799_v53  ;;  %v2362_v20 = vmul.f32 0.35355338, %v2152_v8  ;;  %v4410_v8 = vld [vmem:[%s5554_s6 + $0x30] sm:$0xff]   ;;  %v3707_v52 = vld [vmem:[%s5557_s9 + $0x2] ss:$0 sm:$0xff] }
 0x7f8   : > { %v2365_v31 = vmul.f32 0.35355338, %v2163_v15 }
 0x7f9   : > { %v2363_v45 = vmul.f32 0.35355338, %v2155_v21 }
 0x7fa   : > { %v2371_v34 = vpack.c.bf16 %v2365_v31, %v2364_v23 }
 0x7fb   : > { %v2370_v43 = vpack.c.bf16 %v2363_v45, %v2362_v20  ;;  %v4169_v49 = vpop.f32.mrb[56].mxu1 }
 0x7fc   : > { %v2176_v38 = vadd.f32 %v4169_v49, %v3683_v32  ;;  %v2167_v47 = vpop.f32.mrb[57].mxu1 }
 0x7fd   : > { %v2168_v0 = vadd.f32 %v3683_v32, %v2167_v47  ;;  %v4170_v4 = vpop.f32.mrb[58].mxu1  ;;  %4203 = vmatprep.mubr.msk.bf16.mxu1 %vm984_vm2, %v2370_v43 }
 0x7fe   : > { %v2179_v5 = vadd.f32 %v4170_v4, %v3683_v32  ;;  %v2170_v58 = vpop.f32.mrb[59].mxu1  ;;  %4188 = vmatmul.mubr.msk.bf16.vlgmr.msra.gmra.mrb[44].mxu0 %vm431_vm1, %v4801_v54  ;;  %v2368_v37 = vmul.f32 0.35355338, %v2176_v38 }
 0x7ff   : > { %v2171_v63 = vadd.f32 %v3683_v32, %v2170_v58  ;;  %4191 = vmatprep.mubr.msk.bf16.mxu0 %vm431_vm1, %v4803_v55  ;;  %v2366_v26 = vmul.f32 0.35355338, %v2168_v0 }
 0x800   : > { %v2369_v39 = vmul.f32 0.35355338, %v2179_v5 }
 0x801   : > { %v2367_v29 = vmul.f32 0.35355338, %v2171_v63 }
 0x802   : > { %v2373_v48 = vpack.c.bf16 %v2369_v39, %v2368_v37 }
 0x803   : > { %v2372_v33 = vpack.c.bf16 %v2367_v29, %v2366_v26  ;;  %v4177_v36 = vpop.f32.mrb[60].mxu1 }
 0x804   : > { %v2241_v46 = vpop.f32.mrb[61].mxu1  ;;  %v2250_v51 = vadd.f32 %v4177_v36, %v3695_v42 }
 0x805   : > { %v4178_v50 = vpop.f32.mrb[62].mxu1  ;;  %v2242_v1 = vadd.f32 %v3695_v42, %v2241_v46 }
 0x806   : > { %v2253_v44 = vadd.f32 %v4178_v50, %v3695_v42  ;;  %v2244_v24 = vpop.f32.mrb[63].mxu1  ;;  %4192 = vmatmul.mubr.msk.bf16.gmra.mrb[48].mxu0 %vm431_vm1, %v4805_v56 }
 0x807   : > { %v2245_v61 = vadd.f32 %v3695_v42, %v2244_v24 }
 0x808   : > { %v2375_v41 = vpack.c.bf16 %v2253_v44, %v2250_v51 }
 0x809   : > { %v2374_v57 = vpack.c.bf16 %v2245_v61, %v2242_v1 }
 0x80a   : > { %v2398_v19 = vsel %vm984_vm2, %v2375_v41, 0 }
 0x80b   : > { %v4181_v2 = vpop.f32.mrb[64].mxu1  ;;  %4369 = vmatprep.subr.msk.bf16.mxu1 %vm984_vm2, %v2374_v57  ;;  %v2395_v35 = vsel %vm984_vm2, %v2374_v57, 0 }
 0x80c   : > { %v2257_v30 = vpop.f32.mrb[65].mxu1  ;;  %4196 = vmatpush3.bf16.xpose.msra.mxu1 %v2395_v35  ;;  %v2266_v40 = vadd.f32 %v4181_v2, %v3695_v42 }
 0x80d   : > { %v4182_v25 = vpop.f32.mrb[66].mxu1  ;;  %4370 = vmatprep.subr.msk.bf16.mxu1 %vm984_vm2, %v2375_v41  ;;  %v2258_v6 = vadd.f32 %v3695_v42, %v2257_v30  ;;  %v3732_v30 = vld [vmem:[%s5555_s7 + $0x3] ss:$0 sm:$0xff] }
 0x80e   : > { %v2269_v3 = vadd.f32 %v4182_v25, %v3695_v42  ;;  %v2260_v7 = vpop.f32.mrb[67].mxu1 }
 0x80f   : > { %v2261_v27 = vadd.f32 %v3695_v42, %v2260_v7 }
 0x810   : > { %v2377_v28 = vpack.c.bf16 %v2269_v3, %v2266_v40 }
 0x811   : > { %v2376_v32 = vpack.c.bf16 %v2261_v27, %v2258_v6 }
 0x812   : > { %v2404_v62 = vsel %vm984_vm2, %v2377_v28, 0 }
 0x813   : > { %v2401_v59 = vsel %vm984_vm2, %v2376_v32, 0 }
 0x814   : > { %4198 = vmatpush3.bf16.xpose.msra.mxu1 %v2398_v19 }
 0x815   : > { %4371 = vmatprep.subr.msk.bf16.mxu1 %vm984_vm2, %v2376_v32 }
 0x81c   : > { %4200 = vmatpush3.bf16.xpose.msra.mxu1 %v2401_v59 }
 0x81d   : > { %4372 = vmatprep.subr.msk.bf16.mxu1 %vm984_vm2, %v2377_v28 }
 0x824   : > { %4202 = vmatpush3.bf16.xpose.msra.mxu1 %v2404_v62 }
 0x825   : > { %4237 = vmatprep.subr.bf16.mxu1 %v4408_v60 }
 0x82b   : > { %4204 = vmatmul.mubr.msk.bf16.vlgmr.msra.gmra.mrb[68].mxu1 %vm984_vm2, %v2371_v34 }
 0x82c   : > { %4207 = vmatprep.mubr.msk.bf16.mxu1 %vm984_vm2, %v2372_v33  ;;  %4238 = vmatpush3.bf16.msra.mxu1 %v4408_v60 }
 0x82d   : > { %4239 = vmatprep.subr.bf16.mxu1 %v4409_v10 }
 0x830   : > { %4240 = vmatpush3.bf16.msra.mxu1 %v4409_v10 }
 0x831   : > { %4261 = vmatprep.subr.bf16.mxu1 %v4410_v8 }
 0x833   : > { %4208 = vmatmul.mubr.msk.bf16.gmra.mrb[72].mxu1 %vm984_vm2, %v2373_v48 }
 0x834   : > { %4241 = vmatprep.mubr.msk.bf16.mxu1 %vm431_vm1, %v4799_v53 }
 0x83b   : > { %4242 = vmatmul.mubr.msk.bf16.vlgmr.msra.gmra.mrb[76].mxu1 %vm431_vm1, %v4801_v54 }
 0x83c   : > { %4245 = vmatprep.mubr.msk.bf16.mxu1 %vm431_vm1, %v4803_v55  ;;  %4262 = vmatpush3.bf16.msra.mxu1 %v4410_v8 }
 0x83d   : > { %4263 = vmatprep.subr.bf16.mxu1 %v4411_v9 }
 0x840   : > { %4264 = vmatpush3.bf16.msra.mxu1 %v4411_v9 }
 0x843   : > { %4246 = vmatmul.mubr.msk.bf16.gmra.mrb[80].mxu1 %vm431_vm1, %v4805_v56 }
 0x844   : > { %4265 = vmatprep.mubr.msk.bf16.mxu1 %vm431_vm1, %v4799_v53 }
 0x84b   : > { %4266 = vmatmul.mubr.msk.bf16.vlgmr.msra.gmra.mrb[84].mxu1 %vm431_vm1, %v4801_v54 }
 0x84c   : > { %4269 = vmatprep.mubr.msk.bf16.mxu1 %vm431_vm1, %v4803_v55 }
 0x853   : > { %4270 = vmatmul.mubr.msk.bf16.gmra.mrb[88].mxu1 %vm431_vm1, %v4805_v56 }
 0x8d1   : > { %v4189_v15 = vpop.f32.mrb[44].mxu0 }
 0x8d2   : > { %v2331_v21 = vpop.f32.mrb[45].mxu0  ;;  %v2340_v31 = vadd.f32 %v4189_v15, %v3707_v52 }
 0x8d3   : > { %v4190_v23 = vpop.f32.mrb[46].mxu0  ;;  %v2332_v34 = vadd.f32 %v3707_v52, %v2331_v21 }
 0x8d4   : > { %v2343_v20 = vadd.f32 %v4190_v23, %v3707_v52  ;;  %v2334_v45 = vpop.f32.mrb[47].mxu0 }
 0x8d5   : > { %v2335_v43 = vadd.f32 %v3707_v52, %v2334_v45 }
 0x8d6   : > { %v2379_v49 = vpack.c.bf16 %v2343_v20, %v2340_v31 }
 0x8d7   : > { %v2378_v38 = vpack.c.bf16 %v2335_v43, %v2332_v34 }
 0x8d9   : > { %v4193_v47 = vpop.f32.mrb[48].mxu0  ;;  %4211 = vmatprep.subr.bf16.mxu0 %v2378_v38 }
 0x8da   : > { %v2347_v0 = vpop.f32.mrb[49].mxu0  ;;  %4212 = vmatpush3.bf16.msra.mxu0 %v2378_v38  ;;  %v2356_v5 = vadd.f32 %v4193_v47, %v3707_v52 }
 0x8db   : > { %v4194_v4 = vpop.f32.mrb[50].mxu0  ;;  %4213 = vmatprep.subr.bf16.mxu0 %v2379_v49  ;;  %v2348_v37 = vadd.f32 %v3707_v52, %v2347_v0 }
 0x8dc   : > { %v2359_v58 = vadd.f32 %v4194_v4, %v3707_v52  ;;  %v2350_v63 = vpop.f32.mrb[51].mxu0 }
 0x8dd   : > { %v2351_v39 = vadd.f32 %v3707_v52, %v2350_v63 }
 0x8de   : > { %v2381_v26 = vpack.c.bf16 %v2359_v58, %v2356_v5  ;;  %4214 = vmatpush3.bf16.msra.mxu0 %v2379_v49  ;;  %v3756_v58 = vld [vmem:[%s5557_s9 + $0x3] ss:$0 sm:$0xff] }
 0x8df   : > { %v2380_v29 = vpack.c.bf16 %v2351_v39, %v2348_v37 }
 0x8e1   : > { %4215 = vmatprep.subr.bf16.mxu0 %v2380_v29 }
 0x8e2   : > { %4216 = vmatpush3.bf16.msra.mxu0 %v2380_v29 }
 0x8e3   : > { %4217 = vmatprep.subr.bf16.mxu0 %v2381_v26 }
 0x8e6   : > { %4218 = vmatpush3.bf16.msra.mxu0 %v2381_v26 }
 0x8fe   : > { %v5256_v48 = vpop.f32.mrb[68].mxu1 }
 0x8ff   : > { %v5258_v33 = vpop.f32.mrb[69].mxu1  ;;  %v2477_v51 = vsel %vm1074_vm3, %v5256_v48, -inf }
 0x900   : > { %v5260_v36 = vpop.f32.mrb[70].mxu1  ;;  %v2471_v42 = vsel %vm1074_vm3, %v5258_v33, -inf }
 0x901   : > { %2472 = vmax.xlane.f32.xlu0 %v2471_v42  ;;  %v5264_v46 = vpop.f32.mrb[71].mxu1  ;;  %v2480_v24 = vsel %vm1074_vm3, %v5260_v36, -inf }
 0x902   : > { %v2474_v50 = vsel %vm1074_vm3, %v5264_v46, -inf }
 0x903   : > { %2475 = vmax.xlane.f32.xlu1 %v2474_v50 }
 0x905   : > { %2478 = vmax.xlane.f32.xlu0 %v2477_v51 }
 0x906   : > { %v5270_v44 = vpop.f32.mrb[72].mxu1 }
 0x907   : > { %v5274_v1 = vpop.f32.mrb[73].mxu1  ;;  %2481 = vmax.xlane.f32.xlu1 %v2480_v24  ;;  %v2489_v35 = vsel %vm1074_vm3, %v5270_v44, -inf }
 0x908   : > { %v5276_v61 = vpop.f32.mrb[74].mxu1  ;;  %v2483_v41 = vsel %vm1074_vm3, %v5274_v1, -inf }
 0x909   : > { %2484 = vmax.xlane.f32.xlu0 %v2483_v41  ;;  %v5280_v57 = vpop.f32.mrb[75].mxu1  ;;  %v2492_v40 = vsel %vm1074_vm3, %v5276_v61, -inf }
 0x90a   : > { %v2486_v2 = vsel %vm1074_vm3, %v5280_v57, -inf }
 0x90b   : > { %2487 = vmax.xlane.f32.xlu1 %v2486_v2 }
 0x90d   : > { %2490 = vmax.xlane.f32.xlu0 %v2489_v35 }
 0x90e   : > { %v4243_v25 = vpop.f32.mrb[76].mxu1 }
 0x90f   : > { %v2858_v3 = vadd.f32 %v4243_v25, %v3732_v30  ;;  %v2849_v7 = vpop.f32.mrb[77].mxu1  ;;  %2493 = vmax.xlane.f32.xlu1 %v2492_v40 }
 0x910   : > { %v2850_v6 = vadd.f32 %v3732_v30, %v2849_v7  ;;  %v4244_v27 = vpop.f32.mrb[78].mxu1 }
 0x911   : > { %v2861_v28 = vadd.f32 %v4244_v27, %v3732_v30  ;;  %v2852_v32 = vpop.f32.mrb[79].mxu1  ;;  %v5291_v59 = vmul.f32 0.35355338, %v2858_v3 }
 0x912   : > { %v2853_v19 = vadd.f32 %v3732_v30, %v2852_v32  ;;  %v5295_v62 = vmul.f32 0.35355338, %v2850_v6 }
 0x913   : > { %v5293_v60 = vmul.f32 0.35355338, %v2861_v28 }
 0x914   : > { %v5297_v10 = vmul.f32 0.35355338, %v2853_v19 }
 0x915   : > { %v3069_v8 = vpack.c.bf16 %v5293_v60, %v5291_v59 }
 0x916   : > { %v3068_v9 = vpack.c.bf16 %v5297_v10, %v5295_v62  ;;  %v4247_v15 = vpop.f32.mrb[80].mxu1 }
 0x917   : > { %v2874_v52 = vadd.f32 %v4247_v15, %v3732_v30  ;;  %v2865_v21 = vpop.f32.mrb[81].mxu1 }
 0x918   : > { %v2866_v23 = vadd.f32 %v3732_v30, %v2865_v21  ;;  %v4248_v31 = vpop.f32.mrb[82].mxu1 }
 0x919   : > { %v2877_v20 = vadd.f32 %v4248_v31, %v3732_v30  ;;  %v2868_v45 = vpop.f32.mrb[83].mxu1  ;;  %v5303_v43 = vmul.f32 0.35355338, %v2874_v52 }
 0x91a   : > { %v2869_v34 = vadd.f32 %v3732_v30, %v2868_v45  ;;  %v5307_v38 = vmul.f32 0.35355338, %v2866_v23 }
 0x91b   : > { %v5305_v49 = vmul.f32 0.35355338, %v2877_v20 }
 0x91c   : > { %v5309_v47 = vmul.f32 0.35355338, %v2869_v34 }
 0x91d   : > { %v3071_v0 = vpack.c.bf16 %v5305_v49, %v5303_v43 }
 0x91e   : > { %v3070_v4 = vpack.c.bf16 %v5309_v47, %v5307_v38  ;;  %v4267_v5 = vpop.f32.mrb[84].mxu1 }
 0x91f   : > { %v3029_v63 = vpop.f32.mrb[85].mxu1  ;;  %v3038_v39 = vadd.f32 %v4267_v5, %v3756_v58 }
 0x920   : > { %v4268_v37 = vpop.f32.mrb[86].mxu1  ;;  %v3030_v42 = vadd.f32 %v3756_v58, %v3029_v63 }
 0x921   : > { %v3041_v26 = vadd.f32 %v4268_v37, %v3756_v58  ;;  %v3032_v29 = vpop.f32.mrb[87].mxu1 }
 0x922   : > { %v3033_v50 = vadd.f32 %v3756_v58, %v3032_v29 }
 0x923   : > { %v3077_v51 = vpack.c.bf16 %v3041_v26, %v3038_v39 }
 0x924   : > { %v3076_v24 = vpack.c.bf16 %v3033_v50, %v3030_v42 }
 0x926   : > { %v4271_v41 = vpop.f32.mrb[88].mxu1  ;;  %4289 = vmatprep.subr.bf16.mxu1 %v3076_v24 }
 0x927   : > { %v3045_v2 = vpop.f32.mrb[89].mxu1  ;;  %4290 = vmatpush3.bf16.msra.mxu1 %v3076_v24  ;;  %v3054_v30 = vadd.f32 %v4271_v41, %v3756_v58 }
 0x928   : > { %v4272_v35 = vpop.f32.mrb[90].mxu1  ;;  %4291 = vmatprep.subr.bf16.mxu1 %v3077_v51  ;;  %v3046_v3 = vadd.f32 %v3756_v58, %v3045_v2 }
 0x929   : > { %v3057_v25 = vadd.f32 %v4272_v35, %v3756_v58  ;;  %v3048_v40 = vpop.f32.mrb[91].mxu1 }
 0x92a   : > { %v3049_v7 = vadd.f32 %v3756_v58, %v3048_v40 }
 0x92b   : > { %v3079_v6 = vpack.c.bf16 %v3057_v25, %v3054_v30  ;;  %4292 = vmatpush3.bf16.msra.mxu1 %v3077_v51 }
 0x92c   : > { %v3078_v27 = vpack.c.bf16 %v3049_v7, %v3046_v3 }
 0x92e   : > { %4293 = vmatprep.subr.bf16.mxu1 %v3078_v27 }
 0x92f   : > { %4294 = vmatpush3.bf16.msra.mxu1 %v3078_v27 }
 0x930   : > { %4295 = vmatprep.subr.bf16.mxu1 %v3079_v6 }
 0x933   : > { %4296 = vmatpush3.bf16.msra.mxu1 %v3079_v6 }
 0x98e   : > { %v5318_v28 = vpop.xlane.xlu0 %2472 }
 0x98f   : > { %v2495_v32 = vmax.f32 %v5318_v28, -1e+30 }
 0x990   : > { %v5321_v19 = vpop.xlane.xlu1 %2475 }
 0x991   : > { %v2527_v15 = vsub.f32 %v5258_v33, %v2495_v32  ;;  %v2496_v52 = vmax.f32 %v5321_v19, -1e+30 }
 0x992   : > { %v5327_v21 = vpop.xlane.xlu0 %2478 }
 0x993   : > { %v2535_v23 = vmul.f32 1.442695, %v2527_v15  ;;  %v2528_v31 = vsub.f32 %v5264_v46, %v2496_v52  ;;  %v2497_v20 = vmax.f32 %v5327_v21, -1e+30 }
 0x994   : > { %v5333_v45 = vpop.xlane.xlu1 %2481 }
 0x995   : > { %v2537_v34 = vmul.f32 1.442695, %v2528_v31  ;;  %v2498_v5 = vmax.f32 %v5333_v45, -1e+30  ;;  %4512 = vpow2.f32 %v2535_v23  ;;  %v2529_v33 = vsub.f32 %v5256_v48, %v2497_v20 }
 0x996   : > { %v5339_v58 = vpop.xlane.xlu0 %2484 }
 0x997   : > { %v2530_v63 = vsub.f32 %v5260_v36, %v2498_v5  ;;  %v2499_v46 = vmax.f32 %v5339_v58, -1e+30  ;;  %4514 = vpow2.f32 %v2537_v34  ;;  %v2539_v37 = vmul.f32 1.442695, %v2529_v33 }
 0x998   : > { %v5345_v39 = vpop.xlane.xlu1 %2487 }
 0x999   : > { %v2541_v26 = vmul.f32 1.442695, %v2530_v63  ;;  %v2531_v29 = vsub.f32 %v5274_v1, %v2499_v46  ;;  %v2500_v42 = vmax.f32 %v5345_v39, -1e+30  ;;  %4516 = vpow2.f32 %v2539_v37 }
 0x99a   : > { %v5351_v48 = vpop.xlane.xlu0 %2490  ;;  %v2507_v21 = vsub.f32 -1e+30, %v2499_v46 }
 0x99b   : > { %v2543_v50 = vmul.f32 1.442695, %v2531_v29  ;;  %v2501_v51 = vmax.f32 %v5351_v48, -1e+30  ;;  %v2532_v36 = vsub.f32 %v5280_v57, %v2500_v42  ;;  %4518 = vpow2.f32 %v2541_v26 }
 0x99c   : > { %v5357_v24 = vpop.xlane.xlu1 %2493 }
 0x99d   : > { %v2533_v41 = vsub.f32 %v5270_v44, %v2501_v51  ;;  %v2502_v2 = vmax.f32 %v5357_v24, -1e+30  ;;  %v2545_v1 = vmul.f32 1.442695, %v2532_v36  ;;  %4520 = vpow2.f32 %v2543_v50  ;;  %v3722_v24 = vld [vmem:[%s5558_s10 + $0x8] sm:$0xf] }
 0x99e   : > { %4373 = vmatprep.subr.msk.bf16.mxu0 %vm1317_vm4, %v3722_v24 }
 0x99f   : > { %v2547_v35 = vmul.f32 1.442695, %v2533_v41  ;;  %v4513_v30 = vpop.eup %4512  ;;  %v2534_v25 = vsub.f32 %v5276_v61, %v2502_v2  ;;  %4522 = vpow2.f32 %v2545_v1  ;;  %v2715_v41 = vsel %vm1317_vm4, %v3722_v24, 0  ;;  %v5382_v1 = vld [vmem:[%s5553_s5 + $0x30] sm:$0xff]  }
 0x9a0   : > { %v2559_v40 = vsel %vm1074_vm3, %v4513_v30, 0.0 }
 0x9a1   : > { %v4515_v3 = vpop.eup %4514  ;;  %v2549_v7 = vmul.f32 1.442695, %v2534_v25  ;;  %2560 = vadd.xlane.f32.xlu0 %v2559_v40  ;;  %4524 = vpow2.f32 %v2547_v35  ;;  %v2505_v35 = vsub.f32 -1e+30, %v2497_v20  ;;  %v2506_v25 = vsub.f32 -1e+30, %v2498_v5 }
 0x9a2   : > { %v2562_v57 = vsel %vm1074_vm3, %v4515_v3, 0.0  ;;  %v2591_v6 = vpack.c.bf16 %v4515_v3, %v4513_v30  ;;  %v2503_v30 = vsub.f32 -1e+30, %v2495_v32  ;;  %v2504_v40 = vsub.f32 -1e+30, %v2496_v52 }
 0x9a3   : > { %2563 = vadd.xlane.f32.xlu1 %v2562_v57  ;;  %v4517_v44 = vpop.eup %4516  ;;  %4526 = vpow2.f32 %v2549_v7  ;;  %v2515_v3 = vmul.f32 1.442695, %v2505_v35  ;;  %v2517_v57 = vmul.f32 1.442695, %v2506_v25  ;;  %v2510_v20 = vsub.f32 -1e+30, %v2502_v2 }
 0x9a4   : > { %4219 = vmatprep.mubr.msk.bf16.mxu0 %vm1074_vm3, %v2591_v6  ;;  %v2565_v27 = vsel %vm1074_vm3, %v4517_v44, 0.0  ;;  %v2511_v7 = vmul.f32 1.442695, %v2503_v30  ;;  %v2513_v6 = vmul.f32 1.442695, %v2504_v40 }
 0x9a5   : > { %v4519_v15 = vpop.eup %4518  ;;  %2566 = vadd.xlane.f32.xlu0 %v2565_v27  ;;  %4528 = vpow2.f32 %v2515_v3  ;;  %v2508_v32 = vsub.f32 -1e+30, %v2500_v42  ;;  %v2519_v52 = vmul.f32 1.442695, %v2507_v21  ;;  %v2525_v5 = vmul.f32 1.442695, %v2510_v20 }
 0x9a6   : > { %v2592_v61 = vpack.c.bf16 %v4519_v15, %v4517_v44  ;;  %v2568_v23 = vsel %vm1074_vm3, %v4519_v15, 0.0  ;;  %v2509_v44 = vsub.f32 -1e+30, %v2501_v51  ;;  %4530 = vpow2.f32 %v2511_v7 }
 0x9a7   : > { %v4521_v31 = vpop.eup %4520  ;;  %2569 = vadd.xlane.f32.xlu1 %v2568_v23  ;;  %4532 = vpow2.f32 %v2517_v57  ;;  %v2521_v27 = vmul.f32 1.442695, %v2508_v32 }
 0x9a8   : > { %4220 = vmatmul.mubr.msk.bf16.vlgmr.msra.gmra.mrb[52].mxu0 %vm1074_vm3, %v2592_v61  ;;  %v2571_v34 = vsel %vm1074_vm3, %v4521_v31, 0.0  ;;  %4534 = vpow2.f32 %v2513_v6  ;;  %v2523_v45 = vmul.f32 1.442695, %v2509_v44 }
 0x9a9   : > { %v4523_v33 = vpop.eup %4522  ;;  %2572 = vadd.xlane.f32.xlu0 %v2571_v34  ;;  %4228 = vmatpush3.bf16.msra.mxu0 %v2715_v41 }
 0x9aa   : > { %v2574_v63 = vsel %vm1074_vm3, %v4523_v33, 0.0  ;;  %v2593_v37 = vpack.c.bf16 %v4523_v33, %v4521_v31  ;;  %4249 = vmatprep.subr.bf16.mxu0 %v5382_v1  ;;  %4536 = vpow2.f32 %v2523_v45 }
 0x9ab   : > { %v4525_v26 = vpop.eup %4524  ;;  %2575 = vadd.xlane.f32.xlu1 %v2574_v63  ;;  %4538 = vpow2.f32 %v2519_v52 }
 0x9ac   : > { %4223 = vmatprep.mubr.msk.bf16.mxu0 %vm1074_vm3, %v2593_v37  ;;  %v2577_v29 = vsel %vm1074_vm3, %v4525_v26, 0.0  ;;  %4540 = vpow2.f32 %v2525_v5 }
 0x9ad   : > { %v4527_v48 = vpop.eup %4526  ;;  %2578 = vadd.xlane.f32.xlu0 %v2577_v29  ;;  %4542 = vpow2.f32 %v2521_v27 }
 0x9ae   : > { %v2580_v50 = vsel %vm1074_vm3, %v4527_v48, 0.0  ;;  %v2594_v36 = vpack.c.bf16 %v4527_v48, %v4525_v26 }
 0x9af   : > { %2581 = vadd.xlane.f32.xlu1 %v2580_v50  ;;  %v4529_v51 = vpop.eup %4528 }
 0x9b0   : > { %4224 = vmatmul.mubr.msk.bf16.gmra.mrb[56].mxu0 %vm1074_vm3, %v2594_v36  ;;  %v4531_v58 = vpop.eup %4530  ;;  %v2553_v23 = vmul.f32 0.0, %v4529_v51 }
 0x9b1   : > { %v4533_v46 = vpop.eup %4532  ;;  %v2551_v31 = vmul.f32 0.0, %v4531_v58 }
 0x9b2   : > { %v4535_v2 = vpop.eup %4534  ;;  %v2554_v42 = vmul.f32 0.0, %v4533_v46 }
 0x9b3   : > { %v2552_v63 = vmul.f32 0.0, %v4535_v2 }
 0x9b4   : > { %v4537_v29 = vpop.eup %4536 }
 0x9b5   : > { %v4539_v50 = vpop.eup %4538  ;;  %v2557_v35 = vmul.f32 0.0, %v4537_v29 }
 0x9b6   : > { %v4541_v36 = vpop.eup %4540  ;;  %v2555_v30 = vmul.f32 0.0, %v4539_v50 }
 0x9b7   : > { %v4543_v41 = vpop.eup %4542  ;;  %v2558_v3 = vmul.f32 0.0, %v4541_v36 }
 0x9b8   : > { %v2556_v57 = vmul.f32 0.0, %v4543_v41 }
 0xa2e   : > { %v2561_v28 = vpop.xlane.xlu0 %2560 }
 0xa2f   : > { %v2583_v33 = vadd.f32 %v2561_v28, %v2551_v31 }
 0xa30   : > { %v2564_v19 = vpop.xlane.xlu1 %2563 }
 0xa31   : > { %v2584_v48 = vadd.f32 %v2564_v19, %v2552_v63 }
 0xa32   : > { %v2567_v15 = vpop.xlane.xlu0 %2566 }
 0xa33   : > { %v2585_v39 = vadd.f32 %v2567_v15, %v2553_v23 }
 0xa34   : > { %v2570_v61 = vpop.xlane.xlu1 %2569 }
 0xa35   : > { %v2586_v26 = vadd.f32 %v2570_v61, %v2554_v42  ;;  %4544 = vrcp.f32 %v2585_v39 }
 0xa36   : > { %v2573_v34 = vpop.xlane.xlu0 %2572  ;;  %4546 = vrcp.f32 %v2583_v33 }
 0xa37   : > { %4548 = vrcp.f32 %v2586_v26  ;;  %v2587_v7 = vadd.f32 %v2573_v34, %v2555_v30 }
 0xa38   : > { %v2576_v37 = vpop.xlane.xlu1 %2575  ;;  %4550 = vrcp.f32 %v2584_v48 }
 0xa39   : > { %v2588_v44 = vadd.f32 %v2576_v37, %v2556_v57 }
 0xa3a   : > { %v2579_v24 = vpop.xlane.xlu0 %2578 }
 0xa3b   : > { %v2589_v40 = vadd.f32 %v2579_v24, %v2557_v35 }
 0xa3c   : > { %v2582_v25 = vpop.xlane.xlu1 %2581 }
 0xa3d   : > { %v2590_v6 = vadd.f32 %v2582_v25, %v2558_v3  ;;  %4552 = vrcp.f32 %v2589_v40 }
 0xa3e   : > { %4554 = vrcp.f32 %v2587_v7 }
 0xa3f   : > { %v4545_v32 = vpop.eup %4544  ;;  %4556 = vrcp.f32 %v2590_v6 }
 0xa40   : > { %v4547_v52 = vpop.eup %4546  ;;  %4558 = vrcp.f32 %v2588_v44 }
 0xa41   : > { %v4549_v51 = vpop.eup %4548 }
 0xa42   : > { %v4551_v46 = vpop.eup %4550 }
 0xa47   : > { %v4553_v29 = vpop.eup %4552 }
 0xa7b   : > { %v4221_v21 = vpop.f32.mrb[52].mxu0 }
 0xa7c   : > { %v2674_v20 = vadd.f32 %v4221_v21, %v2553_v23  ;;  %v2641_v28 = vpop.f32.mrb[53].mxu0 }
 0xa7d   : > { %v2672_v45 = vadd.f32 %v2641_v28, %v2551_v31  ;;  %v4222_v19 = vpop.f32.mrb[54].mxu0  ;;  %v4413_v31 = vld [vmem:[%s5553_s5 + $0x38] sm:$0xff]  }
 0xa7e   : > { %v2690_v5 = vmul.f32 %v4545_v32, %v2674_v20  ;;  %v2675_v27 = vadd.f32 %v4222_v19, %v2554_v42  ;;  %v2644_v15 = vpop.f32.mrb[55].mxu0  ;;  %v4555_v42 = vpop.eup %4554 }
 0xa7f   : > { %v2688_v61 = vmul.f32 %v4547_v52, %v2672_v45  ;;  %v2673_v58 = vadd.f32 %v2644_v15, %v2552_v63  ;;  %v4557_v41 = vpop.eup %4556 }
 0xa80   : > { %v2691_v2 = vmul.f32 %v4549_v51, %v2675_v27 }
 0xa81   : > { %v2689_v34 = vmul.f32 %v4551_v46, %v2673_v58 }
 0xa82   : > { %v2697_v39 = vpack.c.bf16 %v2691_v2, %v2690_v5 }
 0xa83   : > { %v2696_v33 = vpack.c.bf16 %v2689_v34, %v2688_v61  ;;  %v4225_v37 = vpop.f32.mrb[56].mxu0 }
 0xa84   : > { %v2678_v23 = vadd.f32 %v4225_v37, %v2557_v35  ;;  %v2657_v26 = vpop.f32.mrb[57].mxu0  ;;  %v4559_v35 = vpop.eup %4558 }
 0xa85   : > { %v2676_v48 = vadd.f32 %v2657_v26, %v2555_v30  ;;  %v4226_v50 = vpop.f32.mrb[58].mxu0  ;;  %4229 = vmatprep.mubr.msk.bf16.mxu0 %vm984_vm2, %v2696_v33 }
 0xa86   : > { %v2694_v36 = vmul.f32 %v4553_v29, %v2678_v23  ;;  %v2679_v63 = vadd.f32 %v4226_v50, %v2558_v3  ;;  %v2660_v24 = vpop.f32.mrb[59].mxu0  ;;  %4230 = vmatmul.mubr.msk.bf16.vlgmr.msra.gmra.mrb[20].mxu0 %vm984_vm2, %v2697_v39  ;;  %v3744_v3 = vld [vmem:[%s5556_s8 + $0x3] ss:$0 sm:$0xff] }
 0xa87   : > { %v2692_v25 = vmul.f32 %v4555_v42, %v2676_v48  ;;  %v2677_v40 = vadd.f32 %v2660_v24, %v2556_v57  ;;  %4250 = vmatpush3.bf16.msra.mxu0 %v5382_v1 }
 0xa88   : > { %v2695_v7 = vmul.f32 %v4557_v41, %v2679_v63  ;;  %4251 = vmatprep.subr.bf16.mxu0 %v4413_v31 }
 0xa89   : > { %v2693_v6 = vmul.f32 %v4559_v35, %v2677_v40 }
 0xa8a   : > { %v2699_v44 = vpack.c.bf16 %v2695_v7, %v2694_v36 }
 0xa8b   : > { %v2698_v30 = vpack.c.bf16 %v2693_v6, %v2692_v25  ;;  %4252 = vmatpush3.bf16.msra.mxu0 %v4413_v31 }
 0xa8d   : > { %4233 = vmatprep.mubr.msk.bf16.mxu0 %vm984_vm2, %v2698_v30 }
 0xa8e   : > { %4234 = vmatmul.mubr.msk.bf16.gmra.mrb[24].mxu0 %vm984_vm2, %v2699_v44 }
 0xa8f   : > { %4253 = vmatprep.mubr.msk.bf16.mxu0 %vm431_vm1, %v4799_v53 }
 0xa96   : > { %4254 = vmatmul.mubr.msk.bf16.vlgmr.msra.gmra.mrb[60].mxu0 %vm431_vm1, %v4801_v54 }
 0xa97   : > { %4257 = vmatprep.mubr.msk.bf16.mxu0 %vm431_vm1, %v4803_v55 }
 0xa9e   : > { %4258 = vmatmul.mubr.msk.bf16.gmra.mrb[64].mxu0 %vm431_vm1, %v4805_v56 }
 0xa9f   : > { %4281 = vmatprep.mubr.msk.bf16.mxu0 %vm984_vm2, %v3068_v9 }
 0xb69   : > { %v4255_v1 = vpop.f32.mrb[60].mxu0 }
 0xb6a   : > { %v2939_v53 = vpop.f32.mrb[61].mxu0  ;;  %v2948_v21 = vadd.f32 %v4255_v1, %v3744_v3 }
 0xb6b   : > { %v4256_v57 = vpop.f32.mrb[62].mxu0  ;;  %v2940_v28 = vadd.f32 %v3744_v3, %v2939_v53 }
 0xb6c   : > { %v2951_v54 = vadd.f32 %v4256_v57, %v3744_v3  ;;  %v2942_v20 = vpop.f32.mrb[63].mxu0 }
 0xb6d   : > { %v2943_v55 = vadd.f32 %v3744_v3, %v2942_v20 }
 0xb6e   : > { %v3073_v32 = vpack.c.bf16 %v2951_v54, %v2948_v21 }
 0xb6f   : > { %v3072_v45 = vpack.c.bf16 %v2943_v55, %v2940_v28 }
 0xb70   : > { %v3096_v58 = vsel %vm984_vm2, %v3073_v32, 0 }
 0xb71   : > { %v4259_v56 = vpop.f32.mrb[64].mxu0  ;;  %4374 = vmatprep.subr.msk.bf16.mxu0 %vm984_vm2, %v3072_v45  ;;  %v3093_v62 = vsel %vm984_vm2, %v3072_v45, 0 }
 0xb72   : > { %v2955_v10 = vpop.f32.mrb[65].mxu0  ;;  %4274 = vmatpush3.bf16.xpose.msra.mxu0 %v3093_v62  ;;  %v2964_v19 = vadd.f32 %v4259_v56, %v3744_v3 }
 0xb73   : > { %v4260_v9 = vpop.f32.mrb[66].mxu0  ;;  %4375 = vmatprep.subr.msk.bf16.mxu0 %vm984_vm2, %v3073_v32  ;;  %v2956_v27 = vadd.f32 %v3744_v3, %v2955_v10 }
 0xb74   : > { %v2967_v52 = vadd.f32 %v4260_v9, %v3744_v3  ;;  %v2958_v5 = vpop.f32.mrb[67].mxu0 }
 0xb75   : > { %v2959_v15 = vadd.f32 %v3744_v3, %v2958_v5 }
 0xb76   : > { %v3075_v51 = vpack.c.bf16 %v2967_v52, %v2964_v19 }
 0xb77   : > { %v3074_v61 = vpack.c.bf16 %v2959_v15, %v2956_v27 }
 0xb78   : > { %v3102_v2 = vsel %vm984_vm2, %v3075_v51, 0 }
 0xb79   : > { %v3099_v46 = vsel %vm984_vm2, %v3074_v61, 0 }
 0xb7a   : > { %4276 = vmatpush3.bf16.xpose.msra.mxu0 %v3096_v58 }
 0xb7b   : > { %4376 = vmatprep.subr.msk.bf16.mxu0 %vm984_vm2, %v3074_v61 }
 0xb82   : > { %4278 = vmatpush3.bf16.xpose.msra.mxu0 %v3099_v46 }
 0xb83   : > { %4377 = vmatprep.subr.msk.bf16.mxu0 %vm984_vm2, %v3075_v51 }
 0xb8a   : > { %4280 = vmatpush3.bf16.xpose.msra.mxu0 %v3102_v2 }
 0xb91   : > { %4282 = vmatmul.mubr.msk.bf16.vlgmr.msra.gmra.mrb[68].mxu0 %vm984_vm2, %v3069_v8 }
 0xb92   : > { %4285 = vmatprep.mubr.msk.bf16.mxu0 %vm984_vm2, %v3070_v4 }
 0xb99   : > { %4286 = vmatmul.mubr.msk.bf16.gmra.mrb[72].mxu0 %vm984_vm2, %v3071_v0 }
 0xc64   : > { %v4283_v34 = vpop.f32.mrb[68].mxu0 }
 0xc65   : > { %v3138_v39 = vpop.f32.mrb[69].mxu0  ;;  %v3175_v60 = vsel %vm1074_vm3, %v4283_v34, -inf }
 0xc66   : > { %v4284_v33 = vpop.f32.mrb[70].mxu0  ;;  %v3169_v37 = vsel %vm1074_vm3, %v3138_v39, -inf }
 0xc67   : > { %3170 = vmax.xlane.f32.xlu0 %v3169_v37  ;;  %v3141_v23 = vpop.f32.mrb[71].mxu0  ;;  %v3178_v38 = vsel %vm1074_vm3, %v4284_v33, -inf }
 0xc68   : > { %v3172_v59 = vsel %vm1074_vm3, %v3141_v23, -inf }
 0xc69   : > { %3173 = vmax.xlane.f32.xlu1 %v3172_v59 }
 0xc6b   : > { %3176 = vmax.xlane.f32.xlu0 %v3175_v60 }
 0xc6c   : > { %v4287_v8 = vpop.f32.mrb[72].mxu0 }
 0xc6d   : > { %3179 = vmax.xlane.f32.xlu1 %v3178_v38  ;;  %v3154_v43 = vpop.f32.mrb[73].mxu0  ;;  %v3187_v26 = vsel %vm1074_vm3, %v4287_v8, -inf }
 0xc6e   : > { %v4288_v49 = vpop.f32.mrb[74].mxu0  ;;  %v3181_v47 = vsel %vm1074_vm3, %v3154_v43, -inf }
 0xc6f   : > { %3182 = vmax.xlane.f32.xlu0 %v3181_v47  ;;  %v3157_v0 = vpop.f32.mrb[75].mxu0  ;;  %v3190_v31 = vsel %vm1074_vm3, %v4288_v49, -inf }
 0xc70   : > { %v3184_v4 = vsel %vm1074_vm3, %v3157_v0, -inf }
 0xc71   : > { %3185 = vmax.xlane.f32.xlu1 %v3184_v4 }
 0xc73   : > { %3188 = vmax.xlane.f32.xlu0 %v3187_v26 }
 0xc75   : > { %3191 = vmax.xlane.f32.xlu1 %v3190_v31 }
 0xcf4   : > { %v5448_v29 = vpop.xlane.xlu0 %3170 }
 0xcf5   : > { %v3193_v48 = vmax.f32 %v5448_v29, -1e+30 }
 0xcf6   : > { %v5451_v50 = vpop.xlane.xlu1 %3173 }
 0xcf7   : > { %v3225_v42 = vsub.f32 %v3138_v39, %v3193_v48  ;;  %v3194_v36 = vmax.f32 %v5451_v50, -1e+30  ;;  %v3201_v31 = vsub.f32 -1e+30, %v3193_v48 }
 0xcf8   : > { %v5456_v63 = vpop.xlane.xlu0 %3176 }
 0xcf9   : > { %v3233_v24 = vmul.f32 1.442695, %v3225_v42  ;;  %v3226_v41 = vsub.f32 %v3141_v23, %v3194_v36  ;;  %v3195_v25 = vmax.f32 %v5456_v63, -1e+30 }
 0xcfa   : > { %v5461_v40 = vpop.xlane.xlu1 %3179 }
 0xcfb   : > { %v3235_v35 = vmul.f32 1.442695, %v3226_v41  ;;  %v3196_v7 = vmax.f32 %v5461_v40, -1e+30  ;;  %4560 = vpow2.f32 %v3233_v24  ;;  %v3227_v6 = vsub.f32 %v4283_v34, %v3195_v25 }
 0xcfc   : > { %v5466_v44 = vpop.xlane.xlu0 %3182  ;;  %v3203_v26 = vsub.f32 -1e+30, %v3195_v25  ;;  %v3202_v24 = vsub.f32 -1e+30, %v3194_v36 }
 0xcfd   : > { %v3228_v30 = vsub.f32 %v4284_v33, %v3196_v7  ;;  %v3197_v1 = vmax.f32 %v5466_v44, -1e+30  ;;  %4562 = vpow2.f32 %v3235_v35  ;;  %v3237_v3 = vmul.f32 1.442695, %v3227_v6 }
 0xcfe   : > { %v5471_v53 = vpop.xlane.xlu1 %3185  ;;  %v3204_v42 = vsub.f32 -1e+30, %v3196_v7  ;;  %v3213_v41 = vmul.f32 1.442695, %v3203_v26  ;;  %v3209_v35 = vmul.f32 1.442695, %v3201_v31 }
 0xcff   : > { %v3239_v57 = vmul.f32 1.442695, %v3228_v30  ;;  %v3229_v21 = vsub.f32 %v3154_v43, %v3197_v1  ;;  %v3198_v54 = vmax.f32 %v5471_v53, -1e+30  ;;  %4564 = vpow2.f32 %v3237_v3 }
 0xd00   : > { %v3189_v20 = vpop.xlane.xlu0 %3188  ;;  %v3215_v6 = vmul.f32 1.442695, %v3204_v42  ;;  %v3211_v30 = vmul.f32 1.442695, %v3202_v24  ;;  %v3205_v63 = vsub.f32 -1e+30, %v3197_v1 }
 0xd01   : > { %v3241_v28 = vmul.f32 1.442695, %v3229_v21  ;;  %v3199_v55 = vmax.f32 %v3189_v20, -1e+30  ;;  %v3230_v32 = vsub.f32 %v3157_v0, %v3198_v54  ;;  %4566 = vpow2.f32 %v3239_v57  ;;  %v3771_v0 = vld [vmem:[%s5558_s10 + $0xc] sm:$0xf] }
 0xd02   : > { %v3192_v45 = vpop.xlane.xlu1 %3191  ;;  %4378 = vmatprep.subr.msk.bf16.mxu0 %vm1317_vm4, %v3771_v0  ;;  %v3413_v4 = vsel %vm1317_vm4, %v3771_v0, 0  ;;  %v3206_v48 = vsub.f32 -1e+30, %v3198_v54  ;;  %v3217_v36 = vmul.f32 1.442695, %v3205_v63 }
 0xd03   : > { %v3231_v56 = vsub.f32 %v4287_v8, %v3199_v55  ;;  %v3200_v62 = vmax.f32 %v3192_v45, -1e+30  ;;  %v3243_v10 = vmul.f32 1.442695, %v3230_v32  ;;  %4568 = vpow2.f32 %v3241_v28  ;;  %4306 = vmatpush3.bf16.msra.mxu0 %v3413_v4 }
 0xd04   : > { %v3207_v3 = vsub.f32 -1e+30, %v3199_v55  ;;  %v3219_v57 = vmul.f32 1.442695, %v3206_v48 }
 0xd05   : > { %v3245_v9 = vmul.f32 1.442695, %v3231_v56  ;;  %v4561_v19 = vpop.eup %4560  ;;  %v3232_v52 = vsub.f32 %v4288_v49, %v3200_v62  ;;  %4570 = vpow2.f32 %v3243_v10  ;;  %v3208_v25 = vsub.f32 -1e+30, %v3200_v62 }
 0xd06   : > { %v3257_v5 = vsel %vm1074_vm3, %v4561_v19, 0.0  ;;  %v3221_v40 = vmul.f32 1.442695, %v3207_v3 }
 0xd07   : > { %v4563_v27 = vpop.eup %4562  ;;  %v3247_v15 = vmul.f32 1.442695, %v3232_v52  ;;  %3258 = vadd.xlane.f32.xlu0 %v3257_v5  ;;  %4572 = vpow2.f32 %v3245_v9  ;;  %v3223_v7 = vmul.f32 1.442695, %v3208_v25 }
 0xd08   : > { %v3260_v51 = vsel %vm1074_vm3, %v4563_v27, 0.0  ;;  %v3289_v61 = vpack.c.bf16 %v4563_v27, %v4561_v19 }
 0xd09   : > { %3261 = vadd.xlane.f32.xlu1 %v3260_v51  ;;  %v4565_v58 = vpop.eup %4564  ;;  %4574 = vpow2.f32 %v3247_v15 }
 0xd0a   : > { %4297 = vmatprep.mubr.msk.bf16.mxu1 %vm1074_vm3, %v3289_v61  ;;  %v3263_v46 = vsel %vm1074_vm3, %v4565_v58, 0.0  ;;  %4576 = vpow2.f32 %v3213_v41 }
 0xd0b   : > { %v4567_v2 = vpop.eup %4566  ;;  %3264 = vadd.xlane.f32.xlu0 %v3263_v46  ;;  %4578 = vpow2.f32 %v3209_v35 }
 0xd0c   : > { %v3290_v34 = vpack.c.bf16 %v4567_v2, %v4565_v58  ;;  %v3266_v39 = vsel %vm1074_vm3, %v4567_v2, 0.0  ;;  %4580 = vpow2.f32 %v3215_v6 }
 0xd0d   : > { %v4569_v33 = vpop.eup %4568  ;;  %3267 = vadd.xlane.f32.xlu1 %v3266_v39  ;;  %4582 = vpow2.f32 %v3211_v30 }
 0xd0e   : > { %4298 = vmatmul.mubr.msk.bf16.vlgmr.msra.gmra.mrb[92].mxu1 %vm1074_vm3, %v3290_v34  ;;  %v3269_v37 = vsel %vm1074_vm3, %v4569_v33, 0.0  ;;  %4584 = vpow2.f32 %v3221_v40 }
 0xd0f   : > { %v4571_v23 = vpop.eup %4570  ;;  %3270 = vadd.xlane.f32.xlu0 %v3269_v37  ;;  %4586 = vpow2.f32 %v3217_v36 }
 0xd10   : > { %v3272_v59 = vsel %vm1074_vm3, %v4571_v23, 0.0  ;;  %v3291_v60 = vpack.c.bf16 %v4571_v23, %v4569_v33  ;;  %4588 = vpow2.f32 %v3223_v7 }
 0xd11   : > { %v4573_v8 = vpop.eup %4572  ;;  %3273 = vadd.xlane.f32.xlu1 %v3272_v59  ;;  %4590 = vpow2.f32 %v3219_v57 }
 0xd12   : > { %4301 = vmatprep.mubr.msk.bf16.mxu1 %vm1074_vm3, %v3291_v60  ;;  %v3275_v38 = vsel %vm1074_vm3, %v4573_v8, 0.0 }
 0xd13   : > { %v4575_v43 = vpop.eup %4574  ;;  %3276 = vadd.xlane.f32.xlu0 %v3275_v38 }
 0xd14   : > { %v3278_v49 = vsel %vm1074_vm3, %v4575_v43, 0.0  ;;  %v3292_v47 = vpack.c.bf16 %v4575_v43, %v4573_v8  ;;  %v4577_v20 = vpop.eup %4576 }
 0xd15   : > { %3279 = vadd.xlane.f32.xlu1 %v3278_v49  ;;  %v4579_v44 = vpop.eup %4578  ;;  %v3251_v32 = vmul.f32 0.0, %v4577_v20 }
 0xd16   : > { %4302 = vmatmul.mubr.msk.bf16.gmra.mrb[96].mxu1 %vm1074_vm3, %v3292_v47  ;;  %v4581_v1 = vpop.eup %4580  ;;  %v3249_v45 = vmul.f32 0.0, %v4579_v44 }
 0xd17   : > { %v4583_v55 = vpop.eup %4582  ;;  %v3252_v54 = vmul.f32 0.0, %v4581_v1 }
 0xd18   : > { %v3250_v10 = vmul.f32 0.0, %v4583_v55  ;;  %v4585_v52 = vpop.eup %4584 }
 0xd19   : > { %v4587_v27 = vpop.eup %4586  ;;  %v3255_v58 = vmul.f32 0.0, %v4585_v52 }
 0xd1a   : > { %v4589_v15 = vpop.eup %4588  ;;  %v3253_v46 = vmul.f32 0.0, %v4587_v27 }
 0xd1b   : > { %v4591_v61 = vpop.eup %4590  ;;  %v3256_v39 = vmul.f32 0.0, %v4589_v15 }
 0xd1c   : > { %v3254_v37 = vmul.f32 0.0, %v4591_v61 }
 0xd94   : > { %v3259_v29 = vpop.xlane.xlu0 %3258 }
 0xd95   : > { %v3281_v62 = vadd.f32 %v3259_v29, %v3249_v45 }
 0xd96   : > { %v3262_v50 = vpop.xlane.xlu1 %3261 }
 0xd97   : > { %v3282_v5 = vadd.f32 %v3262_v50, %v3250_v10 }
 0xd98   : > { %v3265_v21 = vpop.xlane.xlu0 %3264 }
 0xd99   : > { %v3283_v53 = vadd.f32 %v3265_v21, %v3251_v32 }
 0xd9a   : > { %v3268_v28 = vpop.xlane.xlu1 %3267 }
 0xd9b   : > { %v3284_v19 = vadd.f32 %v3268_v28, %v3252_v54  ;;  %4592 = vrcp.f32 %v3283_v53 }
 0xd9c   : > { %v3271_v56 = vpop.xlane.xlu0 %3270  ;;  %4594 = vrcp.f32 %v3281_v62 }
 0xd9d   : > { %4596 = vrcp.f32 %v3284_v19  ;;  %v3285_v33 = vadd.f32 %v3271_v56, %v3253_v46 }
 0xd9e   : > { %v3274_v9 = vpop.xlane.xlu1 %3273  ;;  %4598 = vrcp.f32 %v3282_v5 }
 0xd9f   : > { %v3286_v59 = vadd.f32 %v3274_v9, %v3254_v37 }
 0xda0   : > { %v3277_v51 = vpop.xlane.xlu0 %3276 }
 0xda1   : > { %v3287_v34 = vadd.f32 %v3277_v51, %v3255_v58 }
 0xda2   : > { %v3280_v2 = vpop.xlane.xlu1 %3279 }
 0xda3   : > { %v3288_v23 = vadd.f32 %v3280_v2, %v3256_v39  ;;  %4600 = vrcp.f32 %v3287_v34 }
 0xda4   : > { %4602 = vrcp.f32 %v3285_v33 }
 0xda5   : > { %v4593_v43 = vpop.eup %4592  ;;  %4604 = vrcp.f32 %v3288_v23 }
 0xda6   : > { %v4595_v0 = vpop.eup %4594  ;;  %4606 = vrcp.f32 %v3286_v59 }
 0xda7   : > { %v4597_v42 = vpop.eup %4596 }
 0xda8   : > { %v4599_v35 = vpop.eup %4598 }
 0xdad   : > { %v4601_v40 = vpop.eup %4600 }
 0xdae   : > { %v4603_v7 = vpop.eup %4602 }
 0xdaf   : > { %v4605_v28 = vpop.eup %4604 }
 0xdb0   : > { %v4607_v55 = vpop.eup %4606 }
 0xde1   : > { %v4299_v60 = vpop.f32.mrb[92].mxu1 }
 0xde2   : > { %v3372_v8 = vadd.f32 %v4299_v60, %v3251_v32  ;;  %v3339_v38 = vpop.f32.mrb[93].mxu1 }
 0xde3   : > { %v3370_v49 = vadd.f32 %v3339_v38, %v3249_v45  ;;  %v4300_v47 = vpop.f32.mrb[94].mxu1 }
 0xde4   : > { %v3388_v4 = vmul.f32 %v4593_v43, %v3372_v8  ;;  %v3373_v26 = vadd.f32 %v4300_v47, %v3252_v54  ;;  %v3342_v31 = vpop.f32.mrb[95].mxu1  ;;  %v3595_v54 = vld [vmem:[%s5559_s11] ss:$0 sm:$0xff] }
 0xde5   : > { %v3386_v24 = vmul.f32 %v4595_v0, %v3370_v49  ;;  %v3371_v41 = vadd.f32 %v3342_v31, %v3250_v10  ;;  %v682_v62 = vadd.f32 %v4716_v13, %v3595_v54  ;;  %v680_v10 = vadd.f32 %v4712_v11, %v3595_v54 }
 0xde6   : > { %v3389_v6 = vmul.f32 %v4597_v42, %v3373_v26  ;;  %v683_v9 = vadd.f32 %v4718_v14, %v3595_v54  ;;  %v681_v52 = vadd.f32 %v4714_v12, %v3595_v54  ;;  %v684_v34 = vadd.f32 %v4720_v16, %v3595_v54 }
 0xde7   : > { %v3387_v30 = vmul.f32 %v4599_v35, %v3371_v41 }
 0xde8   : > { %v3395_v3 = vpack.c.bf16 %v3389_v6, %v3388_v4 }
 0xde9   : > { %v3394_v63 = vpack.c.bf16 %v3387_v30, %v3386_v24  ;;  %v4303_v25 = vpop.f32.mrb[96].mxu1 }
 0xdea   : > { %v3376_v29 = vadd.f32 %v4303_v25, %v3255_v58  ;;  %v3355_v48 = vpop.f32.mrb[97].mxu1 }
 0xdeb   : > { %v3374_v50 = vadd.f32 %v3355_v48, %v3253_v46  ;;  %v4304_v36 = vpop.f32.mrb[98].mxu1  ;;  %4307 = vmatprep.mubr.msk.bf16.mxu0 %vm984_vm2, %v3394_v63  ;;  %v686_v46 = vadd.f32 %v4724_v18, %v3595_v54 }
 0xdec   : > { %v3392_v57 = vmul.f32 %v4601_v40, %v3376_v29  ;;  %v3377_v21 = vadd.f32 %v4304_v36, %v3256_v39  ;;  %v3358_v20 = vpop.f32.mrb[99].mxu1  ;;  %4308 = vmatmul.mubr.msk.bf16.vlgmr.msra.gmra.mrb[20].mxu0 %vm984_vm2, %v3395_v3  ;;  %v687_v39 = vadd.f32 %v4732_v22, %v3595_v54 }
 0xded   : > { %v3390_v44 = vmul.f32 %v4603_v7, %v3374_v50  ;;  %v3375_v1 = vadd.f32 %v3358_v20, %v3254_v37  ;;  %v685_v37 = vadd.f32 %v4722_v17, %v3595_v54 }
 0xdee   : > { %v3393_v32 = vmul.f32 %v4605_v28, %v3377_v21 }
 0xdef   : > { %v3391_v45 = vmul.f32 %v4607_v55, %v3375_v1 }
 0xdf0   : > { %v3397_v56 = vpack.c.bf16 %v3393_v32, %v3392_v57 }
 0xdf1   : > { %v3396_v53 = vpack.c.bf16 %v3391_v45, %v3390_v44 }
 0xdf3   : > { %4311 = vmatprep.mubr.msk.bf16.mxu0 %vm984_vm2, %v3396_v53 }
 0xdf4   : > { %4312 = vmatmul.mubr.msk.bf16.gmra.mrb[24].mxu0 %vm984_vm2, %v3397_v56 }
 0xebf   : > { %v4309_v19 = vpop.f32.mrb[20].mxu0 }
 0xec0   : > { %v4327_v5 = vadd.f32 %v4309_v19, %v682_v62  ;;  %v3449_v27 = vpop.f32.mrb[21].mxu0 }
 0xec1   : > { %v4328_v13 = vadd.f32 %v3449_v27, %v680_v10  ;;  %v4310_v11 = vpop.f32.mrb[22].mxu0 }
 0xec2   : > { %v3790_v15 = vpack.c.bf16 %v4327_v5, %v4327_v5  ;;  %v4329_v14 = vadd.f32 %v4310_v11, %v683_v9  ;;  %v3452_v51 = vpop.f32.mrb[23].mxu0 }
 0xec3   : > { %v3788_v61 = vpack.c.bf16 %v4328_v13, %v4328_v13  ;;  %v4330_v12 = vadd.f32 %v3452_v51, %v681_v52 }
 0xec4   : > { %3523 = vst.msk [vmem:[%s5523_s15 + $0x8] sm:$0xf] %vm3520_vm5, %v3790_v15  ;;  %v3791_v58 = vpack.c.bf16 %v4329_v14, %v4329_v14 }
 0xec5   : > { %3521 = vst.msk [vmem:[%s5523_s15] sm:$0xf] %vm3520_vm5, %v3788_v61  ;;  %v3789_v2 = vpack.c.bf16 %v4330_v12, %v4330_v12 }
 0xec6   : > { %3524 = vst.msk [vmem:[%s5523_s15 + $0xc] sm:$0xf] %vm3520_vm5, %v3791_v58 }
 0xec7   : > { %3522 = vst.msk [vmem:[%s5523_s15 + $0x4] sm:$0xf] %vm3520_vm5, %v3789_v2  ;;  %v4313_v33 = vpop.f32.mrb[24].mxu0 }
 0xec8   : > { %v4331_v23 = vadd.f32 %v4313_v33, %v686_v46  ;;  %v3465_v18 = vpop.f32.mrb[25].mxu0 }
 0xec9   : > { %v4332_v59 = vadd.f32 %v3465_v18, %v684_v34  ;;  %v4314_v60 = vpop.f32.mrb[26].mxu0 }
 0xeca   : > { %v3794_v8 = vpack.c.bf16 %v4331_v23, %v4331_v23  ;;  %v4333_v38 = vadd.f32 %v4314_v60, %v687_v39  ;;  %v3468_v43 = vpop.f32.mrb[27].mxu0 }
 0xecb   : > { %v3792_v16 = vpack.c.bf16 %v4332_v59, %v4332_v59  ;;  %v4334_v49 = vadd.f32 %v3468_v43, %v685_v37 }
 0xecc   : > { %3527 = vst.msk [vmem:[%s5523_s15 + $0x18] sm:$0xf] %vm3520_vm5, %v3794_v8  ;;  %v3795_v47 = vpack.c.bf16 %v4333_v38, %v4333_v38 }
 0xecd   : > { %3525 = vst.msk [vmem:[%s5523_s15 + $0x10] sm:$0xf] %vm3520_vm5, %v3792_v16  ;;  %v3793_v22 = vpack.c.bf16 %v4334_v49, %v4334_v49 }
 0xece   : > { %3528 = vst.msk [vmem:[%s5523_s15 + $0x1c] sm:$0xf] %vm3520_vm5, %v3795_v47 }
 0xecf   : > { %3526 = vst.msk [vmem:[%s5523_s15 + $0x14] sm:$0xf] %vm3520_vm5, %v3793_v22 }
 0xed0 PF: > { %s22_s21 = sadd.s32 1, %s4614_s21  }
 0xed1   : > { %p19_p4 = scmp.ge.s32.totalorder %s22_s21, 4  }
 0xed3   :  { %21 = sbr.rel (!%p19_p4) target bundleno = 1 (0x1), region = 119 }

// kernel: block_forward.13
= control target key start
LH: loop header
LB: loop body
LE: loop exit
PB: predicated region body
PF: predicated region fallthrough
CT: control target
= control target key end

     0   :  { %8 = vsyncpa [#allocation3], 0  ;;  %s1403_s0 = inlined_call_operand.vmem [shape: bf16[2,5,5,128], index: 0, kind: input, shape index: {}]   ;;  %s1404_s1 = inlined_call_operand.vmem [shape: bf16[4,128,64], index: 1, kind: input, shape index: {}]   ;;  %s1405_s2 = inlined_call_operand.vmem [shape: f32[1,64], index: 2, kind: input, shape index: {}]   ;;  %s1406_s3 = inlined_call_operand.hbm [shape: bf16[2,4,4,64], index: 3, kind: output, shape index: {}]  }
   0x1   :  { %10 = vsyncpa [#allocation3 + $0x1], 0  ;;  %s1128_s12 = smov 0   ;;  %s1130_s13 = smov 0  }
   0x2   :  { %s1132_s14 = smov 0   ;;  %s1134_s15 = smov 0  }
   0x3 LB: > { %s1149_s16 = sadd.s32 4294967295, %s1097_s15   ;;  %s729_s17 = sadd.s32 4294967294, %s1097_s15   ;;  %s1097_s15 = sphi %s1134_s15, %s1412_s15   ;;  %s1093_s14 = sphi %s1132_s14, %s1411_s14   ;;  %s1089_s13 = sphi %s1130_s13, %s1410_s13   ;;  %s1085_s12 = sphi %s1128_s12, %s1409_s12  }
   0x4   : > { %s1153_s18 = sadd.s32 1, %s1097_s15   ;;  %s91_s19 = sadd.s32 1, %s1093_s14 }
   0x5   : > { %s88_s20 = ssub.s32 %s1097_s15, %s1153_s18  ;;  %p101_p0 = scmp.ne.s32.totalorder %s1093_s14, %s1089_s13 }
   0x6   : > { %p89_p1 = scmp.eq.s32.totalorder %s88_s20, 0  ;;  %p102_p2 = scmp.eq.s32.totalorder %s1149_s16, 1 }
   0x7   : > { %p107_p3 = scmp.ne.s32.totalorder %s1089_s13, %s1085_s12  ;;  %p108_p4 = scmp.eq.s32.totalorder %s729_s17, 1 }
   0x8   : > { %s1164_s21 = scalar_select %p89_p1, %s1093_s14, %s91_s19  }
   0x9   : > { %p1166_p5 = por %p102_p2, %p101_p0  ;;  %p1170_p6 = por %p108_p4, %p107_p3 }
   0xa   : > { %p732_p7 = scmp.ge.s32.totalorder %s1097_s15, 1  ;;  %p140_p8 = scmp.lt.s32.totalorder %s1097_s15, 3 }
   0xc   : > { %p141_p9 = pnand %p732_p7, %p140_p8 }
   0xd   : > { %s161_s24 = sand.u32 (!%p141_p9), 1, %s1089_s13   ;;  %p164_p10 = scmp.lt.s32.totalorder (!%p141_p9), %s1149_s16, 1  ;;  %v1181_v0 = vld [vmem:[%s1405_s2] ss:$0 sm:$0xff] (!%p141_p9) }
   0xe   : > { %144 = sbr.rel (%p141_p9) target bundleno = 326 (0x146), region = 32  ;;  %s1185_s27 = sshll.u32 (!%p141_p9), %s161_s24, 3 }
   0xf   : > { %s163_s6 = scalar_lea.vmem (!%p141_p9), [#allocation2], %s1185_s27  ;;  %s1194_s7 = smov (!%p141_p9), 0  }
  0x15   : > { %s165_s28 = scalar_select %p164_p10, %s1149_s16, 1 }
  0x17   : > { %s945_s29 = smul.u32 20, %s165_s28 }
  0x19   : > { %s1191_s5 = scalar_lea.vmem %s1403_s0, %s945_s29 }
  0x1a LB: >> { %v997_v1 = vld [vmem:[%s1404_s1 + $0x40] sm:$0xff]   ;;  %v1103_v2 = vmov 0.0   ;;  %v999_v4 = vld [vmem:[%s1404_s1 + $0x48] sm:$0xff]   ;;  %vm1104_vm0 = vmmov 0   ;;  %v1001_v6 = vld [vmem:[%s1404_s1 + $0x50] sm:$0xff]   ;;  %s735_s9 = sshll.u32 %s1101_s7, 2  ;;  %s1101_s7 = sphi %s1194_s7, %s176_s7  }
  0x1b   : >> { %865 = vmatprep.subr.bf16.mxu0 %v1103_v2  ;;  %885 = vmatprep.subr.bf16.mxu1 %v1103_v2  ;;  %v998_v3 = vld [vmem:[%s1404_s1] sm:$0xff]   ;;  %v1000_v5 = vld [vmem:[%s1404_s1 + $0x8] sm:$0xff]   ;;  %v1002_v7 = vld [vmem:[%s1404_s1 + $0x10] sm:$0xff]   ;;  %s1237_s17 = scalar_lea.vmem %s1191_s5, %s735_s9  ;;  %vm639_vm1 = vcmask 517120  }
  0x1c   : >> { %866 = vmatpush3.bf16.msra.mxu0 %v997_v1  ;;  %881 = vmatprep.mubr.msk.bf16.mxu0 %vm1104_vm0, %v1103_v2  ;;  %v1003_v8 = vld [vmem:[%s1404_s1 + $0x58] sm:$0xff]   ;;  %v1005_v10 = vld [vmem:[%s1404_s1 + $0x60] sm:$0xff]   ;;  %v1007_v13 = vld [vmem:[%s1404_s1 + $0x68] sm:$0xff]  }
  0x1d   : >> { %886 = vmatpush3.bf16.msra.mxu1 %v998_v3  ;;  %867 = vmatprep.subr.bf16.mxu0 %v1103_v2  ;;  %v1004_v9 = vld [vmem:[%s1404_s1 + $0x18] sm:$0xff]   ;;  %v1006_v11 = vld [vmem:[%s1404_s1 + $0x20] sm:$0xff]   ;;  %v1008_v14 = vld [vmem:[%s1404_s1 + $0x28] sm:$0xff]  }
  0x1e   : >> { %887 = vmatprep.subr.bf16.mxu1 %v1103_v2  ;;  %901 = vmatprep.mubr.msk.bf16.mxu1 %vm1104_vm0, %v1103_v2  ;;  %v1013_v12 = vld [vmem:[%s1237_s17] ss:$0 sps:$4 sm:$0x77]   ;;  %v1009_v16 = vld [vmem:[%s1404_s1 + $0x70] sm:$0xff]   ;;  %v1011_v20 = vld [vmem:[%s1404_s1 + $0x78] sm:$0xff]  }
  0x1f   : >> { %v220_v15 = vshll.u32 %v1013_v12, 16  ;;  %v1010_v17 = vld [vmem:[%s1404_s1 + $0x30] sm:$0xff]   ;;  %v218_v18 = vshrl.u32 %v1013_v12, 16  ;;  %v1012_v21 = vld [vmem:[%s1404_s1 + $0x38] sm:$0xff]   ;;  %v1014_v23 = vld [vmem:[%s1404_s1 + $0x80] sm:$0xff]  }
  0x20   : >> { %868 = vmatpush3.bf16.msra.mxu0 %v999_v4  ;;  %v179_v24 = vld [vmem:[%s1237_s17] sm:$0x3]  ;;  %v1016_v26 = vld [vmem:[%s1404_s1 + $0x88] sm:$0xff]   ;;  %v1018_v28 = vld [vmem:[%s1404_s1 + $0x90] sm:$0xff]  }
  0x21   : >> { %888 = vmatpush3.bf16.msra.mxu1 %v1000_v5  ;;  %869 = vmatprep.subr.bf16.mxu0 %v1103_v2  ;;  %v222_v19 = vrot.slane %v220_v15, 1  ;;  %v1015_v25 = vld [vmem:[%s1404_s1 + $0xc0] sm:$0xff]   ;;  %v1017_v27 = vld [vmem:[%s1404_s1 + $0xc8] sm:$0xff]   ;;  %v1019_v29 = vld [vmem:[%s1404_s1 + $0xd0] sm:$0xff]  }
  0x22   : >> { %889 = vmatprep.subr.bf16.mxu1 %v1103_v2  ;;  %v1020_v30 = vld [vmem:[%s1404_s1 + $0x98] sm:$0xff]   ;;  %v1022_v32 = vld [vmem:[%s1404_s1 + $0xa0] sm:$0xff]   ;;  %v1024_v34 = vld [vmem:[%s1404_s1 + $0xa8] sm:$0xff]  }
  0x23   : >> { %v223_v22 = vor.u32 %v222_v19, %v218_v18  ;;  %v1021_v31 = vld [vmem:[%s1404_s1 + $0xd8] sm:$0xff]   ;;  %v1023_v33 = vld [vmem:[%s1404_s1 + $0xe0] sm:$0xff]   ;;  %v1025_v36 = vld [vmem:[%s1404_s1 + $0xe8] sm:$0xff]  }
  0x24   : >> { %870 = vmatpush3.bf16.msra.mxu0 %v1001_v6  ;;  %v1030_v35 = vld [vmem:[%s1237_s17 + $0x4] ss:$0 sps:$4 sm:$0x77]   ;;  %v1026_v37 = vld [vmem:[%s1404_s1 + $0xb0] sm:$0xff]   ;;  %v1028_v40 = vld [vmem:[%s1404_s1 + $0xb8] sm:$0xff]  }
  0x25   : >> { %890 = vmatpush3.bf16.msra.mxu1 %v1002_v7  ;;  %871 = vmatprep.subr.bf16.mxu0 %v1103_v2  ;;  %v535_v38 = vshll.u32 %v1030_v35, 16  ;;  %v1027_v39 = vld [vmem:[%s1404_s1 + $0xf0] sm:$0xff]   ;;  %v533_v41 = vshrl.u32 %v1030_v35, 16  ;;  %v1029_v43 = vld [vmem:[%s1404_s1 + $0xf8] sm:$0xff]   ;;  %v770_v44 = vld [vmem:[%s1237_s17 + $0x4] sm:$0x3] }
  0x26   : >> { %891 = vmatprep.subr.bf16.mxu1 %v1103_v2  ;;  %s822_s17 = sshll.u32 %s1101_s7, 1  ;;  %s176_s7 = sadd.s32 1, %s1101_s7  }
  0x27   : >> { %v537_v42 = vrot.slane %v535_v38, 1  ;;  %s638_s19 = scalar_lea.vmem %s163_s6, %s822_s17 [#allocation2]  ;;  %p173_p11 = scmp.ge.s32.totalorder %s176_s7, 4  }
  0x28   : >> { %872 = vmatpush3.bf16.msra.mxu0 %v1003_v8  ;;  %s828_s20 = sshll.u32 (%p173_p11), %s1149_s16, 7  ;;  %s655_s29 = sshll.u32 (%p173_p11), %s163_s6, 4  ;;  %s1358_s29 = int_to_ptr.vmem [resolvable:$true] %s655_s29 }
  0x29   : >> { %892 = vmatpush3.bf16.msra.mxu1 %v1004_v9  ;;  %873 = vmatprep.subr.bf16.mxu0 %v1103_v2  ;;  %v538_v45 = vor.u32 %v537_v42, %v533_v41  ;;  %s1354_s28 = scalar_lea.hbm (%p173_p11), %s1406_s3, %s828_s20  ;;  %s1362_s7 = scalar_lea.sflag (%p173_p11), [#allocation3], %s161_s24 }
  0x2a   : >> { %893 = vmatprep.subr.bf16.mxu1 %v1103_v2  ;;  %s1031_s5 = scalar_lea.vmem (%p173_p11), %s1358_s29, 128  ;;  %s1105_s16 = smov (%p173_p11), [#allocation2]  }
  0x2b   : > { %p1032_p12 = scmp.ne.s32.totalorder (%p173_p11), %s1358_s29, %s1031_s5  ;;  %s1035_s30 = sshll.u32 (%p173_p11), %s1105_s16, 4  ;;  %s1036_s30 = int_to_ptr.vmem [resolvable:$false] %s1035_s30 }
  0x2c   : >> { %874 = vmatpush3.bf16.msra.mxu0 %v1005_v10  ;;  %s1037_s4 = scalar_lea.vmem (%p173_p11), %s1036_s30, 256  ;;  %p1038_p1 = scmp.lt.s32.totalorder (%p173_p11), %s1358_s29, %s1036_s30 }
  0x2d   : >> { %894 = vmatpush3.bf16.msra.mxu1 %v1006_v11  ;;  %875 = vmatprep.subr.bf16.mxu0 %v1103_v2  ;;  %p1033_p13 = pnand (%p173_p11), %p1032_p12, %p1166_p5  ;;  %p1039_p2 = scmp.lt.s32.totalorder (%p173_p11), %s1037_s4, %s1031_s5 }
  0x2e   : >> { %895 = vmatprep.subr.bf16.mxu1 %v1103_v2 }
  0x2f   : > { %p1034_p0 = pneg (%p173_p11), %p1033_p13  ;;  %p1040_p3 = por (%p173_p11), %p1039_p2, %p1038_p1 }
  0x30   : >> { %876 = vmatpush3.bf16.msra.mxu0 %v1007_v13 }
  0x31   : >> { %896 = vmatpush3.bf16.msra.mxu1 %v1008_v14  ;;  %877 = vmatprep.subr.bf16.mxu0 %v1103_v2  ;;  %p1041_p4 = pnand (%p173_p11), %p1040_p3, %p1034_p0 }
  0x32   : >> { %897 = vmatprep.subr.bf16.mxu1 %v1103_v2 }
  0x34   : >> { %878 = vmatpush3.bf16.msra.mxu0 %v1009_v16 }
  0x35   : >> { %898 = vmatpush3.bf16.msra.mxu1 %v1010_v17  ;;  %879 = vmatprep.subr.bf16.mxu0 %v1103_v2 }
  0x36   : >> { %899 = vmatprep.subr.bf16.mxu1 %v1103_v2 }
  0x38   : >> { %880 = vmatpush3.bf16.msra.mxu0 %v1011_v20 }
  0x39   : >> { %900 = vmatpush3.bf16.msra.mxu1 %v1012_v21  ;;  %905 = vmatprep.subr.bf16.mxu0 %v1103_v2 }
  0x3a   : >> { %925 = vmatprep.subr.bf16.mxu1 %v1103_v2 }
  0x3b   : >> { %882 = vmatmul.mubr.bf16.vlgmr.msra.gmra.mrb[0].mxu0 %v223_v22 }
  0x3c   : >> { %902 = vmatmul.mubr.bf16.vlgmr.msra.gmra.mrb[0].mxu1 %v179_v24  ;;  %906 = vmatpush3.bf16.msra.mxu0 %v1014_v23 }
  0x3d   : >> { %926 = vmatpush3.bf16.msra.mxu1 %v1015_v25  ;;  %907 = vmatprep.subr.bf16.mxu0 %v1103_v2 }
  0x3e   : >> { %927 = vmatprep.subr.bf16.mxu1 %v1103_v2  ;;  %921 = vmatprep.mubr.msk.bf16.mxu0 %vm1104_vm0, %v1103_v2 }
  0x3f   : >> { %941 = vmatprep.mubr.msk.bf16.mxu1 %vm1104_vm0, %v1103_v2 }
  0x40   : >> { %908 = vmatpush3.bf16.msra.mxu0 %v1016_v26 }
  0x41   : >> { %928 = vmatpush3.bf16.msra.mxu1 %v1017_v27  ;;  %909 = vmatprep.subr.bf16.mxu0 %v1103_v2 }
  0x42   : >> { %929 = vmatprep.subr.bf16.mxu1 %v1103_v2 }
  0x44   : >> { %910 = vmatpush3.bf16.msra.mxu0 %v1018_v28 }
  0x45   : >> { %930 = vmatpush3.bf16.msra.mxu1 %v1019_v29  ;;  %911 = vmatprep.subr.bf16.mxu0 %v1103_v2 }
  0x46   : >> { %931 = vmatprep.subr.bf16.mxu1 %v1103_v2 }
  0x48   : >> { %912 = vmatpush3.bf16.msra.mxu0 %v1020_v30 }
  0x49   : >> { %932 = vmatpush3.bf16.msra.mxu1 %v1021_v31  ;;  %913 = vmatprep.subr.bf16.mxu0 %v1103_v2 }
  0x4a   : >> { %933 = vmatprep.subr.bf16.mxu1 %v1103_v2 }
  0x4c   : >> { %914 = vmatpush3.bf16.msra.mxu0 %v1022_v32 }
  0x4d   : >> { %934 = vmatpush3.bf16.msra.mxu1 %v1023_v33  ;;  %915 = vmatprep.subr.bf16.mxu0 %v1103_v2 }
  0x4e   : >> { %935 = vmatprep.subr.bf16.mxu1 %v1103_v2 }
  0x50   : >> { %916 = vmatpush3.bf16.msra.mxu0 %v1024_v34 }
  0x51   : >> { %936 = vmatpush3.bf16.msra.mxu1 %v1025_v36  ;;  %917 = vmatprep.subr.bf16.mxu0 %v1103_v2 }
  0x52   : >> { %937 = vmatprep.subr.bf16.mxu1 %v1103_v2 }
  0x54   : >> { %918 = vmatpush3.bf16.msra.mxu0 %v1026_v37 }
  0x55   : >> { %938 = vmatpush3.bf16.msra.mxu1 %v1027_v39  ;;  %919 = vmatprep.subr.bf16.mxu0 %v1103_v2 }
  0x56   : >> { %939 = vmatprep.subr.bf16.mxu1 %v1103_v2 }
  0x58   : >> { %920 = vmatpush3.bf16.msra.mxu0 %v1028_v40 }
  0x59   : >> { %940 = vmatpush3.bf16.msra.mxu1 %v1029_v43 }
  0x5b   : >> { %922 = vmatmul.mubr.bf16.vlgmr.msra.gmra.mrb[4].mxu0 %v770_v44 }
  0x5c   : >> { %942 = vmatmul.mubr.bf16.vlgmr.msra.gmra.mrb[4].mxu1 %v538_v45 }
 0x10e   : >> { %v307_v46 = vpop.f32.mrb[0].mxu0 }
 0x10f   : >> { %v395_v47 = vpop.f32.mrb[0].mxu1  ;;  %v883_v48 = vpop.f32.mrb[1].mxu0 }
 0x110   : >> { %v396_v49 = vadd.f32 %v395_v47, %v307_v46  ;;  %v903_v50 = vpop.f32.mrb[1].mxu1  ;;  %v310_v51 = vpop.f32.mrb[2].mxu0 }
 0x111   : >> { %v398_v52 = vpop.f32.mrb[2].mxu1  ;;  %v884_v53 = vpop.f32.mrb[3].mxu0 }
 0x112   : >> { %v904_v54 = vpop.f32.mrb[3].mxu1 }
 0x12e   : >> { %v504_v55 = vpop.f32.mrb[4].mxu0 }
 0x12f   : >> { %v510_v56 = vadd.f32 %v504_v55, %v396_v49  ;;  %v622_v57 = vpop.f32.mrb[4].mxu1  ;;  %v923_v58 = vpop.f32.mrb[5].mxu0 }
 0x130   : >> { %v943_v59 = vpop.f32.mrb[5].mxu1  ;;  %v507_v60 = vpop.f32.mrb[6].mxu0 }
 0x131   : >> { %v628_v61 = vadd.f32 %v622_v57, %v510_v56  ;;  %v625_v62 = vpop.f32.mrb[6].mxu1  ;;  %v924_v63 = vpop.f32.mrb[7].mxu0  ;;  %175 = sbr.rel (!%p173_p11) target bundleno = 26 (0x1a), region = 80 }
 0x132   : >> { %v944_v1 = vpop.f32.mrb[7].mxu1 }
 0x133   : >> { %v635_v2 = vadd.f32 %v1181_v0, %v628_v61 }
 0x135   : >> { %v636_v3 = vpack.c.bf16 %v635_v2, %v635_v2 }
 0x137   : >> { %640 = vst.msk [vmem:[%s638_s19] sm:$0x3] %vm639_vm1, %v636_v3 }
 0x138   : > { %1044 = shalt.err (!%p1041_p4)
}
 0x139   : > { %s1045_s24 = scalar_lea.hbm %s1354_s28, 128  ;;  %s1049_s8 = scalar_lea.hbm %s1406_s3, 256 }
 0x13a   : > { %p1046_p7 = scmp.ne.s32.totalorder %s1354_s28, %s1045_s24  ;;  %p1050_p10 = scmp.lt.u32.totalorder %s1354_s28, %s1406_s3 }
 0x13b   : > { %p1051_p11 = scmp.lt.u32.totalorder %s1049_s8, %s1045_s24  ;;  %p1053_p13 = scmp.lt.u32.totalorder %s1045_s24, %s1354_s28 }
 0x13c   : > { %p1047_p8 = pnand %p1046_p7, %p1166_p5 }
 0x13d   : > { %p1052_p12 = por %p1051_p11, %p1050_p10 }
 0x13e   : > { %p1048_p9 = pneg %p1047_p8 }
 0x13f   : > { %p1054_p0 = por %p1053_p13, %p1052_p12 }
 0x141   : > { %p1055_p1 = pnand %p1054_p0, %p1048_p9 }
 0x143   : > { %1058 = shalt.err (!%p1055_p1)
}
 0x144   : > { %s1106_s11 = smov 32   ;;  %s1107_s17 = smov 2  }
 0x145   : > { %946 = dma.vmem_to_hbm [thread:$0]  (%p1166_p5), %s1358_s29, 128, %s1354_s28, %s1362_s7, %s1106_s11, %s1106_s11, %s1107_s17  }
 0x146 PF: > { %p952_p2 = scmp.ge.s32.totalorder %s1097_s15, 2  ;;  %s670_s19 = sand.u32 1, %s1085_s12  }
 0x147   : > { %s671_s20 = scalar_lea.sflag [#allocation3], %s670_s19 }
 0x148   : > { %p949_p3 = pnand %p952_p2, %p1170_p6 }
 0x14a   : > { %1080 = dma.done.wait (!%p949_p3), %s671_s20, 128  }
 0x14b   : > { %1082 = vsyncadd (!%p949_p3), %s671_s20, 4294967168  ;;  %p13_p4 = scmp.ge.s32.totalorder %s1153_s18, 4   ;;  %s1409_s12 = smov %s1089_s13 }
 0x14c   : > { %s1410_s13 = smov %s1093_s14  ;;  %s1411_s14 = smov %s1164_s21 }
 0x14d   : > { %s1412_s15 = smov %s1153_s18  ;;  %15 = sbr.rel (!%p13_p4) target bundleno = 3 (0x3), region = 91 }
 0x154   :  { %676 = vsyncpa [#allocation3], 1 }
 0x155   :  { %678 = vsyncpa [#allocation3 + $0x1], 1 }

</bundles_post_ra>
